<compile_context>
chip_gen: v7x
topology: tpu7x:2x2x1
jax: 0.10.0
libtpu: 0.0.40
codegen_flags: <defaults>
</compile_context>

<pallas_src>
import functools
import math
import numpy as np

import jax
import jax.numpy as jnp
from jax.experimental import pallas as pl
from jax.experimental.pallas import tpu as pltpu

# ----------------------------- config ------------------------------------- #
EMBED_DIM = 64
NUM_HEADS = 4
NUM_LAYERS = 2
TOKENS_PER_BLOCK = 4
MAX_BLOCKS = 4
MAX_TOKENS = TOKENS_PER_BLOCK * MAX_BLOCKS          # 16
ACT_VOCAB = 6

# head token patterns (from WorldModel.__init__)
OBS_TOKENS_PATTERN = [1, 1, 1, 0]        # ones, last = 0
REWARD_TOKENS_PATTERN = [0, 0, 0, 1]     # zeros, last = 1   (rewards / ends / values)
ACT_HEAD_TOKENS_PATTERN = [0, 0, 1, 0]   # zeros, second-to-last = 1

HEAD_OUT_DIMS = (EMBED_DIM, 3, 2, ACT_VOCAB, 1)     # obs, rew, end, act, val
HEAD_COL_OFFSETS = np.concatenate([[0], np.cumsum(HEAD_OUT_DIMS)]).astype(np.int64)
HEAD_PAD = 128   # fused-head logits (76 cols) zero-padded to 128 lanes (lane-dense store)


# ----------------------------- kernel ------------------------------------- #
def _world_model_kernel(
        x_ref, pe_ref,
        ln1w_ref, ln1b_ref, wqkv_ref, bqkv_ref, wo_ref, bo_ref,
        ln2w_ref, ln2b_ref, wfc_ref, bfc_ref, wpr_ref, bpr_ref,
        lnfw_ref, lnfb_ref,
        wh1_ref, bh1_ref, wh2_ref, bh2_ref,
        seq_ref, head_ref,
        *, B, T):
    """Whole WorldModel forward in one invocation (no grid, all weights VMEM-resident)."""
    D = x_ref.shape[-1]
    H = NUM_HEADS
    hd = D // H
    scale = 1.0 / math.sqrt(hd)

    def layernorm(v, w, b):                       # f32 elementwise math
        mu = jnp.mean(v, axis=-1, keepdims=True)
        var = jnp.mean(jnp.square(v - mu), axis=-1, keepdims=True)
        return (v - mu) * jax.lax.rsqrt(var + 1e-5) * w + b

    def matmul(a, w_bf16):                        # bf16 MXU operands, f32 accumulate
        return jnp.dot(a.astype(jnp.bfloat16), w_bf16,
                       preferred_element_type=jnp.float32)

    # causal additive bias, built once (finite -1e30, never -inf)
    row = jax.lax.broadcasted_iota(jnp.int32, (T, T), 0)
    col = jax.lax.broadcasted_iota(jnp.int32, (T, T), 1)
    causal_bias = jnp.where(col <= row, 0.0, -1e30).astype(jnp.float32)   # (T, T)

    # prologue: sequences + pos_emb — inputs already arrive flattened (B*T, D)
    h = x_ref[...] + pe_ref[...]

    for l in range(NUM_LAYERS):                   # static unroll, weights VMEM-resident
        # ---- causal self attention (all heads in one batched dot pair) ----
        a_in = layernorm(h, ln1w_ref[l], ln1b_ref[l])
        qkv = matmul(a_in, wqkv_ref[l]) + bqkv_ref[l]                     # (B*T, 3D)

        def split_heads(base):
            # (B*T, 3D) column block -> (H*B, T, hd); only lane slices, tile-aligned
            # leading-dim reshapes and an axis-0 concat (no mixed-axis transposes).
            return jnp.concatenate(
                [qkv[:, base + i * hd: base + (i + 1) * hd].reshape(B, T, hd)
                 for i in range(H)], axis=0).astype(jnp.bfloat16)

        q = split_heads(0)
        k = split_heads(D)
        v = split_heads(2 * D)

        att = jnp.einsum('btd,bsd->bts', q, k,
                         preferred_element_type=jnp.float32) * scale      # (H*B, T, T)
        att = att + causal_bias
        att = att - jnp.max(att, axis=-1, keepdims=True)
        p = jnp.exp(att)
        p = p * pl.reciprocal(jnp.sum(p, axis=-1, keepdims=True), approx=True)
        o = jnp.einsum('bts,bsd->btd', p.astype(jnp.bfloat16), v,
                       preferred_element_type=jnp.float32)                # (H*B, T, hd)
        y = jnp.concatenate(
            [o[i * B:(i + 1) * B].reshape(B * T, hd) for i in range(H)], axis=-1)
        h = h + matmul(y, wo_ref[l]) + bo_ref[l]

        # ---- MLP ----
        m_in = layernorm(h, ln2w_ref[l], ln2b_ref[l])
        m = matmul(m_in, wfc_ref[l]) + bfc_ref[l]
        # TODO(synk): PyTorch nn.GELU() defaults to exact erf; tanh approximation used.
        m = jax.nn.gelu(m, approximate=True)
        h = h + matmul(m, wpr_ref[l]) + bpr_ref[l]

    # final LayerNorm -> output_sequence, written as a 2-D (B*T, D) slab
    x_out = layernorm(h, lnfw_ref[...], lnfb_ref[...])
    seq_ref[...] = x_out

    # ---- all five heads fused: Linear -> ReLU -> block-diag Linear (128 lanes) ----
    hid = jnp.maximum(matmul(x_out, wh1_ref[...]) + bh1_ref[...], 0.0)    # (B*T, 5D)
    head_ref[...] = matmul(hid, wh2_ref[...]) + bh2_ref[...]              # (B*T, 128)


# ----------------------------- slicer -------------------------------------- #
def compute_slice(block_mask, num_steps, prev_steps):
    """Python/numpy port of iris Slicer.compute_slice (compile-time, static)."""
    block_mask = np.asarray(block_mask)
    block_size = block_mask.shape[0]
    kept = np.where(block_mask)[0]
    num_kept = len(kept)
    indices = np.concatenate([kept + b * block_size for b in range(MAX_BLOCKS)])
    total = num_steps + prev_steps
    num_blocks = int(math.ceil(total / block_size))
    indices = indices[:num_blocks * num_kept]
    indices = indices[(indices >= prev_steps) & (indices < total)] - prev_steps
    return np.asarray(indices, dtype=np.int32)


# ------------------------ one-time weight preparation ----------------------- #
def prepare_params(p):
    """Fuse / cast / pad weights ONCE (kept out of the per-call jitted path)."""
    bf16 = jnp.bfloat16
    heads = [p['head_obs'], p['head_rew'], p['head_end'], p['head_act'], p['head_val']]
    n_out = int(HEAD_COL_OFFSETS[-1])
    pad = HEAD_PAD - n_out
    wh2_blk = jax.scipy.linalg.block_diag(*[h['w2'] for h in heads])          # (5D, 76)
    bh2_cat = jnp.concatenate([h['b2'] for h in heads], axis=1)               # (1, 76)
    prepped = dict(
        pos_emb=p['pos_emb'],
        ln1_w=p['ln1_w'], ln1_b=p['ln1_b'],
        wqkv=jnp.concatenate([p['wq'], p['wk'], p['wv']], axis=-1).astype(bf16),  # (L,D,3D)
        bqkv=jnp.concatenate([p['bq'], p['bk'], p['bv']], axis=-1),               # (L,1,3D)
        wo=p['wo'].astype(bf16), bo=p['bo'],
        ln2_w=p['ln2_w'], ln2_b=p['ln2_b'],
        w_fc=p['w_fc'].astype(bf16), b_fc=p['b_fc'],
        w_pr=p['w_pr'].astype(bf16), b_pr=p['b_pr'],
        lnf_w=p['lnf_w'], lnf_b=p['lnf_b'],
        wh1=jnp.concatenate([h['w1'] for h in heads], axis=1).astype(bf16),       # (D, 5D)
        bh1=jnp.concatenate([h['b1'] for h in heads], axis=1),                    # (1, 5D)
        wh2=jnp.pad(wh2_blk, ((0, 0), (0, pad))).astype(bf16),                    # (5D, 128)
        bh2=jnp.pad(bh2_cat, ((0, 0), (0, pad))),                                 # (1, 128)
    )
    return jax.tree_util.tree_map(jax.block_until_ready, prepped)


# ----------------------------- wrapper ------------------------------------- #
def _world_model_forward(pp, sequences, prev_steps=0):
    B, T, D = sequences.shape
    assert T <= MAX_TOKENS and D == EMBED_DIM
    BT = B * T

    # positional embedding rows: static indices (prev_steps / T are static under jit)
    pos = (prev_steps + np.arange(T)) % (MAX_TOKENS * 2)
    pe = pp['pos_emb'][pos]                                               # (T, D)
    pe_flat = jnp.tile(pe, (B, 1))                                        # (B*T, D)
    x_flat = sequences.reshape(BT, D)

    args = (x_flat, pe_flat,
            pp['ln1_w'], pp['ln1_b'], pp['wqkv'], pp['bqkv'], pp['wo'], pp['bo'],
            pp['ln2_w'], pp['ln2_b'], pp['w_fc'], pp['b_fc'], pp['w_pr'], pp['b_pr'],
            pp['lnf_w'], pp['lnf_b'],
            pp['wh1'], pp['bh1'], pp['wh2'], pp['bh2'])

    # advisory cost estimate (lets XLA schedule neighbouring ops around the call)
    hd = D // NUM_HEADS
    flops_layer = (2 * BT * D * 3 * D + 4 * B * NUM_HEADS * T * T * hd
                   + 2 * BT * D * D + 2 * BT * D * 4 * D + 2 * BT * 4 * D * D)
    flops = NUM_LAYERS * flops_layer + 2 * BT * D * 5 * D + 2 * BT * 5 * D * HEAD_PAD
    transcendentals = NUM_LAYERS * (B * NUM_HEADS * T * T + BT * 4 * D)
    bytes_accessed = (sum(a.size * a.dtype.itemsize for a in args)
                      + (BT * D + BT * HEAD_PAD) * 4)

    vmem = pltpu.MemorySpace.VMEM
    kernel = functools.partial(_world_model_kernel, B=B, T=T)
    out_seq_flat, head_flat = pl.pallas_call(
        kernel,
        out_shape=(jax.ShapeDtypeStruct((BT, D), jnp.float32),
                   jax.ShapeDtypeStruct((BT, HEAD_PAD), jnp.float32)),
        in_specs=[pl.BlockSpec(memory_space=vmem)] * len(args),
        out_specs=(pl.BlockSpec(memory_space=vmem),
                   pl.BlockSpec(memory_space=vmem)),
        cost_estimate=pl.CostEstimate(flops=int(flops),
                                      transcendentals=int(transcendentals),
                                      bytes_accessed=int(bytes_accessed)),
        compiler_params=pltpu.CompilerParams(vmem_limit_bytes=32 * 1024 * 1024),
    )(*args)

    out_seq = out_seq_flat.reshape(B, T, D)
    head_full = head_flat.reshape(B, T, HEAD_PAD)

    # Slicer token selection + per-head column split (static indices, on the small output)
    slice_steps = prev_steps
    if slice_steps + T > MAX_TOKENS:
        slice_steps = slice_steps % MAX_TOKENS
    slice_steps = slice_steps % TOKENS_PER_BLOCK

    def take_head(pattern, hi):
        idx = compute_slice(pattern, T, slice_steps)
        c0, c1 = int(HEAD_COL_OFFSETS[hi]), int(HEAD_COL_OFFSETS[hi + 1])
        return head_full[:, idx, c0:c1]

    return {
        'output_sequence': out_seq,
        'logits_observations': take_head(OBS_TOKENS_PATTERN, 0),
        'logits_rewards': take_head(REWARD_TOKENS_PATTERN, 1),
        'logits_ends': take_head(REWARD_TOKENS_PATTERN, 2),
        'logits_actions': take_head(ACT_HEAD_TOKENS_PATTERN, 3),
        'values': take_head(REWARD_TOKENS_PATTERN, 4),
    }


world_model_forward = jax.jit(_world_model_forward, static_argnames=('prev_steps',))


# ----------------------------- params -------------------------------------- #
def init_params(key):
    """Deterministic GPT-style init: N(0, 0.02) weights, zero biases, unit LayerNorm."""
    D, L = EMBED_DIM, NUM_LAYERS
    keys = iter(jax.random.split(key, 32))
    nrm = lambda shape: 0.02 * jax.random.normal(next(keys), shape, jnp.float32)

    params = dict(
        pos_emb=nrm((MAX_TOKENS * 2, D)),
        ln1_w=jnp.ones((L, 1, D), jnp.float32), ln1_b=jnp.zeros((L, 1, D), jnp.float32),
        wq=nrm((L, D, D)), bq=jnp.zeros((L, 1, D), jnp.float32),
        wk=nrm((L, D, D)), bk=jnp.zeros((L, 1, D), jnp.float32),
        wv=nrm((L, D, D)), bv=jnp.zeros((L, 1, D), jnp.float32),
        wo=nrm((L, D, D)), bo=jnp.zeros((L, 1, D), jnp.float32),
        ln2_w=jnp.ones((L, 1, D), jnp.float32), ln2_b=jnp.zeros((L, 1, D), jnp.float32),
        w_fc=nrm((L, D, 4 * D)), b_fc=jnp.zeros((L, 1, 4 * D), jnp.float32),
        w_pr=nrm((L, 4 * D, D)), b_pr=jnp.zeros((L, 1, D), jnp.float32),
        lnf_w=jnp.ones((1, D), jnp.float32), lnf_b=jnp.zeros((1, D), jnp.float32),
    )

    def head_params(out_dim):
        return dict(w1=nrm((D, D)), b1=jnp.zeros((1, D), jnp.float32),
                    w2=nrm((D, out_dim)), b2=jnp.zeros((1, out_dim), jnp.float32))

    params['head_obs'] = head_params(EMBED_DIM)
    params['head_rew'] = head_params(3)
    params['head_end'] = head_params(2)
    params['head_act'] = head_params(ACT_VOCAB)
    params['head_val'] = head_params(1)
    return params


# ----------------------------- main ----------------------------------------- #
if __name__ == "__main__":
    key = jax.random.PRNGKey(0)
    pkey, xkey = jax.random.split(key)
    params = init_params(pkey)
    prepped = prepare_params(params)              # one-time fusion / bf16 cast / padding

    B = 2
    T = MAX_TOKENS                                # 16 tokens = 4 blocks * 4
    sequences = jax.random.normal(xkey, (B, T, EMBED_DIM), jnp.float32)

    out = world_model_forward(prepped, sequences, prev_steps=0)
    out = jax.tree_util.tree_map(jax.block_until_ready, out)

    # light sanity checks on shapes / finiteness
    assert out['output_sequence'].shape == (B, T, EMBED_DIM)
    assert out['logits_observations'].shape == (B, 12, EMBED_DIM)
    assert out['logits_rewards'].shape == (B, 4, 3)
    assert out['logits_ends'].shape == (B, 4, 2)
    assert out['logits_actions'].shape == (B, 4, ACT_VOCAB)
    assert out['values'].shape == (B, 4, 1)
    assert all(bool(jnp.all(jnp.isfinite(v))) for v in out.values())

    print("KERNEL_OK")
</pallas_src>

<mosaic_0001>
module attributes {stable_mosaic.version = 11 : i64} {
  func.func @_world_model_kernel(%arg0: memref<32x64xf32, #tpu.memory_space<vmem>>, %arg1: memref<32x64xf32, #tpu.memory_space<vmem>>, %arg2: memref<2x1x64xf32, #tpu.memory_space<vmem>>, %arg3: memref<2x1x64xf32, #tpu.memory_space<vmem>>, %arg4: memref<2x64x192xbf16, #tpu.memory_space<vmem>>, %arg5: memref<2x1x192xf32, #tpu.memory_space<vmem>>, %arg6: memref<2x64x64xbf16, #tpu.memory_space<vmem>>, %arg7: memref<2x1x64xf32, #tpu.memory_space<vmem>>, %arg8: memref<2x1x64xf32, #tpu.memory_space<vmem>>, %arg9: memref<2x1x64xf32, #tpu.memory_space<vmem>>, %arg10: memref<2x64x256xbf16, #tpu.memory_space<vmem>>, %arg11: memref<2x1x256xf32, #tpu.memory_space<vmem>>, %arg12: memref<2x256x64xbf16, #tpu.memory_space<vmem>>, %arg13: memref<2x1x64xf32, #tpu.memory_space<vmem>>, %arg14: memref<1x64xf32, #tpu.memory_space<vmem>>, %arg15: memref<1x64xf32, #tpu.memory_space<vmem>>, %arg16: memref<64x320xbf16, #tpu.memory_space<vmem>>, %arg17: memref<1x320xf32, #tpu.memory_space<vmem>>, %arg18: memref<320x128xbf16, #tpu.memory_space<vmem>>, %arg19: memref<1x128xf32, #tpu.memory_space<vmem>>, %arg20: memref<32x64xf32, #tpu.memory_space<vmem>>, %arg21: memref<32x128xf32, #tpu.memory_space<vmem>>) attributes {dimension_semantics = [], scalar_prefetch = 0 : i64, scratch_operands = 0 : i64, tpu.core_type = #tpu.core_type<tc>} {
    %0 = tpu.iota {dimensions = array<i32: 0>} : vector<16x16xi32>
    %1 = tpu.iota {dimensions = array<i32: 1>} : vector<16x16xi32>
    %2 = arith.cmpi sle, %1, %0 : vector<16x16xi32>
    %cst = arith.constant 0.000000e+00 : f32
    %cst_0 = arith.constant -1.000000e+30 : f32
    %3 = vector.broadcast %cst : f32 to vector<16x16xf32>
    %4 = vector.broadcast %cst_0 : f32 to vector<16x16xf32>
    %5 = arith.select %2, %3, %4 : vector<16x16xi1>, vector<16x16xf32>
    %c0 = arith.constant 0 : index
    %c0_1 = arith.constant 0 : index
    %6 = vector.load %arg0[%c0, %c0_1] : memref<32x64xf32, #tpu.memory_space<vmem>>, vector<32x64xf32>
    %c0_2 = arith.constant 0 : index
    %c0_3 = arith.constant 0 : index
    %7 = vector.load %arg1[%c0_2, %c0_3] : memref<32x64xf32, #tpu.memory_space<vmem>>, vector<32x64xf32>
    %8 = arith.addf %6, %7 : vector<32x64xf32>
    %c0_4 = arith.constant 0 : index
    %c0_5 = arith.constant 0 : index
    %c0_6 = arith.constant 0 : index
    %9 = vector.load %arg2[%c0_4, %c0_5, %c0_6] : memref<2x1x64xf32, #tpu.memory_space<vmem>>, vector<1x1x64xf32>
    %10 = vector.shape_cast %9 : vector<1x1x64xf32> to vector<1x64xf32>
    %c0_7 = arith.constant 0 : index
    %c0_8 = arith.constant 0 : index
    %c0_9 = arith.constant 0 : index
    %11 = vector.load %arg3[%c0_7, %c0_8, %c0_9] : memref<2x1x64xf32, #tpu.memory_space<vmem>>, vector<1x1x64xf32>
    %12 = vector.shape_cast %11 : vector<1x1x64xf32> to vector<1x64xf32>
    %cst_10 = arith.constant dense<0.000000e+00> : vector<32xf32>
    %13 = vector.multi_reduction <add>, %8, %cst_10 [1] : vector<32x64xf32> to vector<32xf32>
    %14 = vector.shape_cast %13 : vector<32xf32> to vector<32x1xf32>
    %cst_11 = arith.constant 6.400000e+01 : f32
    %15 = vector.broadcast %cst_11 : f32 to vector<32x1xf32>
    %16 = arith.divf %14, %15 : vector<32x1xf32>
    %17 = vector.broadcast %16 : vector<32x1xf32> to vector<32x64xf32>
    %18 = arith.subf %8, %17 : vector<32x64xf32>
    %19 = arith.mulf %18, %18 : vector<32x64xf32>
    %cst_12 = arith.constant dense<0.000000e+00> : vector<32xf32>
    %20 = vector.multi_reduction <add>, %19, %cst_12 [1] : vector<32x64xf32> to vector<32xf32>
    %21 = vector.shape_cast %20 : vector<32xf32> to vector<32x1xf32>
    %cst_13 = arith.constant 6.400000e+01 : f32
    %22 = vector.broadcast %cst_13 : f32 to vector<32x1xf32>
    %23 = arith.divf %21, %22 : vector<32x1xf32>
    %24 = vector.broadcast %16 : vector<32x1xf32> to vector<32x64xf32>
    %25 = arith.subf %8, %24 : vector<32x64xf32>
    %cst_14 = arith.constant 9.99999974E-6 : f32
    %26 = vector.broadcast %cst_14 : f32 to vector<32x1xf32>
    %27 = arith.addf %23, %26 : vector<32x1xf32>
    %28 = math.rsqrt %27 : vector<32x1xf32>
    %29 = vector.broadcast %28 : vector<32x1xf32> to vector<32x64xf32>
    %30 = arith.mulf %25, %29 : vector<32x64xf32>
    %31 = vector.broadcast %10 : vector<1x64xf32> to vector<32x64xf32>
    %32 = arith.mulf %30, %31 : vector<32x64xf32>
    %33 = vector.broadcast %12 : vector<1x64xf32> to vector<32x64xf32>
    %34 = arith.addf %32, %33 : vector<32x64xf32>
    %c0_15 = arith.constant 0 : index
    %c0_16 = arith.constant 0 : index
    %c0_17 = arith.constant 0 : index
    %35 = vector.load %arg4[%c0_15, %c0_16, %c0_17] : memref<2x64x192xbf16, #tpu.memory_space<vmem>>, vector<1x64x192xbf16>
    %36 = vector.shape_cast %35 : vector<1x64x192xbf16> to vector<64x192xbf16>
    %37 = arith.truncf %34 : vector<32x64xf32> to vector<32x64xbf16>
    %cst_18 = arith.constant dense<0.000000e+00> : vector<32x192xf32>
    %38 = tpu.matmul %37, %36, %cst_18 {dimension_numbers = #tpu.dot_dimension_numbers<[1], [0], [0], [1], [0, 0, 1, 1], [], []>} : vector<32x64xbf16>, vector<64x192xbf16>, vector<32x192xf32> -> vector<32x192xf32>
    %c0_19 = arith.constant 0 : index
    %c0_20 = arith.constant 0 : index
    %c0_21 = arith.constant 0 : index
    %39 = vector.load %arg5[%c0_19, %c0_20, %c0_21] : memref<2x1x192xf32, #tpu.memory_space<vmem>>, vector<1x1x192xf32>
    %40 = vector.shape_cast %39 : vector<1x1x192xf32> to vector<1x192xf32>
    %41 = vector.broadcast %40 : vector<1x192xf32> to vector<32x192xf32>
    %42 = arith.addf %38, %41 : vector<32x192xf32>
    %43 = vector.extract_strided_slice %42 {offsets = [0, 0], sizes = [32, 16], strides = [1, 1]} : vector<32x192xf32> to vector<32x16xf32>
    %44 = vector.shape_cast %43 : vector<32x16xf32> to vector<2x16x16xf32>
    %45 = vector.extract_strided_slice %42 {offsets = [0, 16], sizes = [32, 16], strides = [1, 1]} : vector<32x192xf32> to vector<32x16xf32>
    %46 = vector.shape_cast %45 : vector<32x16xf32> to vector<2x16x16xf32>
    %47 = vector.extract_strided_slice %42 {offsets = [0, 32], sizes = [32, 16], strides = [1, 1]} : vector<32x192xf32> to vector<32x16xf32>
    %48 = vector.shape_cast %47 : vector<32x16xf32> to vector<2x16x16xf32>
    %49 = vector.extract_strided_slice %42 {offsets = [0, 48], sizes = [32, 16], strides = [1, 1]} : vector<32x192xf32> to vector<32x16xf32>
    %50 = vector.shape_cast %49 : vector<32x16xf32> to vector<2x16x16xf32>
    %51 = tpu.concatenate %44, %46, %48, %50 in 0 : vector<2x16x16xf32>, vector<2x16x16xf32>, vector<2x16x16xf32>, vector<2x16x16xf32> -> vector<8x16x16xf32>
    %52 = arith.truncf %51 : vector<8x16x16xf32> to vector<8x16x16xbf16>
    %53 = vector.extract_strided_slice %42 {offsets = [0, 64], sizes = [32, 16], strides = [1, 1]} : vector<32x192xf32> to vector<32x16xf32>
    %54 = vector.shape_cast %53 : vector<32x16xf32> to vector<2x16x16xf32>
    %55 = vector.extract_strided_slice %42 {offsets = [0, 80], sizes = [32, 16], strides = [1, 1]} : vector<32x192xf32> to vector<32x16xf32>
    %56 = vector.shape_cast %55 : vector<32x16xf32> to vector<2x16x16xf32>
    %57 = vector.extract_strided_slice %42 {offsets = [0, 96], sizes = [32, 16], strides = [1, 1]} : vector<32x192xf32> to vector<32x16xf32>
    %58 = vector.shape_cast %57 : vector<32x16xf32> to vector<2x16x16xf32>
    %59 = vector.extract_strided_slice %42 {offsets = [0, 112], sizes = [32, 16], strides = [1, 1]} : vector<32x192xf32> to vector<32x16xf32>
    %60 = vector.shape_cast %59 : vector<32x16xf32> to vector<2x16x16xf32>
    %61 = tpu.concatenate %54, %56, %58, %60 in 0 : vector<2x16x16xf32>, vector<2x16x16xf32>, vector<2x16x16xf32>, vector<2x16x16xf32> -> vector<8x16x16xf32>
    %62 = arith.truncf %61 : vector<8x16x16xf32> to vector<8x16x16xbf16>
    %63 = vector.extract_strided_slice %42 {offsets = [0, 128], sizes = [32, 16], strides = [1, 1]} : vector<32x192xf32> to vector<32x16xf32>
    %64 = vector.shape_cast %63 : vector<32x16xf32> to vector<2x16x16xf32>
    %65 = vector.extract_strided_slice %42 {offsets = [0, 144], sizes = [32, 16], strides = [1, 1]} : vector<32x192xf32> to vector<32x16xf32>
    %66 = vector.shape_cast %65 : vector<32x16xf32> to vector<2x16x16xf32>
    %67 = vector.extract_strided_slice %42 {offsets = [0, 160], sizes = [32, 16], strides = [1, 1]} : vector<32x192xf32> to vector<32x16xf32>
    %68 = vector.shape_cast %67 : vector<32x16xf32> to vector<2x16x16xf32>
    %69 = vector.extract_strided_slice %42 {offsets = [0, 176], sizes = [32, 16], strides = [1, 1]} : vector<32x192xf32> to vector<32x16xf32>
    %70 = vector.shape_cast %69 : vector<32x16xf32> to vector<2x16x16xf32>
    %71 = tpu.concatenate %64, %66, %68, %70 in 0 : vector<2x16x16xf32>, vector<2x16x16xf32>, vector<2x16x16xf32>, vector<2x16x16xf32> -> vector<8x16x16xf32>
    %72 = arith.truncf %71 : vector<8x16x16xf32> to vector<8x16x16xbf16>
    "tpu.trace_start"() <{level = 10 : i32, message = "btd,bsd->bts"}> : () -> ()
    %cst_22 = arith.constant dense<0.000000e+00> : vector<8x16x16xf32>
    %73 = tpu.matmul %52, %62, %cst_22 {dimension_numbers = #tpu.dot_dimension_numbers<[2], [2], [1], [1], [0, 0, 0, 1, 1, 1], [0], [0]>} : vector<8x16x16xbf16>, vector<8x16x16xbf16>, vector<8x16x16xf32> -> vector<8x16x16xf32>
    "tpu.trace_stop"() : () -> ()
    %cst_23 = arith.constant 2.500000e-01 : f32
    %74 = vector.broadcast %cst_23 : f32 to vector<8x16x16xf32>
    %75 = arith.mulf %73, %74 : vector<8x16x16xf32>
    %76 = vector.shape_cast %5 : vector<16x16xf32> to vector<1x16x16xf32>
    %77 = vector.broadcast %76 : vector<1x16x16xf32> to vector<8x16x16xf32>
    %78 = arith.addf %75, %77 : vector<8x16x16xf32>
    %cst_24 = arith.constant dense<0xFF800000> : vector<8x16xf32>
    %79 = vector.multi_reduction <maximumf>, %78, %cst_24 [2] : vector<8x16x16xf32> to vector<8x16xf32>
    %80 = vector.shape_cast %79 : vector<8x16xf32> to vector<8x16x1xf32>
    %81 = vector.broadcast %80 : vector<8x16x1xf32> to vector<8x16x16xf32>
    %82 = arith.subf %78, %81 : vector<8x16x16xf32>
    %83 = math.exp %82 : vector<8x16x16xf32>
    %cst_25 = arith.constant dense<0.000000e+00> : vector<8x16xf32>
    %84 = vector.multi_reduction <add>, %83, %cst_25 [2] : vector<8x16x16xf32> to vector<8x16xf32>
    %85 = vector.shape_cast %84 : vector<8x16xf32> to vector<8x16x1xf32>
    %86 = tpu.reciprocal %85 {approx = true} : vector<8x16x1xf32> -> vector<8x16x1xf32>
    %87 = vector.broadcast %86 : vector<8x16x1xf32> to vector<8x16x16xf32>
    %88 = arith.mulf %83, %87 : vector<8x16x16xf32>
    %89 = arith.truncf %88 : vector<8x16x16xf32> to vector<8x16x16xbf16>
    "tpu.trace_start"() <{level = 10 : i32, message = "bts,bsd->btd"}> : () -> ()
    %cst_26 = arith.constant dense<0.000000e+00> : vector<8x16x16xf32>
    %90 = tpu.matmul %89, %72, %cst_26 {dimension_numbers = #tpu.dot_dimension_numbers<[2], [1], [1], [2], [0, 0, 0, 1, 1, 2], [0], [0]>} : vector<8x16x16xbf16>, vector<8x16x16xbf16>, vector<8x16x16xf32> -> vector<8x16x16xf32>
    "tpu.trace_stop"() : () -> ()
    %91 = vector.extract_strided_slice %90 {offsets = [0, 0, 0], sizes = [2, 16, 16], strides = [1, 1, 1]} : vector<8x16x16xf32> to vector<2x16x16xf32>
    %92 = vector.shape_cast %91 : vector<2x16x16xf32> to vector<32x16xf32>
    %93 = vector.extract_strided_slice %90 {offsets = [2, 0, 0], sizes = [2, 16, 16], strides = [1, 1, 1]} : vector<8x16x16xf32> to vector<2x16x16xf32>
    %94 = vector.shape_cast %93 : vector<2x16x16xf32> to vector<32x16xf32>
    %95 = vector.extract_strided_slice %90 {offsets = [4, 0, 0], sizes = [2, 16, 16], strides = [1, 1, 1]} : vector<8x16x16xf32> to vector<2x16x16xf32>
    %96 = vector.shape_cast %95 : vector<2x16x16xf32> to vector<32x16xf32>
    %97 = vector.extract_strided_slice %90 {offsets = [6, 0, 0], sizes = [2, 16, 16], strides = [1, 1, 1]} : vector<8x16x16xf32> to vector<2x16x16xf32>
    %98 = vector.shape_cast %97 : vector<2x16x16xf32> to vector<32x16xf32>
    %99 = tpu.concatenate %92, %94, %96, %98 in 1 : vector<32x16xf32>, vector<32x16xf32>, vector<32x16xf32>, vector<32x16xf32> -> vector<32x64xf32>
    %c0_27 = arith.constant 0 : index
    %c0_28 = arith.constant 0 : index
    %c0_29 = arith.constant 0 : index
    %100 = vector.load %arg6[%c0_27, %c0_28, %c0_29] : memref<2x64x64xbf16, #tpu.memory_space<vmem>>, vector<1x64x64xbf16>
    %101 = vector.shape_cast %100 : vector<1x64x64xbf16> to vector<64x64xbf16>
    %102 = arith.truncf %99 : vector<32x64xf32> to vector<32x64xbf16>
    %cst_30 = arith.constant dense<0.000000e+00> : vector<32x64xf32>
    %103 = tpu.matmul %102, %101, %cst_30 {dimension_numbers = #tpu.dot_dimension_numbers<[1], [0], [0], [1], [0, 0, 1, 1], [], []>} : vector<32x64xbf16>, vector<64x64xbf16>, vector<32x64xf32> -> vector<32x64xf32>
    %104 = arith.addf %8, %103 : vector<32x64xf32>
    %c0_31 = arith.constant 0 : index
    %c0_32 = arith.constant 0 : index
    %c0_33 = arith.constant 0 : index
    %105 = vector.load %arg7[%c0_31, %c0_32, %c0_33] : memref<2x1x64xf32, #tpu.memory_space<vmem>>, vector<1x1x64xf32>
    %106 = vector.shape_cast %105 : vector<1x1x64xf32> to vector<1x64xf32>
    %107 = vector.broadcast %106 : vector<1x64xf32> to vector<32x64xf32>
    %108 = arith.addf %104, %107 : vector<32x64xf32>
    %c0_34 = arith.constant 0 : index
    %c0_35 = arith.constant 0 : index
    %c0_36 = arith.constant 0 : index
    %109 = vector.load %arg8[%c0_34, %c0_35, %c0_36] : memref<2x1x64xf32, #tpu.memory_space<vmem>>, vector<1x1x64xf32>
    %110 = vector.shape_cast %109 : vector<1x1x64xf32> to vector<1x64xf32>
    %c0_37 = arith.constant 0 : index
    %c0_38 = arith.constant 0 : index
    %c0_39 = arith.constant 0 : index
    %111 = vector.load %arg9[%c0_37, %c0_38, %c0_39] : memref<2x1x64xf32, #tpu.memory_space<vmem>>, vector<1x1x64xf32>
    %112 = vector.shape_cast %111 : vector<1x1x64xf32> to vector<1x64xf32>
    %cst_40 = arith.constant dense<0.000000e+00> : vector<32xf32>
    %113 = vector.multi_reduction <add>, %108, %cst_40 [1] : vector<32x64xf32> to vector<32xf32>
    %114 = vector.shape_cast %113 : vector<32xf32> to vector<32x1xf32>
    %cst_41 = arith.constant 6.400000e+01 : f32
    %115 = vector.broadcast %cst_41 : f32 to vector<32x1xf32>
    %116 = arith.divf %114, %115 : vector<32x1xf32>
    %117 = vector.broadcast %116 : vector<32x1xf32> to vector<32x64xf32>
    %118 = arith.subf %108, %117 : vector<32x64xf32>
    %119 = arith.mulf %118, %118 : vector<32x64xf32>
    %cst_42 = arith.constant dense<0.000000e+00> : vector<32xf32>
    %120 = vector.multi_reduction <add>, %119, %cst_42 [1] : vector<32x64xf32> to vector<32xf32>
    %121 = vector.shape_cast %120 : vector<32xf32> to vector<32x1xf32>
    %cst_43 = arith.constant 6.400000e+01 : f32
    %122 = vector.broadcast %cst_43 : f32 to vector<32x1xf32>
    %123 = arith.divf %121, %122 : vector<32x1xf32>
    %124 = vector.broadcast %116 : vector<32x1xf32> to vector<32x64xf32>
    %125 = arith.subf %108, %124 : vector<32x64xf32>
    %cst_44 = arith.constant 9.99999974E-6 : f32
    %126 = vector.broadcast %cst_44 : f32 to vector<32x1xf32>
    %127 = arith.addf %123, %126 : vector<32x1xf32>
    %128 = math.rsqrt %127 : vector<32x1xf32>
    %129 = vector.broadcast %128 : vector<32x1xf32> to vector<32x64xf32>
    %130 = arith.mulf %125, %129 : vector<32x64xf32>
    %131 = vector.broadcast %110 : vector<1x64xf32> to vector<32x64xf32>
    %132 = arith.mulf %130, %131 : vector<32x64xf32>
    %133 = vector.broadcast %112 : vector<1x64xf32> to vector<32x64xf32>
    %134 = arith.addf %132, %133 : vector<32x64xf32>
    %c0_45 = arith.constant 0 : index
    %c0_46 = arith.constant 0 : index
    %c0_47 = arith.constant 0 : index
    %135 = vector.load %arg10[%c0_45, %c0_46, %c0_47] : memref<2x64x256xbf16, #tpu.memory_space<vmem>>, vector<1x64x256xbf16>
    %136 = vector.shape_cast %135 : vector<1x64x256xbf16> to vector<64x256xbf16>
    %137 = arith.truncf %134 : vector<32x64xf32> to vector<32x64xbf16>
    %cst_48 = arith.constant dense<0.000000e+00> : vector<32x256xf32>
    %138 = tpu.matmul %137, %136, %cst_48 {dimension_numbers = #tpu.dot_dimension_numbers<[1], [0], [0], [1], [0, 0, 1, 1], [], []>} : vector<32x64xbf16>, vector<64x256xbf16>, vector<32x256xf32> -> vector<32x256xf32>
    %c0_49 = arith.constant 0 : index
    %c0_50 = arith.constant 0 : index
    %c0_51 = arith.constant 0 : index
    %139 = vector.load %arg11[%c0_49, %c0_50, %c0_51] : memref<2x1x256xf32, #tpu.memory_space<vmem>>, vector<1x1x256xf32>
    %140 = vector.shape_cast %139 : vector<1x1x256xf32> to vector<1x256xf32>
    %141 = vector.broadcast %140 : vector<1x256xf32> to vector<32x256xf32>
    %142 = arith.addf %138, %141 : vector<32x256xf32>
    %143 = arith.mulf %142, %142 : vector<32x256xf32>
    %144 = arith.mulf %142, %143 : vector<32x256xf32>
    %cst_52 = arith.constant 4.471500e-02 : f32
    %145 = vector.broadcast %cst_52 : f32 to vector<32x256xf32>
    %146 = arith.mulf %145, %144 : vector<32x256xf32>
    %147 = arith.addf %142, %146 : vector<32x256xf32>
    %cst_53 = arith.constant 0.797884583 : f32
    %148 = vector.broadcast %cst_53 : f32 to vector<32x256xf32>
    %149 = arith.mulf %148, %147 : vector<32x256xf32>
    %150 = math.tanh %149 : vector<32x256xf32>
    %cst_54 = arith.constant 1.000000e+00 : f32
    %151 = vector.broadcast %cst_54 : f32 to vector<32x256xf32>
    %152 = arith.addf %151, %150 : vector<32x256xf32>
    %cst_55 = arith.constant 5.000000e-01 : f32
    %153 = vector.broadcast %cst_55 : f32 to vector<32x256xf32>
    %154 = arith.mulf %153, %152 : vector<32x256xf32>
    %155 = arith.mulf %142, %154 : vector<32x256xf32>
    %c0_56 = arith.constant 0 : index
    %c0_57 = arith.constant 0 : index
    %c0_58 = arith.constant 0 : index
    %156 = vector.load %arg12[%c0_56, %c0_57, %c0_58] : memref<2x256x64xbf16, #tpu.memory_space<vmem>>, vector<1x256x64xbf16>
    %157 = vector.shape_cast %156 : vector<1x256x64xbf16> to vector<256x64xbf16>
    %158 = arith.truncf %155 : vector<32x256xf32> to vector<32x256xbf16>
    %cst_59 = arith.constant dense<0.000000e+00> : vector<32x64xf32>
    %159 = tpu.matmul %158, %157, %cst_59 {dimension_numbers = #tpu.dot_dimension_numbers<[1], [0], [0], [1], [0, 0, 1, 1], [], []>} : vector<32x256xbf16>, vector<256x64xbf16>, vector<32x64xf32> -> vector<32x64xf32>
    %160 = arith.addf %108, %159 : vector<32x64xf32>
    %c0_60 = arith.constant 0 : index
    %c0_61 = arith.constant 0 : index
    %c0_62 = arith.constant 0 : index
    %161 = vector.load %arg13[%c0_60, %c0_61, %c0_62] : memref<2x1x64xf32, #tpu.memory_space<vmem>>, vector<1x1x64xf32>
    %162 = vector.shape_cast %161 : vector<1x1x64xf32> to vector<1x64xf32>
    %163 = vector.broadcast %162 : vector<1x64xf32> to vector<32x64xf32>
    %164 = arith.addf %160, %163 : vector<32x64xf32>
    %c1 = arith.constant 1 : index
    %c0_63 = arith.constant 0 : index
    %c0_64 = arith.constant 0 : index
    %165 = vector.load %arg2[%c1, %c0_63, %c0_64] : memref<2x1x64xf32, #tpu.memory_space<vmem>>, vector<1x1x64xf32>
    %166 = vector.shape_cast %165 : vector<1x1x64xf32> to vector<1x64xf32>
    %c1_65 = arith.constant 1 : index
    %c0_66 = arith.constant 0 : index
    %c0_67 = arith.constant 0 : index
    %167 = vector.load %arg3[%c1_65, %c0_66, %c0_67] : memref<2x1x64xf32, #tpu.memory_space<vmem>>, vector<1x1x64xf32>
    %168 = vector.shape_cast %167 : vector<1x1x64xf32> to vector<1x64xf32>
    %cst_68 = arith.constant dense<0.000000e+00> : vector<32xf32>
    %169 = vector.multi_reduction <add>, %164, %cst_68 [1] : vector<32x64xf32> to vector<32xf32>
    %170 = vector.shape_cast %169 : vector<32xf32> to vector<32x1xf32>
    %cst_69 = arith.constant 6.400000e+01 : f32
    %171 = vector.broadcast %cst_69 : f32 to vector<32x1xf32>
    %172 = arith.divf %170, %171 : vector<32x1xf32>
    %173 = vector.broadcast %172 : vector<32x1xf32> to vector<32x64xf32>
    %174 = arith.subf %164, %173 : vector<32x64xf32>
    %175 = arith.mulf %174, %174 : vector<32x64xf32>
    %cst_70 = arith.constant dense<0.000000e+00> : vector<32xf32>
    %176 = vector.multi_reduction <add>, %175, %cst_70 [1] : vector<32x64xf32> to vector<32xf32>
    %177 = vector.shape_cast %176 : vector<32xf32> to vector<32x1xf32>
    %cst_71 = arith.constant 6.400000e+01 : f32
    %178 = vector.broadcast %cst_71 : f32 to vector<32x1xf32>
    %179 = arith.divf %177, %178 : vector<32x1xf32>
    %180 = vector.broadcast %172 : vector<32x1xf32> to vector<32x64xf32>
    %181 = arith.subf %164, %180 : vector<32x64xf32>
    %cst_72 = arith.constant 9.99999974E-6 : f32
    %182 = vector.broadcast %cst_72 : f32 to vector<32x1xf32>
    %183 = arith.addf %179, %182 : vector<32x1xf32>
    %184 = math.rsqrt %183 : vector<32x1xf32>
    %185 = vector.broadcast %184 : vector<32x1xf32> to vector<32x64xf32>
    %186 = arith.mulf %181, %185 : vector<32x64xf32>
    %187 = vector.broadcast %166 : vector<1x64xf32> to vector<32x64xf32>
    %188 = arith.mulf %186, %187 : vector<32x64xf32>
    %189 = vector.broadcast %168 : vector<1x64xf32> to vector<32x64xf32>
    %190 = arith.addf %188, %189 : vector<32x64xf32>
    %c1_73 = arith.constant 1 : index
    %c0_74 = arith.constant 0 : index
    %c0_75 = arith.constant 0 : index
    %191 = vector.load %arg4[%c1_73, %c0_74, %c0_75] : memref<2x64x192xbf16, #tpu.memory_space<vmem>>, vector<1x64x192xbf16>
    %192 = vector.shape_cast %191 : vector<1x64x192xbf16> to vector<64x192xbf16>
    %193 = arith.truncf %190 : vector<32x64xf32> to vector<32x64xbf16>
    %cst_76 = arith.constant dense<0.000000e+00> : vector<32x192xf32>
    %194 = tpu.matmul %193, %192, %cst_76 {dimension_numbers = #tpu.dot_dimension_numbers<[1], [0], [0], [1], [0, 0, 1, 1], [], []>} : vector<32x64xbf16>, vector<64x192xbf16>, vector<32x192xf32> -> vector<32x192xf32>
    %c1_77 = arith.constant 1 : index
    %c0_78 = arith.constant 0 : index
    %c0_79 = arith.constant 0 : index
    %195 = vector.load %arg5[%c1_77, %c0_78, %c0_79] : memref<2x1x192xf32, #tpu.memory_space<vmem>>, vector<1x1x192xf32>
    %196 = vector.shape_cast %195 : vector<1x1x192xf32> to vector<1x192xf32>
    %197 = vector.broadcast %196 : vector<1x192xf32> to vector<32x192xf32>
    %198 = arith.addf %194, %197 : vector<32x192xf32>
    %199 = vector.extract_strided_slice %198 {offsets = [0, 0], sizes = [32, 16], strides = [1, 1]} : vector<32x192xf32> to vector<32x16xf32>
    %200 = vector.shape_cast %199 : vector<32x16xf32> to vector<2x16x16xf32>
    %201 = vector.extract_strided_slice %198 {offsets = [0, 16], sizes = [32, 16], strides = [1, 1]} : vector<32x192xf32> to vector<32x16xf32>
    %202 = vector.shape_cast %201 : vector<32x16xf32> to vector<2x16x16xf32>
    %203 = vector.extract_strided_slice %198 {offsets = [0, 32], sizes = [32, 16], strides = [1, 1]} : vector<32x192xf32> to vector<32x16xf32>
    %204 = vector.shape_cast %203 : vector<32x16xf32> to vector<2x16x16xf32>
    %205 = vector.extract_strided_slice %198 {offsets = [0, 48], sizes = [32, 16], strides = [1, 1]} : vector<32x192xf32> to vector<32x16xf32>
    %206 = vector.shape_cast %205 : vector<32x16xf32> to vector<2x16x16xf32>
    %207 = tpu.concatenate %200, %202, %204, %206 in 0 : vector<2x16x16xf32>, vector<2x16x16xf32>, vector<2x16x16xf32>, vector<2x16x16xf32> -> vector<8x16x16xf32>
    %208 = arith.truncf %207 : vector<8x16x16xf32> to vector<8x16x16xbf16>
    %209 = vector.extract_strided_slice %198 {offsets = [0, 64], sizes = [32, 16], strides = [1, 1]} : vector<32x192xf32> to vector<32x16xf32>
    %210 = vector.shape_cast %209 : vector<32x16xf32> to vector<2x16x16xf32>
    %211 = vector.extract_strided_slice %198 {offsets = [0, 80], sizes = [32, 16], strides = [1, 1]} : vector<32x192xf32> to vector<32x16xf32>
    %212 = vector.shape_cast %211 : vector<32x16xf32> to vector<2x16x16xf32>
    %213 = vector.extract_strided_slice %198 {offsets = [0, 96], sizes = [32, 16], strides = [1, 1]} : vector<32x192xf32> to vector<32x16xf32>
    %214 = vector.shape_cast %213 : vector<32x16xf32> to vector<2x16x16xf32>
    %215 = vector.extract_strided_slice %198 {offsets = [0, 112], sizes = [32, 16], strides = [1, 1]} : vector<32x192xf32> to vector<32x16xf32>
    %216 = vector.shape_cast %215 : vector<32x16xf32> to vector<2x16x16xf32>
    %217 = tpu.concatenate %210, %212, %214, %216 in 0 : vector<2x16x16xf32>, vector<2x16x16xf32>, vector<2x16x16xf32>, vector<2x16x16xf32> -> vector<8x16x16xf32>
    %218 = arith.truncf %217 : vector<8x16x16xf32> to vector<8x16x16xbf16>
    %219 = vector.extract_strided_slice %198 {offsets = [0, 128], sizes = [32, 16], strides = [1, 1]} : vector<32x192xf32> to vector<32x16xf32>
    %220 = vector.shape_cast %219 : vector<32x16xf32> to vector<2x16x16xf32>
    %221 = vector.extract_strided_slice %198 {offsets = [0, 144], sizes = [32, 16], strides = [1, 1]} : vector<32x192xf32> to vector<32x16xf32>
    %222 = vector.shape_cast %221 : vector<32x16xf32> to vector<2x16x16xf32>
    %223 = vector.extract_strided_slice %198 {offsets = [0, 160], sizes = [32, 16], strides = [1, 1]} : vector<32x192xf32> to vector<32x16xf32>
    %224 = vector.shape_cast %223 : vector<32x16xf32> to vector<2x16x16xf32>
    %225 = vector.extract_strided_slice %198 {offsets = [0, 176], sizes = [32, 16], strides = [1, 1]} : vector<32x192xf32> to vector<32x16xf32>
    %226 = vector.shape_cast %225 : vector<32x16xf32> to vector<2x16x16xf32>
    %227 = tpu.concatenate %220, %222, %224, %226 in 0 : vector<2x16x16xf32>, vector<2x16x16xf32>, vector<2x16x16xf32>, vector<2x16x16xf32> -> vector<8x16x16xf32>
    %228 = arith.truncf %227 : vector<8x16x16xf32> to vector<8x16x16xbf16>
    "tpu.trace_start"() <{level = 10 : i32, message = "btd,bsd->bts"}> : () -> ()
    %cst_80 = arith.constant dense<0.000000e+00> : vector<8x16x16xf32>
    %229 = tpu.matmul %208, %218, %cst_80 {dimension_numbers = #tpu.dot_dimension_numbers<[2], [2], [1], [1], [0, 0, 0, 1, 1, 1], [0], [0]>} : vector<8x16x16xbf16>, vector<8x16x16xbf16>, vector<8x16x16xf32> -> vector<8x16x16xf32>
    "tpu.trace_stop"() : () -> ()
    %cst_81 = arith.constant 2.500000e-01 : f32
    %230 = vector.broadcast %cst_81 : f32 to vector<8x16x16xf32>
    %231 = arith.mulf %229, %230 : vector<8x16x16xf32>
    %232 = vector.shape_cast %5 : vector<16x16xf32> to vector<1x16x16xf32>
    %233 = vector.broadcast %232 : vector<1x16x16xf32> to vector<8x16x16xf32>
    %234 = arith.addf %231, %233 : vector<8x16x16xf32>
    %cst_82 = arith.constant dense<0xFF800000> : vector<8x16xf32>
    %235 = vector.multi_reduction <maximumf>, %234, %cst_82 [2] : vector<8x16x16xf32> to vector<8x16xf32>
    %236 = vector.shape_cast %235 : vector<8x16xf32> to vector<8x16x1xf32>
    %237 = vector.broadcast %236 : vector<8x16x1xf32> to vector<8x16x16xf32>
    %238 = arith.subf %234, %237 : vector<8x16x16xf32>
    %239 = math.exp %238 : vector<8x16x16xf32>
    %cst_83 = arith.constant dense<0.000000e+00> : vector<8x16xf32>
    %240 = vector.multi_reduction <add>, %239, %cst_83 [2] : vector<8x16x16xf32> to vector<8x16xf32>
    %241 = vector.shape_cast %240 : vector<8x16xf32> to vector<8x16x1xf32>
    %242 = tpu.reciprocal %241 {approx = true} : vector<8x16x1xf32> -> vector<8x16x1xf32>
    %243 = vector.broadcast %242 : vector<8x16x1xf32> to vector<8x16x16xf32>
    %244 = arith.mulf %239, %243 : vector<8x16x16xf32>
    %245 = arith.truncf %244 : vector<8x16x16xf32> to vector<8x16x16xbf16>
    "tpu.trace_start"() <{level = 10 : i32, message = "bts,bsd->btd"}> : () -> ()
    %cst_84 = arith.constant dense<0.000000e+00> : vector<8x16x16xf32>
    %246 = tpu.matmul %245, %228, %cst_84 {dimension_numbers = #tpu.dot_dimension_numbers<[2], [1], [1], [2], [0, 0, 0, 1, 1, 2], [0], [0]>} : vector<8x16x16xbf16>, vector<8x16x16xbf16>, vector<8x16x16xf32> -> vector<8x16x16xf32>
    "tpu.trace_stop"() : () -> ()
    %247 = vector.extract_strided_slice %246 {offsets = [0, 0, 0], sizes = [2, 16, 16], strides = [1, 1, 1]} : vector<8x16x16xf32> to vector<2x16x16xf32>
    %248 = vector.shape_cast %247 : vector<2x16x16xf32> to vector<32x16xf32>
    %249 = vector.extract_strided_slice %246 {offsets = [2, 0, 0], sizes = [2, 16, 16], strides = [1, 1, 1]} : vector<8x16x16xf32> to vector<2x16x16xf32>
    %250 = vector.shape_cast %249 : vector<2x16x16xf32> to vector<32x16xf32>
    %251 = vector.extract_strided_slice %246 {offsets = [4, 0, 0], sizes = [2, 16, 16], strides = [1, 1, 1]} : vector<8x16x16xf32> to vector<2x16x16xf32>
    %252 = vector.shape_cast %251 : vector<2x16x16xf32> to vector<32x16xf32>
    %253 = vector.extract_strided_slice %246 {offsets = [6, 0, 0], sizes = [2, 16, 16], strides = [1, 1, 1]} : vector<8x16x16xf32> to vector<2x16x16xf32>
    %254 = vector.shape_cast %253 : vector<2x16x16xf32> to vector<32x16xf32>
    %255 = tpu.concatenate %248, %250, %252, %254 in 1 : vector<32x16xf32>, vector<32x16xf32>, vector<32x16xf32>, vector<32x16xf32> -> vector<32x64xf32>
    %c1_85 = arith.constant 1 : index
    %c0_86 = arith.constant 0 : index
    %c0_87 = arith.constant 0 : index
    %256 = vector.load %arg6[%c1_85, %c0_86, %c0_87] : memref<2x64x64xbf16, #tpu.memory_space<vmem>>, vector<1x64x64xbf16>
    %257 = vector.shape_cast %256 : vector<1x64x64xbf16> to vector<64x64xbf16>
    %258 = arith.truncf %255 : vector<32x64xf32> to vector<32x64xbf16>
    %cst_88 = arith.constant dense<0.000000e+00> : vector<32x64xf32>
    %259 = tpu.matmul %258, %257, %cst_88 {dimension_numbers = #tpu.dot_dimension_numbers<[1], [0], [0], [1], [0, 0, 1, 1], [], []>} : vector<32x64xbf16>, vector<64x64xbf16>, vector<32x64xf32> -> vector<32x64xf32>
    %260 = arith.addf %164, %259 : vector<32x64xf32>
    %c1_89 = arith.constant 1 : index
    %c0_90 = arith.constant 0 : index
    %c0_91 = arith.constant 0 : index
    %261 = vector.load %arg7[%c1_89, %c0_90, %c0_91] : memref<2x1x64xf32, #tpu.memory_space<vmem>>, vector<1x1x64xf32>
    %262 = vector.shape_cast %261 : vector<1x1x64xf32> to vector<1x64xf32>
    %263 = vector.broadcast %262 : vector<1x64xf32> to vector<32x64xf32>
    %264 = arith.addf %260, %263 : vector<32x64xf32>
    %c1_92 = arith.constant 1 : index
    %c0_93 = arith.constant 0 : index
    %c0_94 = arith.constant 0 : index
    %265 = vector.load %arg8[%c1_92, %c0_93, %c0_94] : memref<2x1x64xf32, #tpu.memory_space<vmem>>, vector<1x1x64xf32>
    %266 = vector.shape_cast %265 : vector<1x1x64xf32> to vector<1x64xf32>
    %c1_95 = arith.constant 1 : index
    %c0_96 = arith.constant 0 : index
    %c0_97 = arith.constant 0 : index
    %267 = vector.load %arg9[%c1_95, %c0_96, %c0_97] : memref<2x1x64xf32, #tpu.memory_space<vmem>>, vector<1x1x64xf32>
    %268 = vector.shape_cast %267 : vector<1x1x64xf32> to vector<1x64xf32>
    %cst_98 = arith.constant dense<0.000000e+00> : vector<32xf32>
    %269 = vector.multi_reduction <add>, %264, %cst_98 [1] : vector<32x64xf32> to vector<32xf32>
    %270 = vector.shape_cast %269 : vector<32xf32> to vector<32x1xf32>
    %cst_99 = arith.constant 6.400000e+01 : f32
    %271 = vector.broadcast %cst_99 : f32 to vector<32x1xf32>
    %272 = arith.divf %270, %271 : vector<32x1xf32>
    %273 = vector.broadcast %272 : vector<32x1xf32> to vector<32x64xf32>
    %274 = arith.subf %264, %273 : vector<32x64xf32>
    %275 = arith.mulf %274, %274 : vector<32x64xf32>
    %cst_100 = arith.constant dense<0.000000e+00> : vector<32xf32>
    %276 = vector.multi_reduction <add>, %275, %cst_100 [1] : vector<32x64xf32> to vector<32xf32>
    %277 = vector.shape_cast %276 : vector<32xf32> to vector<32x1xf32>
    %cst_101 = arith.constant 6.400000e+01 : f32
    %278 = vector.broadcast %cst_101 : f32 to vector<32x1xf32>
    %279 = arith.divf %277, %278 : vector<32x1xf32>
    %280 = vector.broadcast %272 : vector<32x1xf32> to vector<32x64xf32>
    %281 = arith.subf %264, %280 : vector<32x64xf32>
    %cst_102 = arith.constant 9.99999974E-6 : f32
    %282 = vector.broadcast %cst_102 : f32 to vector<32x1xf32>
    %283 = arith.addf %279, %282 : vector<32x1xf32>
    %284 = math.rsqrt %283 : vector<32x1xf32>
    %285 = vector.broadcast %284 : vector<32x1xf32> to vector<32x64xf32>
    %286 = arith.mulf %281, %285 : vector<32x64xf32>
    %287 = vector.broadcast %266 : vector<1x64xf32> to vector<32x64xf32>
    %288 = arith.mulf %286, %287 : vector<32x64xf32>
    %289 = vector.broadcast %268 : vector<1x64xf32> to vector<32x64xf32>
    %290 = arith.addf %288, %289 : vector<32x64xf32>
    %c1_103 = arith.constant 1 : index
    %c0_104 = arith.constant 0 : index
    %c0_105 = arith.constant 0 : index
    %291 = vector.load %arg10[%c1_103, %c0_104, %c0_105] : memref<2x64x256xbf16, #tpu.memory_space<vmem>>, vector<1x64x256xbf16>
    %292 = vector.shape_cast %291 : vector<1x64x256xbf16> to vector<64x256xbf16>
    %293 = arith.truncf %290 : vector<32x64xf32> to vector<32x64xbf16>
    %cst_106 = arith.constant dense<0.000000e+00> : vector<32x256xf32>
    %294 = tpu.matmul %293, %292, %cst_106 {dimension_numbers = #tpu.dot_dimension_numbers<[1], [0], [0], [1], [0, 0, 1, 1], [], []>} : vector<32x64xbf16>, vector<64x256xbf16>, vector<32x256xf32> -> vector<32x256xf32>
    %c1_107 = arith.constant 1 : index
    %c0_108 = arith.constant 0 : index
    %c0_109 = arith.constant 0 : index
    %295 = vector.load %arg11[%c1_107, %c0_108, %c0_109] : memref<2x1x256xf32, #tpu.memory_space<vmem>>, vector<1x1x256xf32>
    %296 = vector.shape_cast %295 : vector<1x1x256xf32> to vector<1x256xf32>
    %297 = vector.broadcast %296 : vector<1x256xf32> to vector<32x256xf32>
    %298 = arith.addf %294, %297 : vector<32x256xf32>
    %299 = arith.mulf %298, %298 : vector<32x256xf32>
    %300 = arith.mulf %298, %299 : vector<32x256xf32>
    %cst_110 = arith.constant 4.471500e-02 : f32
    %301 = vector.broadcast %cst_110 : f32 to vector<32x256xf32>
    %302 = arith.mulf %301, %300 : vector<32x256xf32>
    %303 = arith.addf %298, %302 : vector<32x256xf32>
    %cst_111 = arith.constant 0.797884583 : f32
    %304 = vector.broadcast %cst_111 : f32 to vector<32x256xf32>
    %305 = arith.mulf %304, %303 : vector<32x256xf32>
    %306 = math.tanh %305 : vector<32x256xf32>
    %cst_112 = arith.constant 1.000000e+00 : f32
    %307 = vector.broadcast %cst_112 : f32 to vector<32x256xf32>
    %308 = arith.addf %307, %306 : vector<32x256xf32>
    %cst_113 = arith.constant 5.000000e-01 : f32
    %309 = vector.broadcast %cst_113 : f32 to vector<32x256xf32>
    %310 = arith.mulf %309, %308 : vector<32x256xf32>
    %311 = arith.mulf %298, %310 : vector<32x256xf32>
    %c1_114 = arith.constant 1 : index
    %c0_115 = arith.constant 0 : index
    %c0_116 = arith.constant 0 : index
    %312 = vector.load %arg12[%c1_114, %c0_115, %c0_116] : memref<2x256x64xbf16, #tpu.memory_space<vmem>>, vector<1x256x64xbf16>
    %313 = vector.shape_cast %312 : vector<1x256x64xbf16> to vector<256x64xbf16>
    %314 = arith.truncf %311 : vector<32x256xf32> to vector<32x256xbf16>
    %cst_117 = arith.constant dense<0.000000e+00> : vector<32x64xf32>
    %315 = tpu.matmul %314, %313, %cst_117 {dimension_numbers = #tpu.dot_dimension_numbers<[1], [0], [0], [1], [0, 0, 1, 1], [], []>} : vector<32x256xbf16>, vector<256x64xbf16>, vector<32x64xf32> -> vector<32x64xf32>
    %316 = arith.addf %264, %315 : vector<32x64xf32>
    %c1_118 = arith.constant 1 : index
    %c0_119 = arith.constant 0 : index
    %c0_120 = arith.constant 0 : index
    %317 = vector.load %arg13[%c1_118, %c0_119, %c0_120] : memref<2x1x64xf32, #tpu.memory_space<vmem>>, vector<1x1x64xf32>
    %318 = vector.shape_cast %317 : vector<1x1x64xf32> to vector<1x64xf32>
    %319 = vector.broadcast %318 : vector<1x64xf32> to vector<32x64xf32>
    %320 = arith.addf %316, %319 : vector<32x64xf32>
    %c0_121 = arith.constant 0 : index
    %c0_122 = arith.constant 0 : index
    %321 = vector.load %arg14[%c0_121, %c0_122] : memref<1x64xf32, #tpu.memory_space<vmem>>, vector<1x64xf32>
    %c0_123 = arith.constant 0 : index
    %c0_124 = arith.constant 0 : index
    %322 = vector.load %arg15[%c0_123, %c0_124] : memref<1x64xf32, #tpu.memory_space<vmem>>, vector<1x64xf32>
    %cst_125 = arith.constant dense<0.000000e+00> : vector<32xf32>
    %323 = vector.multi_reduction <add>, %320, %cst_125 [1] : vector<32x64xf32> to vector<32xf32>
    %324 = vector.shape_cast %323 : vector<32xf32> to vector<32x1xf32>
    %cst_126 = arith.constant 6.400000e+01 : f32
    %325 = vector.broadcast %cst_126 : f32 to vector<32x1xf32>
    %326 = arith.divf %324, %325 : vector<32x1xf32>
    %327 = vector.broadcast %326 : vector<32x1xf32> to vector<32x64xf32>
    %328 = arith.subf %320, %327 : vector<32x64xf32>
    %329 = arith.mulf %328, %328 : vector<32x64xf32>
    %cst_127 = arith.constant dense<0.000000e+00> : vector<32xf32>
    %330 = vector.multi_reduction <add>, %329, %cst_127 [1] : vector<32x64xf32> to vector<32xf32>
    %331 = vector.shape_cast %330 : vector<32xf32> to vector<32x1xf32>
    %cst_128 = arith.constant 6.400000e+01 : f32
    %332 = vector.broadcast %cst_128 : f32 to vector<32x1xf32>
    %333 = arith.divf %331, %332 : vector<32x1xf32>
    %334 = vector.broadcast %326 : vector<32x1xf32> to vector<32x64xf32>
    %335 = arith.subf %320, %334 : vector<32x64xf32>
    %cst_129 = arith.constant 9.99999974E-6 : f32
    %336 = vector.broadcast %cst_129 : f32 to vector<32x1xf32>
    %337 = arith.addf %333, %336 : vector<32x1xf32>
    %338 = math.rsqrt %337 : vector<32x1xf32>
    %339 = vector.broadcast %338 : vector<32x1xf32> to vector<32x64xf32>
    %340 = arith.mulf %335, %339 : vector<32x64xf32>
    %341 = vector.broadcast %321 : vector<1x64xf32> to vector<32x64xf32>
    %342 = arith.mulf %340, %341 : vector<32x64xf32>
    %343 = vector.broadcast %322 : vector<1x64xf32> to vector<32x64xf32>
    %344 = arith.addf %342, %343 : vector<32x64xf32>
    %c0_130 = arith.constant 0 : index
    %c0_131 = arith.constant 0 : index
    %345 = vector.load %arg20[%c0_130, %c0_131] : memref<32x64xf32, #tpu.memory_space<vmem>>, vector<32x64xf32>
    tpu.vector_store %arg20[%c0_130, %c0_131], %344 {strides = array<i32>} : memref<32x64xf32, #tpu.memory_space<vmem>>, vector<32x64xf32>,
    %c0_132 = arith.constant 0 : index
    %c0_133 = arith.constant 0 : index
    %346 = vector.load %arg16[%c0_132, %c0_133] : memref<64x320xbf16, #tpu.memory_space<vmem>>, vector<64x320xbf16>
    %347 = arith.truncf %344 : vector<32x64xf32> to vector<32x64xbf16>
    %cst_134 = arith.constant dense<0.000000e+00> : vector<32x320xf32>
    %348 = tpu.matmul %347, %346, %cst_134 {dimension_numbers = #tpu.dot_dimension_numbers<[1], [0], [0], [1], [0, 0, 1, 1], [], []>} : vector<32x64xbf16>, vector<64x320xbf16>, vector<32x320xf32> -> vector<32x320xf32>
    %c0_135 = arith.constant 0 : index
    %c0_136 = arith.constant 0 : index
    %349 = vector.load %arg17[%c0_135, %c0_136] : memref<1x320xf32, #tpu.memory_space<vmem>>, vector<1x320xf32>
    %350 = vector.broadcast %349 : vector<1x320xf32> to vector<32x320xf32>
    %351 = arith.addf %348, %350 : vector<32x320xf32>
    %cst_137 = arith.constant 0.000000e+00 : f32
    %352 = vector.broadcast %cst_137 : f32 to vector<32x320xf32>
    %353 = arith.maximumf %351, %352 : vector<32x320xf32>
    %c0_138 = arith.constant 0 : index
    %c0_139 = arith.constant 0 : index
    %354 = vector.load %arg18[%c0_138, %c0_139] : memref<320x128xbf16, #tpu.memory_space<vmem>>, vector<320x128xbf16>
    %355 = arith.truncf %353 : vector<32x320xf32> to vector<32x320xbf16>
    %cst_140 = arith.constant dense<0.000000e+00> : vector<32x128xf32>
    %356 = tpu.matmul %355, %354, %cst_140 {dimension_numbers = #tpu.dot_dimension_numbers<[1], [0], [0], [1], [0, 0, 1, 1], [], []>} : vector<32x320xbf16>, vector<320x128xbf16>, vector<32x128xf32> -> vector<32x128xf32>
    %c0_141 = arith.constant 0 : index
    %c0_142 = arith.constant 0 : index
    %357 = vector.load %arg19[%c0_141, %c0_142] : memref<1x128xf32, #tpu.memory_space<vmem>>, vector<1x128xf32>
    %358 = vector.broadcast %357 : vector<1x128xf32> to vector<32x128xf32>
    %359 = arith.addf %356, %358 : vector<32x128xf32>
    %c0_143 = arith.constant 0 : index
    %c0_144 = arith.constant 0 : index
    %360 = vector.load %arg21[%c0_143, %c0_144] : memref<32x128xf32, #tpu.memory_space<vmem>>, vector<32x128xf32>
    tpu.vector_store %arg21[%c0_143, %c0_144], %359 {strides = array<i32>} : memref<32x128xf32, #tpu.memory_space<vmem>>, vector<32x128xf32>,
    return
  }
}

</mosaic_0001>

<bundles_post_ra>
// kernel: _world_model_forward.1
= control target key start
LH: loop header
LB: loop body
LE: loop exit
PB: predicated region body
PF: predicated region fallthrough
CT: control target
= control target key end

     0   :  { %s7346_s0 = inlined_call_operand.vmem [shape: f32[32,64], index: 0, kind: input, shape index: {}]   ;;  %s7347_s1 = inlined_call_operand.vmem [shape: f32[32,64], index: 1, kind: input, shape index: {}]   ;;  %s7348_s2 = inlined_call_operand.vmem [shape: f32[2,1,64], index: 2, kind: input, shape index: {}]   ;;  %s7349_s3 = inlined_call_operand.vmem [shape: f32[2,1,64], index: 3, kind: input, shape index: {}]   ;;  %s7350_s4 = inlined_call_operand.vmem [shape: bf16[2,64,192], index: 4, kind: input, shape index: {}]   ;;  %s7351_s5 = inlined_call_operand.vmem [shape: f32[2,1,192], index: 5, kind: input, shape index: {}]   ;;  %s7352_s6 = inlined_call_operand.vmem [shape: bf16[2,64,64], index: 6, kind: input, shape index: {}]   ;;  %s7353_s7 = inlined_call_operand.vmem [shape: f32[2,1,64], index: 7, kind: input, shape index: {}]   ;;  %s7354_s8 = inlined_call_operand.hbm [shape: f32[2,1,64], index: 8, kind: input, shape index: {}]   ;;  %s7355_s9 = inlined_call_operand.vmem [shape: f32[2,1,64], index: 9, kind: input, shape index: {}]   ;;  %s7356_s10 = inlined_call_operand.vmem [shape: bf16[2,64,256], index: 10, kind: input, shape index: {}]   ;;  %s7357_s11 = inlined_call_operand.vmem [shape: f32[2,1,256], index: 11, kind: input, shape index: {}]   ;;  %s7358_s12 = inlined_call_operand.vmem [shape: bf16[2,256,64], index: 12, kind: input, shape index: {}]   ;;  %s7359_s13 = inlined_call_operand.vmem [shape: f32[2,1,64], index: 13, kind: input, shape index: {}]   ;;  %s7360_s14 = inlined_call_operand.hbm [shape: f32[1,64], index: 14, kind: input, shape index: {}]   ;;  %s7361_s15 = inlined_call_operand.hbm [shape: f32[1,64], index: 15, kind: input, shape index: {}]   ;;  %s7362_s16 = inlined_call_operand.vmem [shape: bf16[64,320], index: 16, kind: input, shape index: {}]   ;;  %s7363_s17 = inlined_call_operand.vmem [shape: f32[1,320], index: 17, kind: input, shape index: {}]   ;;  %s7364_s18 = inlined_call_operand.vmem [shape: bf16[320,128], index: 18, kind: input, shape index: {}]   ;;  %s7365_s19 = inlined_call_operand.vmem [shape: f32[1,128], index: 19, kind: input, shape index: {}]   ;;  %s7366_s20 = inlined_call_operand.hbm [shape: f32[32,64], index: 20, kind: output, shape index: {0}]   ;;  %s7367_s21 = inlined_call_operand.vmem [shape: f32[32,128], index: 21, kind: output, shape index: {1}]  }
   0x1   :  { %7380 = sst [smem:[#allocation12_spill]] %s7346_s0 }
   0x2   :  { %7381 = sst [smem:[#allocation13_spill]] %s7347_s1 }
   0x3   :  { %7382 = sst [smem:[#allocation14_spill]] %s7348_s2 }
   0x4   :  { %7383 = sst [smem:[#allocation15_spill]] %s7349_s3 }
   0x5   :  { %7384 = sst [smem:[#allocation16_spill]] %s7350_s4 }
   0x6   :  { %7385 = sst [smem:[#allocation17_spill]] %s7351_s5 }
   0x7   :  { %27 = vsyncpa [#allocation3], 0 }
   0x8   :  { %28 = vsyncpa [#allocation6], 0 }
   0x9   :  { %29 = vsyncpa [#allocation4], 0  ;;  %s5776_s2 = smov [#allocation5]   ;;  %s5777_s26 = smov [#allocation2]  }
   0xa   :  { %s74_s25 = sshll.u32 %s5776_s2, 4  ;;  %s51_s27 = sshll.u32 %s5777_s26, 4  ;;  %s75_s25 = int_to_ptr.vmem [resolvable:$true] %s74_s25  ;;  %s5904_s27 = int_to_ptr.vmem [resolvable:$true] %s51_s27 }
   0xb   :  { %s5682_s29 = scalar_lea.hbm %s7360_s14, 16 }
   0xc   :  { %p5683_p0 = scmp.ne.s32.totalorder %s7360_s14, %s5682_s29  ;;  %p5686_p1 = scmp.lt.u32.totalorder %s5682_s29, %s7360_s14 }
   0xe   :  { %p5688_p2 = pnand %p5686_p1, %p5683_p0 }
  0x10   :  { %5691 = shalt.err (!%p5688_p2)
}
  0x11   :  { %s5692_s22 = scalar_lea.vmem %s75_s25, 16  ;;  %s5696_s23 = scalar_lea.vmem %s75_s25, 32 }
  0x12   :  { %p5693_p3 = scmp.ne.s32.totalorder %s75_s25, %s5692_s22  ;;  %p5697_p4 = scmp.lt.s32.totalorder %s75_s25, %s75_s25 }
  0x13   :  { %p5698_p5 = scmp.lt.s32.totalorder %s5696_s23, %s5692_s22 }
  0x15   :  { %p5699_p6 = por %p5698_p5, %p5697_p4 }
  0x17   :  { %p5700_p7 = pnand %p5699_p6, %p5693_p3 }
  0x19   :  { %5703 = shalt.err (!%p5700_p7)
}
  0x1a   :  { %77 = dma.hbm_to_vmem [thread:$0]  %s7360_s14, 16, %s75_s25, [#allocation6]  }
  0x1b   :  { %s5704_s3 = scalar_lea.hbm %s7354_s8, 32 }
  0x1c   :  { %p5705_p8 = scmp.ne.s32.totalorder %s7354_s8, %s5704_s3  ;;  %p5708_p9 = scmp.lt.u32.totalorder %s5704_s3, %s7354_s8 }
  0x1e   :  { %p5710_p10 = pnand %p5708_p9, %p5705_p8 }
  0x20   :  { %5713 = shalt.err (!%p5710_p10)
}
  0x21   :  { %s5714_s30 = scalar_lea.vmem %s5904_s27, 32  ;;  %p5719_p12 = scmp.lt.s32.totalorder %s5904_s27, %s5904_s27 }
  0x22   :  { %p5715_p11 = scmp.ne.s32.totalorder %s5904_s27, %s5714_s30  ;;  %p5720_p13 = scmp.lt.s32.totalorder %s5714_s30, %s5714_s30 }
  0x24   :  { %p5721_p0 = por %p5720_p13, %p5719_p12 }
  0x26   :  { %p5722_p1 = pnand %p5721_p0, %p5715_p11 }
  0x28   :  { %5725 = shalt.err (!%p5722_p1)
}
  0x29   :  { %s7378_s14 = smov 16   ;;  %s5779_s25 = smov 1  }
  0x2a   :  { %57 = dma.hbm_to_vmem [thread:$0]  %s7354_s8, 32, %s5904_s27, [#allocation3], %s7378_s14, %s7378_s14, %s5779_s25  }
  0x2b   :  { %s5780_s23 = smov [#allocation7]   ;;  %s5726_s26 = scalar_lea.hbm %s7361_s15, 16 }
  0x2c   :  { %s84_s1 = sshll.u32 %s5780_s23, 4  ;;  %p5727_p2 = scmp.ne.s32.totalorder %s7361_s15, %s5726_s26  ;;  %s85_s1 = int_to_ptr.vmem [resolvable:$true] %s84_s1 }
  0x2d   :  { %p5730_p3 = scmp.lt.u32.totalorder %s5726_s26, %s7361_s15 }
  0x2f   :  { %p5732_p4 = pnand %p5730_p3, %p5727_p2 }
  0x31   :  { %5735 = shalt.err (!%p5732_p4)
}
  0x32   :  { %s5736_s4 = scalar_lea.vmem %s85_s1, 16  ;;  %s5740_s8 = scalar_lea.vmem %s85_s1, 32 }
  0x33   :  { %p5737_p5 = scmp.ne.s32.totalorder %s85_s1, %s5736_s4  ;;  %p5741_p6 = scmp.lt.s32.totalorder %s85_s1, %s85_s1 }
  0x34   :  { %p5742_p7 = scmp.lt.s32.totalorder %s5740_s8, %s5736_s4 }
  0x36   :  { %p5743_p8 = por %p5742_p7, %p5741_p6 }
  0x38   :  { %p5744_p9 = pnand %p5743_p8, %p5737_p5 }
  0x3a   :  { %5747 = shalt.err (!%p5744_p9)
}
  0x3b   :  { %87 = dma.hbm_to_vmem [thread:$0]  %s7361_s15, 16, %s85_s1, [#allocation6]  }
  0x3c   :  { %5770 = dma.done.wait [#allocation3], 32  }
  0x3d   :  { %5771 = vsyncadd [#allocation3], 4294967264 }
  0x3e   :  { %5772 = dma.done.wait [#allocation6], 32  }
  0x3f   :  { %5773 = vsyncadd [#allocation6], 4294967264  ;;  %s7386_s22 = sld [smem:[#allocation12_spill]]  ;;  %s7387_s2 = sld [smem:[#allocation13_spill]]  ;;  %vm129_vm0 = vcmask 523264   ;;  %v5781_v41 = vmov 0  }
  0x40   :  { %s7388_s23 = sld [smem:[#allocation16_spill]]  ;;  %303 = vmatprep.mubr.bf16.mxu0 %v5781_v41  ;;  %s7389_s24 = sld [smem:[#allocation14_spill]]  ;;  %vm5784_vm1 = vmmov 0   ;;  %vm423_vm2 = vcmask 130048   ;;  %vm1441_vm5 = vcmask 261120   ;;  %vm1446_vm6 = vcmask 392192  }
  0x41   :  { %s7390_s3 = sld [smem:[#allocation15_spill]]  ;;  %s7391_s28 = sld [smem:[#allocation17_spill]] }
  0x42   :  { %s5783_s29 = smov 112   ;;  %s5785_s0 = smov 80  }
  0x43   :  { %s5786_s4 = smov 64   ;;  %s5787_s8 = smov 96  }
  0x44   :  { %s7376_s27 = smov 32   ;;  %s7374_s15 = smov 48  }
  0x45   :  { %v115_v0 = vld [vmem:[%s7386_s22] sm:$0xff]  ;;  %v117_v2 = vld [vmem:[%s7386_s22 + $0x10] sm:$0xff]  ;;  %v116_v5 = vld [vmem:[%s7386_s22 + $0x8] sm:$0xff] }
  0x46   :  { %v119_v1 = vld [vmem:[%s7387_s2] sm:$0xff]  ;;  %v121_v4 = vld [vmem:[%s7387_s2 + $0x10] sm:$0xff]  ;;  %v120_v6 = vld [vmem:[%s7387_s2 + $0x8] sm:$0xff] }
  0x47   :  { %v5958_v3 = vadd.f32 %v119_v1, %v115_v0  ;;  %v5969_v7 = vadd.f32 %v121_v4, %v117_v2  ;;  %v5971_v8 = vadd.f32 %v120_v6, %v116_v5  ;;  %v118_v9 = vld [vmem:[%s7386_s22 + $0x18] sm:$0xff]  ;;  %v5358_v36 = vld [vmem:[%s7388_s23 + $0x4] ss:$8 sps:$4 sm:$0xff]   ;;  %v5360_v37 = vld [vmem:[%s7388_s23] ss:$8 sps:$4 sm:$0xff]  }
  0x48   :  { %v122_v10 = vld [vmem:[%s7387_s2 + $0x18] sm:$0xff]  ;;  %271 = vmatprep.subr.bf16.mxu0 %v5358_v36  ;;  %v5364_v40 = vld [vmem:[%s7388_s23 + $0x24] ss:$8 sps:$4 sm:$0xff]   ;;  %v5366_v42 = vld [vmem:[%s7388_s23 + $0x20] ss:$8 sps:$4 sm:$0xff]  }
  0x49   :  { %v130_v11 = vsel %vm129_vm0, %v5958_v3, 0.0  ;;  %v5981_v12 = vadd.f32 %v122_v10, %v118_v9  ;;  %v136_v13 = vsel %vm129_vm0, %v5969_v7, 0.0  ;;  %v133_v14 = vsel %vm129_vm0, %v5971_v8, 0.0  ;;  %v5361_v38 = vld [vmem:[%s7388_s23 + $0x14] ss:$8 sps:$4 sm:$0xff]   ;;  %272 = vmatpush1.bf16.msra.mxu0 %v5360_v37 }
  0x4a   :  { %131 = vadd.xlane.f32.xlu0 %v130_v11  ;;  %137 = vadd.xlane.f32.xlu1 %v136_v13  ;;  %v5363_v39 = vld [vmem:[%s7388_s23 + $0x10] ss:$8 sps:$4 sm:$0xff]   ;;  %v5367_v43 = vld [vmem:[%s7388_s23 + $0x34] ss:$8 sps:$4 sm:$0xff]   ;;  %v4516_v59 = vld [vmem:[%s7389_s24] ss:$0 sm:$0xff] }
  0x4b   :  { %v139_v15 = vsel %vm129_vm0, %v5981_v12, 0.0  ;;  %273 = vmatprep.subr.bf16.mxu0 %v5361_v38  ;;  %v5369_v44 = vld [vmem:[%s7388_s23 + $0x30] ss:$8 sps:$4 sm:$0xff]   ;;  %v4517_v0 = vld [vmem:[%s7390_s3] ss:$0 sm:$0xff] }
  0x4d   :  { %274 = vmatpush1.bf16.msra.mxu0 %v5363_v39 }
  0x4e   :  { %134 = vadd.xlane.f32.xlu0 %v133_v14  ;;  %140 = vadd.xlane.f32.xlu1 %v139_v15 }
  0x4f   :  { %275 = vmatprep.subr.bf16.mxu0 %v5364_v40 }
  0x51   :  { %276 = vmatpush1.bf16.msra.mxu0 %v5366_v42 }
  0x52   :  { %277 = vmatprep.subr.bf16.mxu0 %v5367_v43 }
  0x55   :  { %278 = vmatpush1.bf16.msra.mxu0 %v5369_v44 }
  0xd7   :  { %v132_v16 = vpop.xlane.xlu0 %131  ;;  %v138_v18 = vpop.xlane.xlu1 %137 }
  0xd8   :  { %v143_v17 = vmul.f32 0.015625, %v132_v16  ;;  %v145_v19 = vmul.f32 0.015625, %v138_v18 }
  0xda   :  { %v147_v20 = vsub.f32 %v5958_v3, %v143_v17  ;;  %v5991_v21 = vsub.f32 %v5969_v7, %v145_v19  ;;  %v106_v17 = vlaneseq }
  0xdb   :  { %v135_v22 = vpop.xlane.xlu0 %134  ;;  %v141_v24 = vpop.xlane.xlu1 %140 }
  0xdc   :  { %v144_v23 = vmul.f32 0.015625, %v135_v22  ;;  %v151_v25 = vmul.f32 %v147_v20, %v147_v20  ;;  %v146_v26 = vmul.f32 0.015625, %v141_v24  ;;  %v153_v27 = vmul.f32 %v5991_v21, %v5991_v21 }
  0xdd   :  { %v6037_v18 = vshrl.u32 %v106_v17, 7 }
  0xde   :  { %v148_v28 = vsub.f32 %v5971_v8, %v144_v23  ;;  %v155_v29 = vsel %vm129_vm0, %v151_v25, 0.0  ;;  %v150_v30 = vsub.f32 %v5981_v12, %v146_v26  ;;  %v161_v31 = vsel %vm129_vm0, %v153_v27, 0.0 }
  0xdf   :  { %156 = vadd.xlane.f32.xlu0 %v155_v29  ;;  %v6040_v19 = vsub.s32 0, %v6037_v18 }
  0xe0   :  { %v152_v32 = vmul.f32 %v148_v28, %v148_v28  ;;  %v154_v33 = vmul.f32 %v150_v30, %v150_v30 }
  0xe2   :  { %v158_v34 = vsel %vm129_vm0, %v152_v32, 0.0  ;;  %v164_v35 = vsel %vm129_vm0, %v154_v33, 0.0 }
  0xe3   :  { %162 = vadd.xlane.f32.xlu0 %v161_v31  ;;  %159 = vadd.xlane.f32.xlu1 %v158_v34 }
  0xe7   :  { %165 = vadd.xlane.f32.xlu1 %v164_v35 }
 0x16c   :  { %v157_v45 = vpop.xlane.xlu0 %156 }
 0x16d   :  { %v167_v46 = vmul.f32 0.015625, %v157_v45 }
 0x16f   :  { %v171_v47 = vadd.f32 1e-05, %v167_v46 }
 0x170   :  { %v160_v48 = vpop.xlane.xlu1 %159  ;;  %v163_v49 = vpop.xlane.xlu0 %162 }
 0x171   :  { %5482 = vrsqrt.f32 %v171_v47  ;;  %v168_v50 = vmul.f32 0.015625, %v160_v48  ;;  %v169_v51 = vmul.f32 0.015625, %v163_v49 }
 0x173   :  { %v172_v52 = vadd.f32 1e-05, %v168_v50  ;;  %v173_v53 = vadd.f32 1e-05, %v169_v51 }
 0x174   :  { %v166_v54 = vpop.xlane.xlu1 %165 }
 0x175   :  { %5484 = vrsqrt.f32 %v172_v52  ;;  %v170_v55 = vmul.f32 0.015625, %v166_v54 }
 0x176   :  { %5486 = vrsqrt.f32 %v173_v53 }
 0x177   :  { %v174_v56 = vadd.f32 1e-05, %v170_v55 }
 0x179   :  { %5488 = vrsqrt.f32 %v174_v56 }
 0x17b   :  { %v5483_v57 = vpop.eup %5482 }
 0x17c   :  { %v179_v58 = vmul.f32 %v5483_v57, %v147_v20  ;;  %v213_v20 = vld [vmem:[%s7391_s28] sm:$0x3] }
 0x17d   :  { %v218_v22 = vrot.slane %v213_v20, %v6040_v19 }
 0x17e   :  { %v189_v62 = vmul.f32 %v4516_v59, %v179_v58 }
 0x17f   :  { %v5485_v60 = vpop.eup %5484 }
 0x180   :  { %v180_v61 = vmul.f32 %v5485_v60, %v148_v28  ;;  %v5487_v63 = vpop.eup %5486  ;;  %v199_v4 = vadd.f32 %v4517_v0, %v189_v62 }
 0x181   :  { %v181_v6 = vmul.f32 %v5487_v63, %v5991_v21  ;;  %v6046_v21 = vsub.s32 1, %v6037_v18 }
 0x182   :  { %v190_v1 = vmul.f32 %v4516_v59, %v180_v61 }
 0x183   :  { %v5489_v2 = vpop.eup %5488  ;;  %v191_v13 = vmul.f32 %v4516_v59, %v181_v6  ;;  %v222_v24 = vrot.slane %v213_v20, %v6046_v21 }
 0x184   :  { %v200_v5 = vadd.f32 %v4517_v0, %v190_v1  ;;  %v182_v9 = vmul.f32 %v5489_v2, %v150_v30  ;;  %v5782_v30 = vmov 0.0  }
 0x185   :  { %v201_v15 = vadd.f32 %v4517_v0, %v191_v13  ;;  %4920 = vmatprep.subr.bf16.mxu0 %v5782_v30  ;;  %4926 = vmatprep.subr.bf16.mxu1 %v5782_v30 }
 0x186   :  { %v211_v10 = vpack.c.bf16 %v200_v5, %v199_v4  ;;  %v192_v11 = vmul.f32 %v4516_v59, %v182_v9  ;;  %4928 = vmatprep.mubr.msk.bf16.mxu1 %vm5784_vm1, %v5782_v30 }
 0x188   :  { %4526 = vmatmul.mubr.msk.bf16.vlgmr.msra.gmra.mrb[0].mxu0 %vm129_vm0, %v211_v10  ;;  %v202_v14 = vadd.f32 %v4517_v0, %v192_v11 }
 0x189   :  { %313 = vmatprep.mubr.bf16.mxu0 %v5781_v41 }
 0x18a   :  { %v212_v16 = vpack.c.bf16 %v202_v14, %v201_v15 }
 0x190   :  { %4527 = vmatmul.mubr.msk.bf16.gmra.mrb[4].mxu0 %vm129_vm0, %v212_v16 }
 0x191   :  { %4922 = vmatprep.mubr.msk.bf16.mxu0 %vm5784_vm1, %v5782_v30 }
 0x25b   :  { %v305_v23 = vpop.f32.mrb[0].mxu0 }
 0x25c   :  { %v307_v25 = vpop.f32.mrb[1].mxu0  ;;  %v306_v27 = vadd.f32 %v305_v23, %v218_v22 }
 0x25d   :  { %v309_v26 = vpop.f32.mrb[2].mxu0  ;;  %v6052_v31 = vadd.f32 %v307_v25, %v222_v24 }
 0x25e   :  { %v310_v28 = vadd.f32 %v309_v26, %v218_v22  ;;  %v311_v29 = vpop.f32.mrb[3].mxu0 }
 0x25f   :  { %v6054_v32 = vadd.f32 %v311_v29, %v222_v24 }
 0x260   :  { %v5178_v33 = vpack.i.bf16 %v310_v28, %v306_v27  ;;  %v364_v34 = vpack.c.bf16 %v310_v28, %v306_v27 }
 0x261   :  { %v412_v35 = vpack.c.bf16 %v6054_v32, %v6052_v31  ;;  %v6060_v36 = vpack.i.bf16 %v6054_v32, %v6052_v31  ;;  %v108_v31 = vadd.s32 8, %v6037_v18  ;;  %v5788_v32 = vmov -1e+30  }
 0x262   :  { %5179 = vrot.lane.b32.xlu0 %v5178_v33, %s5783_s29 }
 0x263   :  { %v315_v37 = vpop.f32.mrb[4].mxu0 }
 0x264   :  { %v317_v38 = vpop.f32.mrb[5].mxu0  ;;  %v316_v40 = vadd.f32 %v315_v37, %v218_v22 }
 0x265   :  { %v319_v39 = vpop.f32.mrb[6].mxu0  ;;  %v6068_v44 = vadd.f32 %v317_v38, %v222_v24 }
 0x266   :  { %v320_v42 = vadd.f32 %v319_v39, %v218_v22  ;;  %5199 = vrot.lane.b32.xlu0 %v5178_v33, %s5785_s0  ;;  %v321_v43 = vpop.f32.mrb[7].mxu0  ;;  %v110_v39 = vand.u32 127, %v106_v17 }
 0x267   :  { %v6070_v45 = vadd.f32 %v321_v43, %v222_v24 }
 0x268   :  { %v5183_v46 = vpack.i.bf16 %v320_v42, %v316_v40  ;;  %v365_v47 = vpack.c.bf16 %v320_v42, %v316_v40  ;;  %vm111_vm3 = vcmp.le.s32.totalorder %v110_v39, %v6037_v18  ;;  %vm112_vm4 = vcmp.le.s32.totalorder %v110_v39, %v108_v31 }
 0x269   :  { %v413_v48 = vpack.c.bf16 %v6070_v45, %v6068_v44  ;;  %v6076_v49 = vpack.i.bf16 %v6070_v45, %v6068_v44  ;;  %v6143_v44 = vsel %vm112_vm4, 0.0, %v5788_v32 }
 0x26a   :  { %421 = vrot.lane.b32.xlu0 %v364_v34, %s5786_s4  ;;  %5184 = vrot.lane.b32.xlu1 %v5183_v46, %s5783_s29 }
 0x26e   :  { %5189 = vrot.lane.b32.xlu1 %v5178_v33, %s5787_s8 }
 0x272   :  { %5194 = vrot.lane.b32.xlu1 %v5183_v46, %s5787_s8 }
 0x276   :  { %5204 = vrot.lane.b32.xlu1 %v5183_v46, %s5785_s0 }
 0x27a   :  { %472 = vrot.lane.b32.xlu1 %v365_v47, %s5786_s4 }
 0x2d4   :  { %v5180_v50 = vpop.permute.xlu0 %5179 }
 0x2d5   :  { %v5182_v51 = vunpack.i.h.bf16 %v5180_v50  ;;  %v5181_v52 = vunpack.i.l.bf16 %v5180_v50 }
 0x2d7   :  { %v366_v53 = vpack.c.bf16 %v5182_v51, %v5181_v52 }
 0x2d8   :  { %v5200_v54 = vpop.permute.xlu0 %5199 }
 0x2d9   :  { %522 = vrot.lane.b32.xlu0 %v366_v53, %s5786_s4  ;;  %v5202_v0 = vunpack.i.h.bf16 %v5200_v54  ;;  %v5201_v1 = vunpack.i.l.bf16 %v5200_v54 }
 0x2db   :  { %v370_v10 = vpack.c.bf16 %v5202_v0, %v5201_v1 }
 0x2dc   :  { %v5185_v55 = vpop.permute.xlu1 %5184  ;;  %v422_v56 = vpop.permute.xlu0 %421 }
 0x2dd   :  { %v5187_v57 = vunpack.i.h.bf16 %v5185_v55  ;;  %v5186_v58 = vunpack.i.l.bf16 %v5185_v55  ;;  %v428_v59 = vsel %vm423_vm2, %v422_v56, 0 }
 0x2de   :  { %4921 = vmatpush3.bf16.xpose.msra.mxu0 %v428_v59 }
 0x2df   :  { %v367_v60 = vpack.c.bf16 %v5187_v57, %v5186_v58  ;;  %4938 = vmatprep.subr.bf16.mxu0 %v5782_v30 }
 0x2e0   :  { %v5190_v61 = vpop.permute.xlu1 %5189 }
 0x2e1   :  { %v5192_v62 = vunpack.i.h.bf16 %v5190_v61  ;;  %v5191_v63 = vunpack.i.l.bf16 %v5190_v61  ;;  %572 = vrot.lane.b32.xlu1 %v367_v60, %s5786_s4 }
 0x2e3   :  { %v368_v2 = vpack.c.bf16 %v5192_v62, %v5191_v63 }
 0x2e4   :  { %v5195_v4 = vpop.permute.xlu1 %5194 }
 0x2e5   :  { %v5197_v5 = vunpack.i.h.bf16 %v5195_v4  ;;  %v5196_v6 = vunpack.i.l.bf16 %v5195_v4  ;;  %4923 = vmatmul.mubr.msk.bf16.vlgmr.msra.gmra.mrb[8].mxu0 %vm423_vm2, %v364_v34  ;;  %622 = vrot.lane.b32.xlu0 %v368_v2, %s5786_s4 }
 0x2e6   :  { %4940 = vmatprep.mubr.msk.bf16.mxu0 %vm5784_vm1, %v5782_v30 }
 0x2e7   :  { %v369_v9 = vpack.c.bf16 %v5197_v5, %v5196_v6 }
 0x2e8   :  { %v5205_v11 = vpop.permute.xlu1 %5204 }
 0x2e9   :  { %v5207_v13 = vunpack.i.h.bf16 %v5205_v11  ;;  %v5206_v14 = vunpack.i.l.bf16 %v5205_v11  ;;  %672 = vrot.lane.b32.xlu1 %v369_v9, %s5786_s4  ;;  %722 = vrot.lane.b32.xlu0 %v370_v10, %s5786_s4 }
 0x2eb   :  { %v371_v15 = vpack.c.bf16 %v5207_v13, %v5206_v14 }
 0x2ec   :  { %v473_v16 = vpop.permute.xlu1 %472 }
 0x2ed   :  { %772 = vrot.lane.b32.xlu1 %v371_v15, %s5786_s4  ;;  %v478_v20 = vsel %vm423_vm2, %v473_v16, 0 }
 0x2ee   :  { %4927 = vmatpush3.bf16.xpose.msra.mxu1 %v478_v20 }
 0x2ef   :  { %4932 = vmatprep.subr.bf16.mxu1 %v5782_v30 }
 0x2f5   :  { %4929 = vmatmul.mubr.msk.bf16.vlgmr.msra.gmra.mrb[0].mxu1 %vm423_vm2, %v365_v47 }
 0x2f6   :  { %4934 = vmatprep.mubr.msk.bf16.mxu1 %vm5784_vm1, %v5782_v30 }
 0x34b   :  { %v523_v22 = vpop.permute.xlu0 %522 }
 0x34c   :  { %v528_v23 = vsel %vm423_vm2, %v523_v22, 0 }
 0x34d   :  { %4933 = vmatpush3.bf16.xpose.msra.mxu1 %v528_v23 }
 0x34e   :  { %4944 = vmatprep.subr.bf16.mxu1 %v5782_v30 }
 0x353   :  { %v573_v24 = vpop.permute.xlu1 %572 }
 0x354   :  { %v578_v25 = vsel %vm423_vm2, %v573_v24, 0  ;;  %4935 = vmatmul.mubr.msk.bf16.vlgmr.msra.gmra.mrb[4].mxu1 %vm423_vm2, %v366_v53 }
 0x355   :  { %4939 = vmatpush3.bf16.xpose.msra.mxu0 %v578_v25  ;;  %4946 = vmatprep.mubr.msk.bf16.mxu1 %vm5784_vm1, %v5782_v30 }
 0x356   :  { %4950 = vmatprep.subr.bf16.mxu0 %v5782_v30 }
 0x357   :  { %v623_v26 = vpop.permute.xlu0 %622 }
 0x358   :  { %v628_v27 = vsel %vm423_vm2, %v623_v26, 0 }
 0x359   :  { %4945 = vmatpush3.bf16.xpose.msra.mxu1 %v628_v27 }
 0x35a   :  { %4956 = vmatprep.subr.bf16.mxu1 %v5782_v30 }
 0x35b   :  { %v673_v28 = vpop.permute.xlu1 %672  ;;  %v723_v33 = vpop.permute.xlu0 %722 }
 0x35c   :  { %v678_v29 = vsel %vm423_vm2, %v673_v28, 0  ;;  %4941 = vmatmul.mubr.msk.bf16.vlgmr.msra.gmra.mrb[12].mxu0 %vm423_vm2, %v367_v60  ;;  %v728_v34 = vsel %vm423_vm2, %v723_v33, 0 }
 0x35d   :  { %4951 = vmatpush3.bf16.xpose.msra.mxu0 %v678_v29  ;;  %4952 = vmatprep.mubr.msk.bf16.mxu0 %vm5784_vm1, %v5782_v30 }
 0x35e   :  { %4962 = vmatprep.subr.bf16.mxu0 %v5782_v30 }
 0x35f   :  { %v773_v37 = vpop.permute.xlu1 %772 }
 0x360   :  { %4947 = vmatmul.mubr.msk.bf16.vlgmr.msra.gmra.mrb[8].mxu1 %vm423_vm2, %v368_v2  ;;  %v778_v38 = vsel %vm423_vm2, %v773_v37, 0 }
 0x361   :  { %4957 = vmatpush3.bf16.xpose.msra.mxu1 %v728_v34  ;;  %4958 = vmatprep.mubr.msk.bf16.mxu1 %vm5784_vm1, %v5782_v30 }
 0x362   :  { %4968 = vmatprep.subr.bf16.mxu1 %v5782_v30 }
 0x364   :  { %4953 = vmatmul.mubr.msk.bf16.vlgmr.msra.gmra.mrb[16].mxu0 %vm423_vm2, %v369_v9 }
 0x365   :  { %4963 = vmatpush3.bf16.xpose.msra.mxu0 %v778_v38  ;;  %4964 = vmatprep.mubr.msk.bf16.mxu0 %vm5784_vm1, %v5782_v30 }
 0x366   :  { %4974 = vmatprep.subr.bf16.mxu0 %v5782_v30 }
 0x368   :  { %4959 = vmatmul.mubr.msk.bf16.vlgmr.msra.gmra.mrb[12].mxu1 %vm423_vm2, %v370_v10 }
 0x369   :  { %4969 = vmatpush3.bf16.msra.mxu1 %v412_v35  ;;  %4970 = vmatprep.mubr.msk.bf16.mxu1 %vm5784_vm1, %v5782_v30  ;;  %v6141_v35 = vsel %vm111_vm3, 0.0, %v5788_v32 }
 0x36a   :  { %4980 = vmatprep.subr.bf16.mxu1 %v5782_v30 }
 0x36c   :  { %4965 = vmatmul.mubr.msk.bf16.vlgmr.msra.gmra.mrb[20].mxu0 %vm423_vm2, %v371_v15 }
 0x36d   :  { %4975 = vmatpush3.bf16.msra.mxu0 %v413_v48  ;;  %4976 = vmatprep.mubr.msk.bf16.mxu0 %vm5784_vm1, %v5782_v30 }
 0x36e   :  { %4986 = vmatprep.subr.bf16.mxu0 %v5782_v30 }
 0x3b8   :  { %v464_v40 = vpop.f32.mrb[8].mxu0 }
 0x3b9   :  { %v821_v42 = vmul.f32 0.25, %v464_v40  ;;  %v4924_v43 = vpop.f32.mrb[9].mxu0 }
 0x3ba   :  { %v467_v45 = vpop.f32.mrb[10].mxu0 }
 0x3bb   :  { %v822_v46 = vmul.f32 0.25, %v467_v45  ;;  %v4925_v47 = vpop.f32.mrb[11].mxu0  ;;  %v6146_v48 = vadd.f32 %v821_v42, %v6141_v35 }
 0x3bd   :  { %v853_v17 = vsel %vm423_vm2, %v6146_v48, -inf  ;;  %v6151_v50 = vadd.f32 %v822_v46, %v6143_v44 }
 0x3be   :  { %854 = vmax.xlane.f32.xlu0 %v853_v17 }
 0x3bf   :  { %v856_v51 = vsel %vm423_vm2, %v6151_v50, -inf }
 0x3c0   :  { %857 = vmax.xlane.f32.xlu1 %v856_v51 }
 0x3c8   :  { %v514_v52 = vpop.f32.mrb[0].mxu1 }
 0x3c9   :  { %v823_v53 = vmul.f32 0.25, %v514_v52  ;;  %v4930_v54 = vpop.f32.mrb[1].mxu1 }
 0x3ca   :  { %v517_v55 = vpop.f32.mrb[2].mxu1 }
 0x3cb   :  { %v824_v56 = vmul.f32 0.25, %v517_v55  ;;  %v4931_v57 = vpop.f32.mrb[3].mxu1  ;;  %v6156_v58 = vadd.f32 %v823_v53, %v6141_v35 }
 0x3cd   :  { %v859_v59 = vsel %vm423_vm2, %v6156_v58, -inf  ;;  %v6161_v60 = vadd.f32 %v824_v56, %v6143_v44 }
 0x3ce   :  { %860 = vmax.xlane.f32.xlu0 %v859_v59 }
 0x3cf   :  { %v862_v61 = vsel %vm423_vm2, %v6161_v60, -inf }
 0x3d2   :  { %863 = vmax.xlane.f32.xlu0 %v862_v61 }
 0x427   :  { %v564_v62 = vpop.f32.mrb[4].mxu1 }
 0x428   :  { %v825_v63 = vmul.f32 0.25, %v564_v62  ;;  %v4936_v0 = vpop.f32.mrb[5].mxu1 }
 0x429   :  { %v567_v1 = vpop.f32.mrb[6].mxu1 }
 0x42a   :  { %v826_v2 = vmul.f32 0.25, %v567_v1  ;;  %v4937_v4 = vpop.f32.mrb[7].mxu1  ;;  %v6166_v5 = vadd.f32 %v825_v63, %v6141_v35 }
 0x42c   :  { %v865_v6 = vsel %vm423_vm2, %v6166_v5, -inf  ;;  %v6171_v9 = vadd.f32 %v826_v2, %v6143_v44 }
 0x42d   :  { %866 = vmax.xlane.f32.xlu0 %v865_v6 }
 0x42e   :  { %v868_v10 = vsel %vm423_vm2, %v6171_v9, -inf }
 0x42f   :  { %v614_v11 = vpop.f32.mrb[12].mxu0  ;;  %869 = vmax.xlane.f32.xlu1 %v868_v10 }
 0x430   :  { %v827_v13 = vmul.f32 0.25, %v614_v11  ;;  %v4942_v14 = vpop.f32.mrb[13].mxu0 }
 0x431   :  { %v617_v15 = vpop.f32.mrb[14].mxu0 }
 0x432   :  { %v828_v16 = vmul.f32 0.25, %v617_v15  ;;  %v4943_v20 = vpop.f32.mrb[15].mxu0  ;;  %v6176_v22 = vadd.f32 %v827_v13, %v6141_v35 }
 0x433   :  { %v664_v23 = vpop.f32.mrb[8].mxu1 }
 0x434   :  { %v829_v24 = vmul.f32 0.25, %v664_v23  ;;  %v4948_v25 = vpop.f32.mrb[9].mxu1  ;;  %v871_v26 = vsel %vm423_vm2, %v6176_v22, -inf  ;;  %v6181_v27 = vadd.f32 %v828_v16, %v6143_v44 }
 0x435   :  { %872 = vmax.xlane.f32.xlu0 %v871_v26  ;;  %v667_v28 = vpop.f32.mrb[10].mxu1 }
 0x436   :  { %v830_v29 = vmul.f32 0.25, %v667_v28  ;;  %v4949_v33 = vpop.f32.mrb[11].mxu1  ;;  %v874_v34 = vsel %vm423_vm2, %v6181_v27, -inf  ;;  %v6186_v37 = vadd.f32 %v829_v24, %v6141_v35 }
 0x437   :  { %v714_v38 = vpop.f32.mrb[16].mxu0  ;;  %875 = vmax.xlane.f32.xlu1 %v874_v34 }
 0x438   :  { %v831_v39 = vmul.f32 0.25, %v714_v38  ;;  %v4954_v31 = vpop.f32.mrb[17].mxu0  ;;  %v877_v32 = vsel %vm423_vm2, %v6186_v37, -inf  ;;  %v6191_v40 = vadd.f32 %v830_v29, %v6143_v44 }
 0x439   :  { %v717_v42 = vpop.f32.mrb[18].mxu0  ;;  %878 = vmax.xlane.f32.xlu0 %v877_v32 }
 0x43a   :  { %v832_v43 = vmul.f32 0.25, %v717_v42  ;;  %v4955_v45 = vpop.f32.mrb[19].mxu0  ;;  %v880_v46 = vsel %vm423_vm2, %v6191_v40, -inf  ;;  %v6196_v47 = vadd.f32 %v831_v39, %v6141_v35 }
 0x43b   :  { %881 = vmax.xlane.f32.xlu1 %v880_v46  ;;  %v764_v17 = vpop.f32.mrb[12].mxu1 }
 0x43c   :  { %v833_v51 = vmul.f32 0.25, %v764_v17  ;;  %v4960_v52 = vpop.f32.mrb[13].mxu1  ;;  %v883_v53 = vsel %vm423_vm2, %v6196_v47, -inf  ;;  %v6201_v54 = vadd.f32 %v832_v43, %v6143_v44 }
 0x43d   :  { %884 = vmax.xlane.f32.xlu0 %v883_v53  ;;  %v767_v55 = vpop.f32.mrb[14].mxu1 }
 0x43e   :  { %v834_v56 = vmul.f32 0.25, %v767_v55  ;;  %v4961_v57 = vpop.f32.mrb[15].mxu1  ;;  %v886_v59 = vsel %vm423_vm2, %v6201_v54, -inf  ;;  %v6206_v61 = vadd.f32 %v833_v51, %v6141_v35 }
 0x43f   :  { %v814_v62 = vpop.f32.mrb[20].mxu0  ;;  %887 = vmax.xlane.f32.xlu1 %v886_v59 }
 0x440   :  { %v835_v63 = vmul.f32 0.25, %v814_v62  ;;  %v4966_v0 = vpop.f32.mrb[21].mxu0  ;;  %v889_v1 = vsel %vm423_vm2, %v6206_v61, -inf  ;;  %v6211_v2 = vadd.f32 %v834_v56, %v6143_v44 }
 0x441   :  { %v817_v4 = vpop.f32.mrb[22].mxu0  ;;  %890 = vmax.xlane.f32.xlu0 %v889_v1 }
 0x442   :  { %v4967_v6 = vpop.f32.mrb[23].mxu0  ;;  %v892_v10 = vsel %vm423_vm2, %v6211_v2, -inf  ;;  %v6216_v11 = vadd.f32 %v835_v63, %v6141_v35  ;;  %v836_v25 = vmul.f32 0.25, %v817_v4 }
 0x443   :  { %893 = vmax.xlane.f32.xlu1 %v892_v10 }
 0x444   :  { %v895_v13 = vsel %vm423_vm2, %v6216_v11, -inf  ;;  %v6231_v28 = vadd.f32 %v836_v25, %v6143_v44 }
 0x445   :  { %896 = vmax.xlane.f32.xlu0 %v895_v13 }
 0x44b   :  { %v855_v14 = vpop.xlane.xlu0 %854 }
 0x44c   :  { %v901_v15 = vsub.f32 %v6146_v48, %v855_v14  ;;  %v898_v48 = vsel %vm423_vm2, %v6231_v28, -inf }
 0x44d   :  { %v858_v34 = vpop.xlane.xlu1 %857 }
 0x44e   :  { %v917_v20 = vmul.f32 1.442695, %v901_v15  ;;  %v902_v38 = vsub.f32 %v6151_v50, %v858_v34 }
 0x450   :  { %5490 = vpow2.f32 %v917_v20  ;;  %v919_v31 = vmul.f32 1.442695, %v902_v38 }
 0x454   :  { %5214 = vrot.lane.b32.xlu1 %v6076_v49, %s5783_s29 }
 0x458   :  { %5219 = vrot.lane.b32.xlu1 %v6060_v36, %s5787_s8 }
 0x45a   :  { %v6228_v26 = vpop.eup %5490 }
 0x45b   :  { %5209 = vrot.lane.b32.xlu0 %v6060_v36, %s5783_s29  ;;  %v861_v16 = vpop.xlane.xlu0 %860  ;;  %v949_v29 = vsel %vm423_vm2, %v6228_v26, 0.0 }
 0x45c   :  { %v903_v23 = vsub.f32 %v6156_v58, %v861_v16 }
 0x45e   :  { %v921_v24 = vmul.f32 1.442695, %v903_v23 }
 0x45f   :  { %v864_v39 = vpop.xlane.xlu0 %863 }
 0x460   :  { %5492 = vpow2.f32 %v921_v24  ;;  %v904_v32 = vsub.f32 %v6161_v60, %v864_v39 }
 0x461   :  { %5494 = vpow2.f32 %v919_v31 }
 0x462   :  { %v923_v42 = vmul.f32 1.442695, %v904_v32 }
 0x464   :  { %5496 = vpow2.f32 %v923_v42 }
 0x46a   :  { %v6235_v33 = vpop.eup %5492 }
 0x46b   :  { %v955_v58 = vsel %vm423_vm2, %v6235_v33, 0.0  ;;  %v6245_v43 = vpop.eup %5494 }
 0x46c   :  { %v952_v45 = vsel %vm423_vm2, %v6245_v43, 0.0 }
 0x46e   :  { %v6249_v46 = vpop.eup %5496 }
 0x46f   :  { %v958_v17 = vsel %vm423_vm2, %v6249_v46, 0.0 }
 0x47a   :  { %950 = vadd.xlane.f32.xlu0 %v949_v29 }
 0x47c   :  { %899 = vmax.xlane.f32.xlu1 %v898_v48 }
 0x47e   :  { %956 = vadd.xlane.f32.xlu0 %v955_v58 }
 0x48d   :  { %5224 = vrot.lane.b32.xlu1 %v6076_v49, %s5787_s8 }
 0x4b1   :  { %953 = vadd.xlane.f32.xlu1 %v952_v45 }
 0x4b5   :  { %959 = vadd.xlane.f32.xlu1 %v958_v17 }
 0x4ba   :  { %v867_v50 = vpop.xlane.xlu0 %866 }
 0x4bb   :  { %v905_v51 = vsub.f32 %v6166_v5, %v867_v50 }
 0x4bc   :  { %v870_v52 = vpop.xlane.xlu1 %869 }
 0x4bd   :  { %v925_v60 = vmul.f32 1.442695, %v905_v51  ;;  %v906_v53 = vsub.f32 %v6171_v9, %v870_v52 }
 0x4bf   :  { %5498 = vpow2.f32 %v925_v60  ;;  %v927_v55 = vmul.f32 1.442695, %v906_v53 }
 0x4c1   :  { %5500 = vpow2.f32 %v927_v55 }
 0x4c2   :  { %v873_v56 = vpop.xlane.xlu0 %872 }
 0x4c3   :  { %v907_v57 = vsub.f32 %v6176_v22, %v873_v56 }
 0x4c4   :  { %v876_v59 = vpop.xlane.xlu1 %875 }
 0x4c5   :  { %v929_v62 = vmul.f32 1.442695, %v907_v57  ;;  %v908_v63 = vsub.f32 %v6181_v27, %v876_v59 }
 0x4c6   :  { %v879_v0 = vpop.xlane.xlu0 %878 }
 0x4c7   :  { %5502 = vpow2.f32 %v929_v62  ;;  %v931_v1 = vmul.f32 1.442695, %v908_v63  ;;  %v909_v4 = vsub.f32 %v6186_v37, %v879_v0 }
 0x4c8   :  { %v882_v5 = vpop.xlane.xlu1 %881 }
 0x4c9   :  { %v6258_v6 = vpop.eup %5498  ;;  %5504 = vpow2.f32 %v931_v1  ;;  %v933_v9 = vmul.f32 1.442695, %v909_v4  ;;  %v910_v10 = vsub.f32 %v6191_v40, %v882_v5 }
 0x4ca   :  { %v885_v13 = vpop.xlane.xlu0 %884  ;;  %v961_v22 = vsel %vm423_vm2, %v6258_v6, 0.0 }
 0x4cb   :  { %v6263_v14 = vpop.eup %5500  ;;  %5506 = vpow2.f32 %v933_v9  ;;  %v935_v27 = vmul.f32 1.442695, %v910_v10  ;;  %v911_v15 = vsub.f32 %v6196_v47, %v885_v13  ;;  %962 = vadd.xlane.f32.xlu0 %v961_v22 }
 0x4cc   :  { %v888_v16 = vpop.xlane.xlu1 %887  ;;  %v964_v37 = vsel %vm423_vm2, %v6263_v14, 0.0 }
 0x4cd   :  { %5508 = vpow2.f32 %v935_v27  ;;  %v937_v20 = vmul.f32 1.442695, %v911_v15  ;;  %v912_v23 = vsub.f32 %v6201_v54, %v888_v16  ;;  %965 = vadd.xlane.f32.xlu1 %v964_v37 }
 0x4ce   :  { %v891_v40 = vpop.xlane.xlu0 %890 }
 0x4cf   :  { %5510 = vpow2.f32 %v937_v20  ;;  %v939_v24 = vmul.f32 1.442695, %v912_v23  ;;  %v913_v25 = vsub.f32 %v6206_v61, %v891_v40 }
 0x4d0   :  { %v894_v29 = vpop.xlane.xlu1 %893 }
 0x4d1   :  { %v6270_v48 = vpop.eup %5502  ;;  %5512 = vpow2.f32 %v939_v24  ;;  %v941_v47 = vmul.f32 1.442695, %v913_v25  ;;  %v914_v58 = vsub.f32 %v6211_v2, %v894_v29 }
 0x4d2   :  { %v897_v34 = vpop.xlane.xlu0 %896  ;;  %v967_v38 = vsel %vm423_vm2, %v6270_v48, 0.0 }
 0x4d3   :  { %v6275_v39 = vpop.eup %5504  ;;  %5514 = vpow2.f32 %v941_v47  ;;  %v943_v54 = vmul.f32 1.442695, %v914_v58  ;;  %v915_v31 = vsub.f32 %v6216_v11, %v897_v34  ;;  %968 = vadd.xlane.f32.xlu0 %v967_v38 }
 0x4d4   :  { %v970_v61 = vsel %vm423_vm2, %v6275_v39, 0.0  ;;  %v5215_v62 = vpop.permute.xlu1 %5214 }
 0x4d5   :  { %v6280_v32 = vpop.eup %5506  ;;  %5516 = vpow2.f32 %v943_v54  ;;  %v945_v42 = vmul.f32 1.442695, %v915_v31  ;;  %971 = vadd.xlane.f32.xlu1 %v970_v61  ;;  %v5217_v29 = vunpack.i.h.bf16 %v5215_v62  ;;  %v5216_v47 = vunpack.i.l.bf16 %v5215_v62 }
 0x4d6   :  { %v973_v2 = vsel %vm423_vm2, %v6280_v32, 0.0  ;;  %v5210_v10 = vpop.permute.xlu0 %5209 }
 0x4d7   :  { %v6284_v45 = vpop.eup %5508  ;;  %5518 = vpow2.f32 %v945_v42  ;;  %974 = vadd.xlane.f32.xlu0 %v973_v2  ;;  %v5212_v37 = vunpack.i.h.bf16 %v5210_v10  ;;  %v5211_v20 = vunpack.i.l.bf16 %v5210_v10 }
 0x4d8   :  { %v976_v17 = vsel %vm423_vm2, %v6284_v45, 0.0  ;;  %v6310_v63 = vpop.permute.xlu1 %5219 }
 0x4d9   :  { %v6288_v11 = vpop.eup %5510  ;;  %977 = vadd.xlane.f32.xlu1 %v976_v17  ;;  %v414_v58 = vpack.c.bf16 %v5212_v37, %v5211_v20  ;;  %v5222_v17 = vunpack.i.h.bf16 %v6310_v63 }
 0x4da   :  { %v979_v50 = vsel %vm423_vm2, %v6288_v11, 0.0 }
 0x4db   :  { %v6292_v51 = vpop.eup %5512  ;;  %980 = vadd.xlane.f32.xlu0 %v979_v50  ;;  %v5221_v50 = vunpack.i.l.bf16 %v6310_v63 }
 0x4dc   :  { %v982_v52 = vsel %vm423_vm2, %v6292_v51, 0.0 }
 0x4dd   :  { %v6296_v60 = vpop.eup %5514  ;;  %983 = vadd.xlane.f32.xlu1 %v982_v52 }
 0x4de   :  { %v985_v53 = vsel %vm423_vm2, %v6296_v60, 0.0 }
 0x4df   :  { %v6300_v55 = vpop.eup %5516  ;;  %986 = vadd.xlane.f32.xlu0 %v985_v53 }
 0x4e0   :  { %v988_v56 = vsel %vm423_vm2, %v6300_v55, 0.0 }
 0x4e1   :  { %v6304_v57 = vpop.eup %5518  ;;  %989 = vadd.xlane.f32.xlu1 %v988_v56 }
 0x4e2   :  { %v991_v59 = vsel %vm423_vm2, %v6304_v57, 0.0 }
 0x4e3   :  { %992 = vadd.xlane.f32.xlu0 %v991_v59 }
 0x4f9   :  { %5229 = vrot.lane.b32.xlu0 %v6060_v36, %s5785_s0 }
 0x507   :  { %v951_v13 = vpop.xlane.xlu0 %950 }
 0x509   :  { %v900_v0 = vpop.xlane.xlu1 %899 }
 0x50a   :  { %v916_v1 = vsub.f32 %v6231_v28, %v900_v0  ;;  %v416_v0 = vpack.c.bf16 %v5222_v17, %v5221_v50 }
 0x50b   :  { %v957_v22 = vpop.xlane.xlu0 %956 }
 0x50c   :  { %v947_v4 = vmul.f32 1.442695, %v916_v1 }
 0x50d   :  { %v6319_v36 = vpop.permute.xlu1 %5224 }
 0x50e   :  { %5520 = vpow2.f32 %v947_v4 }
 0x50f   :  { %5522 = vrcp.f32 %v951_v13 }
 0x518   :  { %v6313_v5 = vpop.eup %5520 }
 0x519   :  { %v994_v9 = vsel %vm423_vm2, %v6313_v5, 0.0  ;;  %v5523_v15 = vpop.eup %5522 }
 0x51a   :  { %995 = vadd.xlane.f32.xlu1 %v994_v9  ;;  %v1013_v23 = vmul.f32 %v5523_v15, %v6228_v26  ;;  %v415_v26 = vpack.c.bf16 %v5217_v29, %v5216_v47  ;;  %v5226_v9 = vunpack.i.l.bf16 %v6319_v36 }
 0x52b   :  { %5234 = vrot.lane.b32.xlu1 %v6076_v49, %s5785_s0 }
 0x53e   :  { %v954_v27 = vpop.xlane.xlu1 %953 }
 0x53f   :  { %5524 = vrcp.f32 %v954_v27 }
 0x540   :  { %5526 = vrcp.f32 %v957_v22 }
 0x542   :  { %v960_v28 = vpop.xlane.xlu1 %959 }
 0x543   :  { %5528 = vrcp.f32 %v960_v28 }
 0x549   :  { %v5525_v16 = vpop.eup %5524 }
 0x54a   :  { %v1014_v40 = vmul.f32 %v5525_v16, %v6245_v43  ;;  %v5527_v49 = vpop.eup %5526 }
 0x54b   :  { %v1015_v34 = vmul.f32 %v5527_v49, %v6235_v33 }
 0x54c   :  { %v1029_v24 = vpack.c.bf16 %v1014_v40, %v1013_v23 }
 0x54d   :  { %v5529_v25 = vpop.eup %5528 }
 0x54e   :  { %v1016_v38 = vmul.f32 %v5529_v25, %v6249_v46  ;;  %4971 = vmatmul.mubr.msk.bf16.vlgmr.msra.gmra.mrb[16].mxu1 %vm423_vm2, %v1029_v24 }
 0x54f   :  { %4981 = vmatpush3.bf16.msra.mxu1 %v414_v58  ;;  %4982 = vmatprep.mubr.msk.bf16.mxu1 %vm5784_vm1, %v5782_v30 }
 0x550   :  { %v1030_v54 = vpack.c.bf16 %v1016_v38, %v1015_v34  ;;  %4992 = vmatprep.subr.bf16.mxu1 %v5782_v30 }
 0x552   :  { %4977 = vmatmul.mubr.msk.bf16.vlgmr.msra.gmra.mrb[24].mxu0 %vm423_vm2, %v1030_v54 }
 0x553   :  { %4987 = vmatpush3.bf16.msra.mxu0 %v415_v26  ;;  %4988 = vmatprep.mubr.msk.bf16.mxu0 %vm5784_vm1, %v5782_v30 }
 0x554   :  { %4998 = vmatprep.subr.bf16.mxu0 %v5782_v30 }
 0x558   :  { %v963_v33 = vpop.xlane.xlu0 %962 }
 0x559   :  { %5530 = vrcp.f32 %v963_v33 }
 0x55a   :  { %v966_v43 = vpop.xlane.xlu1 %965 }
 0x55b   :  { %5532 = vrcp.f32 %v966_v43 }
 0x560   :  { %v969_v46 = vpop.xlane.xlu0 %968 }
 0x561   :  { %5534 = vrcp.f32 %v969_v46 }
 0x562   :  { %v972_v31 = vpop.xlane.xlu1 %971 }
 0x563   :  { %v5531_v61 = vpop.eup %5530  ;;  %5536 = vrcp.f32 %v972_v31 }
 0x564   :  { %v975_v42 = vpop.xlane.xlu0 %974  ;;  %v1017_v52 = vmul.f32 %v5531_v61, %v6258_v6 }
 0x565   :  { %v5533_v2 = vpop.eup %5532  ;;  %5538 = vrcp.f32 %v975_v42 }
 0x566   :  { %v1018_v53 = vmul.f32 %v5533_v2, %v6263_v14  ;;  %v978_v56 = vpop.xlane.xlu1 %977  ;;  %v5227_v14 = vunpack.i.h.bf16 %v6319_v36 }
 0x567   :  { %5540 = vrcp.f32 %v978_v56 }
 0x568   :  { %v981_v59 = vpop.xlane.xlu0 %980  ;;  %v1031_v62 = vpack.c.bf16 %v1018_v53, %v1017_v52  ;;  %v417_v37 = vpack.c.bf16 %v5227_v14, %v5226_v9 }
 0x569   :  { %5542 = vrcp.f32 %v981_v59 }
 0x56a   :  { %v984_v1 = vpop.xlane.xlu1 %983  ;;  %4983 = vmatmul.mubr.msk.bf16.vlgmr.msra.gmra.mrb[20].mxu1 %vm423_vm2, %v1031_v62 }
 0x56b   :  { %v5535_v4 = vpop.eup %5534  ;;  %5544 = vrcp.f32 %v984_v1  ;;  %4993 = vmatpush3.bf16.msra.mxu1 %v416_v0  ;;  %4994 = vmatprep.mubr.msk.bf16.mxu1 %vm5784_vm1, %v5782_v30 }
 0x56c   :  { %v987_v63 = vpop.xlane.xlu0 %986  ;;  %5004 = vmatprep.subr.bf16.mxu1 %v5782_v30  ;;  %v1019_v10 = vmul.f32 %v5535_v4, %v6270_v48 }
 0x56d   :  { %v5537_v6 = vpop.eup %5536  ;;  %5546 = vrcp.f32 %v987_v63 }
 0x56e   :  { %v1020_v13 = vmul.f32 %v5537_v6, %v6275_v39  ;;  %v990_v22 = vpop.xlane.xlu1 %989 }
 0x56f   :  { %v5539_v27 = vpop.eup %5538  ;;  %5548 = vrcp.f32 %v990_v22 }
 0x570   :  { %v993_v28 = vpop.xlane.xlu0 %992  ;;  %v1032_v15 = vpack.c.bf16 %v1020_v13, %v1019_v10  ;;  %v1021_v20 = vmul.f32 %v5539_v27, %v6280_v32 }
 0x571   :  { %v5541_v16 = vpop.eup %5540  ;;  %5550 = vrcp.f32 %v993_v28 }
 0x572   :  { %v1022_v23 = vmul.f32 %v5541_v16, %v6284_v45  ;;  %4989 = vmatmul.mubr.msk.bf16.vlgmr.msra.gmra.mrb[28].mxu0 %vm423_vm2, %v1032_v15 }
 0x573   :  { %v5543_v40 = vpop.eup %5542  ;;  %4999 = vmatpush3.bf16.msra.mxu0 %v417_v37  ;;  %5000 = vmatprep.mubr.msk.bf16.mxu0 %vm5784_vm1, %v5782_v30  ;;  %v5370_v37 = vld [vmem:[%s7352_s6] sm:$0xff]  }
 0x574   :  { %v5230_v48 = vpop.permute.xlu0 %5229  ;;  %v1033_v39 = vpack.c.bf16 %v1022_v23, %v1021_v20  ;;  %5010 = vmatprep.subr.bf16.mxu0 %v5782_v30  ;;  %v1023_v25 = vmul.f32 %v5543_v40, %v6288_v11  ;;  %v5371_v20 = vld [vmem:[%s7352_s6 + $0x8] sm:$0xff]  }
 0x575   :  { %v5545_v36 = vpop.eup %5544  ;;  %v5232_v49 = vunpack.i.h.bf16 %v5230_v48  ;;  %v5231_v24 = vunpack.i.l.bf16 %v5230_v48 }
 0x576   :  { %v1024_v32 = vmul.f32 %v5545_v36, %v6292_v51  ;;  %4995 = vmatmul.mubr.msk.bf16.vlgmr.msra.gmra.mrb[24].mxu1 %vm423_vm2, %v1033_v39 }
 0x577   :  { %v5547_v45 = vpop.eup %5546  ;;  %v418_v29 = vpack.c.bf16 %v5232_v49, %v5231_v24  ;;  %5006 = vmatprep.mubr.msk.bf16.mxu1 %vm5784_vm1, %v5782_v30  ;;  %v5372_v49 = vld [vmem:[%s7352_s6 + $0x10] sm:$0xff]  }
 0x578   :  { %v1034_v47 = vpack.c.bf16 %v1024_v32, %v1023_v25  ;;  %v1025_v34 = vmul.f32 %v5547_v45, %v6296_v60  ;;  %v5373_v45 = vld [vmem:[%s7352_s6 + $0x18] sm:$0xff]  }
 0x579   :  { %v5549_v58 = vpop.eup %5548  ;;  %5005 = vmatpush3.bf16.msra.mxu1 %v418_v29 }
 0x57a   :  { %v1026_v38 = vmul.f32 %v5549_v58, %v6300_v55  ;;  %5001 = vmatmul.mubr.msk.bf16.vlgmr.msra.gmra.mrb[32].mxu0 %vm423_vm2, %v1034_v47  ;;  %5016 = vmatprep.subr.bf16.mxu1 %v5370_v37 }
 0x57b   :  { %5012 = vmatprep.mubr.msk.bf16.mxu0 %vm5784_vm1, %v5782_v30  ;;  %v5551_v46 = vpop.eup %5550 }
 0x57c   :  { %v1035_v11 = vpack.c.bf16 %v1026_v38, %v1025_v34  ;;  %v1027_v55 = vmul.f32 %v5551_v46, %v6304_v57 }
 0x57e   :  { %5007 = vmatmul.mubr.msk.bf16.vlgmr.msra.gmra.mrb[28].mxu1 %vm423_vm2, %v1035_v11 }
 0x57f   :  { %5017 = vmatpush3.bf16.msra.mxu1 %v5370_v37 }
 0x580   :  { %5018 = vmatprep.subr.bf16.mxu1 %v5371_v20 }
 0x583   :  { %5019 = vmatpush3.bf16.msra.mxu1 %v5371_v20 }
 0x584   :  { %5020 = vmatprep.subr.bf16.mxu1 %v5372_v49 }
 0x587   :  { %5021 = vmatpush3.bf16.msra.mxu1 %v5372_v49 }
 0x588   :  { %5022 = vmatprep.subr.bf16.mxu1 %v5373_v45 }
 0x58b   :  { %5023 = vmatpush3.bf16.msra.mxu1 %v5373_v45 }
 0x5a7   :  { %v996_v51 = vpop.xlane.xlu1 %995 }
 0x5a8   :  { %5552 = vrcp.f32 %v996_v51 }
 0x5ab   :  { %v5235_v54 = vpop.permute.xlu1 %5234 }
 0x5ac   :  { %v5237_v26 = vunpack.i.h.bf16 %v5235_v54  ;;  %v5236_v33 = vunpack.i.l.bf16 %v5235_v54 }
 0x5ae   :  { %v419_v43 = vpack.c.bf16 %v5237_v26, %v5236_v33 }
 0x5b0   :  { %5011 = vmatpush3.bf16.msra.mxu0 %v419_v43 }
 0x5b2   :  { %v5553_v60 = vpop.eup %5552 }
 0x5b3   :  { %v1028_v31 = vmul.f32 %v5553_v60, %v6313_v5 }
 0x5b5   :  { %v1036_v61 = vpack.c.bf16 %v1028_v31, %v1027_v55 }
 0x5b7   :  { %5013 = vmatmul.mubr.msk.bf16.vlgmr.msra.gmra.mrb[36].mxu0 %vm423_vm2, %v1036_v61 }
 0x5b8   :  { %1729 = vmatprep.mubr.bf16.mxu0 %v5781_v41 }
 0x621   :  { %v6366_v42 = vpop.f32.mrb[16].mxu1 }
 0x622   :  { %v4972_v2 = vpop.f32.mrb[17].mxu1 }
 0x623   :  { %v6368_v17 = vpop.f32.mrb[18].mxu1 }
 0x624   :  { %v4973_v50 = vpop.f32.mrb[19].mxu1 }
 0x625   :  { %v6370_v52 = vpop.f32.mrb[24].mxu0 }
 0x626   :  { %v4978_v53 = vpop.f32.mrb[25].mxu0 }
 0x627   :  { %v6372_v56 = vpop.f32.mrb[26].mxu0 }
 0x628   :  { %v4979_v59 = vpop.f32.mrb[27].mxu0 }
 0x63d   :  { %v1162_v57 = vpop.f32.mrb[20].mxu1 }
 0x63e   :  { %v4984_v62 = vpop.f32.mrb[21].mxu1 }
 0x63f   :  { %v1165_v5 = vpop.f32.mrb[22].mxu1 }
 0x640   :  { %v5238_v0 = vpack.i.bf16 %v1165_v5, %v1162_v57  ;;  %v4985_v1 = vpop.f32.mrb[23].mxu1 }
 0x642   :  { %5239 = vrot.lane.b32.xlu0 %v5238_v0, %s7378_s14 }
 0x645   :  { %v1206_v4 = vpop.f32.mrb[28].mxu0 }
 0x646   :  { %v4990_v63 = vpop.f32.mrb[29].mxu0 }
 0x647   :  { %v1209_v6 = vpop.f32.mrb[30].mxu0 }
 0x648   :  { %v5243_v14 = vpack.i.bf16 %v1209_v6, %v1206_v4  ;;  %v4991_v9 = vpop.f32.mrb[31].mxu0 }
 0x649   :  { %v1250_v10 = vpop.f32.mrb[24].mxu1 }
 0x64a   :  { %5244 = vrot.lane.b32.xlu1 %v5243_v14, %s7378_s14  ;;  %v4996_v13 = vpop.f32.mrb[25].mxu1  ;;  %s7394_s14 = smov 48  }
 0x64b   :  { %v1253_v22 = vpop.f32.mrb[26].mxu1 }
 0x64c   :  { %v5248_v27 = vpack.i.bf16 %v1253_v22, %v1250_v10  ;;  %v4997_v28 = vpop.f32.mrb[27].mxu1 }
 0x64d   :  { %v1294_v15 = vpop.f32.mrb[32].mxu0 }
 0x64e   :  { %v5002_v16 = vpop.f32.mrb[33].mxu0  ;;  %5249 = vrot.lane.b32.xlu0 %v5248_v27, %s7376_s27 }
 0x64f   :  { %v1297_v23 = vpop.f32.mrb[34].mxu0 }
 0x650   :  { %v5253_v40 = vpack.i.bf16 %v1297_v23, %v1294_v15  ;;  %v5003_v48 = vpop.f32.mrb[35].mxu0 }
 0x651   :  { %v1338_v39 = vpop.f32.mrb[28].mxu1 }
 0x652   :  { %5254 = vrot.lane.b32.xlu1 %v5253_v40, %s7376_s27  ;;  %v5008_v36 = vpop.f32.mrb[29].mxu1 }
 0x653   :  { %v1341_v24 = vpop.f32.mrb[30].mxu1 }
 0x654   :  { %v5258_v25 = vpack.i.bf16 %v1341_v24, %v1338_v39  ;;  %v5009_v32 = vpop.f32.mrb[31].mxu1 }
 0x656   :  { %5259 = vrot.lane.b32.xlu0 %v5258_v25, %s7374_s15 }
 0x68a   :  { %v1382_v29 = vpop.f32.mrb[36].mxu0 }
 0x68b   :  { %v5014_v47 = vpop.f32.mrb[37].mxu0 }
 0x68c   :  { %v1385_v58 = vpop.f32.mrb[38].mxu0 }
 0x68d   :  { %v5263_v34 = vpack.i.bf16 %v1385_v58, %v1382_v29  ;;  %v5015_v38 = vpop.f32.mrb[39].mxu0 }
 0x68f   :  { %5264 = vrot.lane.b32.xlu1 %v5263_v34, %s7374_s15 }
 0x6b4   :  { %v5240_v11 = vpop.permute.xlu0 %5239 }
 0x6b5   :  { %v5242_v54 = vunpack.i.h.bf16 %v5240_v11  ;;  %v5241_v26 = vunpack.i.l.bf16 %v5240_v11 }
 0x6b7   :  { %v1438_v60 = vsel %vm423_vm2, %v6368_v17, %v5242_v54  ;;  %v1437_v55 = vsel %vm423_vm2, %v6366_v42, %v5241_v26 }
 0x6bc   :  { %v5245_v62 = vpop.permute.xlu1 %5244 }
 0x6bd   :  { %v5247_v0 = vunpack.i.h.bf16 %v5245_v62  ;;  %v5246_v17 = vunpack.i.l.bf16 %v5245_v62  ;;  %v5382_v62 = vld [vmem:[%s7356_s10 + $0x24] ss:$8 sps:$4 sm:$0xff]  }
 0x6bf   :  { %v1440_v63 = vsel %vm423_vm2, %v6372_v56, %v5247_v0  ;;  %v1439_v6 = vsel %vm423_vm2, %v6370_v52, %v5246_v17  ;;  %v4550_v56 = vld [vmem:[%s7353_s7] ss:$0 sm:$0xff]  ;;  %v5385_v0 = vld [vmem:[%s7356_s10 + $0x34] ss:$8 sps:$4 sm:$0xff]   ;;  %v5383_v17 = vld [vmem:[%s7356_s10 + $0x30] ss:$8 sps:$4 sm:$0xff]  }
 0x6c0   :  { %v5250_v51 = vpop.permute.xlu0 %5249 }
 0x6c1   :  { %v5252_v33 = vunpack.i.h.bf16 %v5250_v51  ;;  %v5251_v43 = vunpack.i.l.bf16 %v5250_v51 }
 0x6c3   :  { %v1443_v2 = vsel %vm1441_vm5, %v1438_v60, %v5252_v33  ;;  %v1442_v50 = vsel %vm1441_vm5, %v1437_v55, %v5251_v43 }
 0x6c4   :  { %v5255_v5 = vpop.permute.xlu1 %5254 }
 0x6c5   :  { %v5257_v1 = vunpack.i.h.bf16 %v5255_v5  ;;  %v5256_v4 = vunpack.i.l.bf16 %v5255_v5  ;;  %v5380_v5 = vld [vmem:[%s7356_s10 + $0x20] ss:$8 sps:$4 sm:$0xff]  }
 0x6c7   :  { %v1445_v10 = vsel %vm1441_vm5, %v1440_v63, %v5257_v1  ;;  %v1444_v13 = vsel %vm1441_vm5, %v1439_v6, %v5256_v4 }
 0x6c8   :  { %v5260_v46 = vpop.permute.xlu0 %5259 }
 0x6c9   :  { %v5262_v31 = vunpack.i.h.bf16 %v5260_v46  ;;  %v5261_v61 = vunpack.i.l.bf16 %v5260_v46 }
 0x6cb   :  { %v1448_v53 = vsel %vm1446_vm6, %v1443_v2, %v5262_v31  ;;  %v1447_v59 = vsel %vm1446_vm6, %v1442_v50, %v5261_v61  ;;  %v5376_v50 = vld [vmem:[%s7356_s10 + $0x4] ss:$8 sps:$4 sm:$0xff]  }
 0x6cc   :  { %v1459_v57 = vpack.c.bf16 %v1448_v53, %v1447_v59  ;;  %v5374_v53 = vld [vmem:[%s7356_s10] ss:$8 sps:$4 sm:$0xff]   ;;  %1697 = vmatprep.subr.bf16.mxu0 %v5376_v50  ;;  %v5379_v59 = vld [vmem:[%s7356_s10 + $0x14] ss:$8 sps:$4 sm:$0xff]  }
 0x6cd   :  { %1698 = vmatpush1.bf16.msra.mxu0 %v5374_v53  ;;  %v5399_v50 = vld [vmem:[%s7358_s12 + $0x30] sm:$0xff]   ;;  %v5400_v53 = vld [vmem:[%s7358_s12 + $0x78] sm:$0xff]  }
 0x6ce   :  { %5024 = vmatprep.mubr.msk.bf16.mxu1 %vm129_vm0, %v1459_v57  ;;  %v5377_v57 = vld [vmem:[%s7356_s10 + $0x10] ss:$8 sps:$4 sm:$0xff]   ;;  %1699 = vmatprep.subr.bf16.mxu0 %v5379_v59 }
 0x6cf   :  { %v5401_v59 = vld [vmem:[%s7358_s12 + $0x38] sm:$0xff]  }
 0x6d1   :  { %1700 = vmatpush1.bf16.msra.mxu0 %v5377_v57  ;;  %v1639_v57 = vld [vmem:[%s7357_s11] sm:$0x3] }
 0x6d2   :  { %1701 = vmatprep.subr.bf16.mxu0 %v5382_v62  ;;  %v1644_v62 = vrot.slane %v1639_v57, %v6040_v19 }
 0x6d5   :  { %1702 = vmatpush1.bf16.msra.mxu0 %v5380_v5  ;;  %v1648_v5 = vrot.slane %v1639_v57, %v6046_v21 }
 0x6d6   :  { %1703 = vmatprep.subr.bf16.mxu0 %v5385_v0 }
 0x6d9   :  { %1704 = vmatpush1.bf16.msra.mxu0 %v5383_v17 }
 0x701   :  { %v5265_v42 = vpop.permute.xlu1 %5264 }
 0x702   :  { %v5267_v14 = vunpack.i.h.bf16 %v5265_v42  ;;  %v5266_v9 = vunpack.i.l.bf16 %v5265_v42 }
 0x704   :  { %v1450_v22 = vsel %vm1446_vm6, %v1445_v10, %v5267_v14  ;;  %v1449_v27 = vsel %vm1446_vm6, %v1444_v13, %v5266_v9 }
 0x705   :  { %v1460_v28 = vpack.c.bf16 %v1450_v22, %v1449_v27 }
 0x707   :  { %5025 = vmatmul.mubr.msk.bf16.vlgmr.msra.gmra.mrb[32].mxu1 %vm129_vm0, %v1460_v28 }
 0x7da   :  { %v5026_v15 = vpop.f32.mrb[32].mxu1 }
 0x7db   :  { %v1525_v16 = vpop.f32.mrb[33].mxu1  ;;  %v1542_v52 = vadd.f32 %v5026_v15, %v5969_v7 }
 0x7dc   :  { %v1540_v37 = vadd.f32 %v1525_v16, %v5958_v3  ;;  %v5027_v20 = vpop.f32.mrb[34].mxu1 }
 0x7dd   :  { %v1528_v23 = vpop.f32.mrb[35].mxu1  ;;  %v6418_v39 = vadd.f32 %v4550_v56, %v1542_v52  ;;  %v1543_v36 = vadd.f32 %v5027_v20, %v5981_v12 }
 0x7de   :  { %v6415_v40 = vadd.f32 %v4550_v56, %v1540_v37  ;;  %v1541_v48 = vadd.f32 %v1528_v23, %v5971_v8 }
 0x7df   :  { %v6427_v3 = vadd.f32 %v4550_v56, %v1543_v36  ;;  %v1563_v25 = vsel %vm129_vm0, %v6418_v39, 0.0 }
 0x7e0   :  { %v6421_v49 = vadd.f32 %v4550_v56, %v1541_v48  ;;  %v1557_v24 = vsel %vm129_vm0, %v6415_v40, 0.0  ;;  %v4551_v56 = vld [vmem:[#allocation2] ss:$0 sm:$0xff] }
 0x7e1   :  { %1558 = vadd.xlane.f32.xlu0 %v1557_v24  ;;  %v1566_v8 = vsel %vm129_vm0, %v6427_v3, 0.0  ;;  %v4552_v48 = vld [vmem:[%s7355_s9] ss:$0 sm:$0xff] }
 0x7e2   :  { %v1560_v7 = vsel %vm129_vm0, %v6421_v49, 0.0 }
 0x7e3   :  { %1561 = vadd.xlane.f32.xlu1 %v1560_v7 }
 0x7e5   :  { %1564 = vadd.xlane.f32.xlu0 %v1563_v25 }
 0x7e9   :  { %1567 = vadd.xlane.f32.xlu0 %v1566_v8 }
 0x86e   :  { %v1559_v12 = vpop.xlane.xlu0 %1558 }
 0x86f   :  { %v1569_v32 = vmul.f32 0.015625, %v1559_v12 }
 0x870   :  { %v1562_v45 = vpop.xlane.xlu1 %1561 }
 0x871   :  { %v1573_v29 = vsub.f32 %v6415_v40, %v1569_v32  ;;  %v1570_v47 = vmul.f32 0.015625, %v1562_v45 }
 0x872   :  { %v1565_v58 = vpop.xlane.xlu0 %1564 }
 0x873   :  { %v1574_v34 = vsub.f32 %v6421_v49, %v1570_v47  ;;  %v1571_v38 = vmul.f32 0.015625, %v1565_v58  ;;  %v1577_v11 = vmul.f32 %v1573_v29, %v1573_v29 }
 0x875   :  { %v1575_v51 = vsub.f32 %v6418_v39, %v1571_v38  ;;  %v1581_v54 = vsel %vm129_vm0, %v1577_v11, 0.0  ;;  %v1578_v26 = vmul.f32 %v1574_v34, %v1574_v34  ;;  %v5386_v38 = vld [vmem:[%s7358_s12 + $0x40] sm:$0xff]  }
 0x876   :  { %1582 = vadd.xlane.f32.xlu0 %v1581_v54  ;;  %v1568_v33 = vpop.xlane.xlu0 %1567  ;;  %v5387_v11 = vld [vmem:[%s7358_s12] sm:$0xff]   ;;  %4786 = vmatprep.subr.bf16.mxu1 %v5386_v38  ;;  %v5389_v54 = vld [vmem:[%s7358_s12 + $0x8] sm:$0xff]  }
 0x877   :  { %v1572_v43 = vmul.f32 0.015625, %v1568_v33  ;;  %v1584_v46 = vsel %vm129_vm0, %v1578_v26, 0.0  ;;  %v1579_v60 = vmul.f32 %v1575_v51, %v1575_v51  ;;  %4787 = vmatpush3.bf16.msra.mxu1 %v5387_v11  ;;  %v5390_v26 = vld [vmem:[%s7358_s12 + $0x50] sm:$0xff]  }
 0x878   :  { %1585 = vadd.xlane.f32.xlu1 %v1584_v46  ;;  %v5391_v33 = vld [vmem:[%s7358_s12 + $0x10] sm:$0xff]   ;;  %v5393_v46 = vld [vmem:[%s7358_s12 + $0x18] sm:$0xff]  }
 0x879   :  { %v1576_v55 = vsub.f32 %v6427_v3, %v1572_v43  ;;  %v1587_v31 = vsel %vm129_vm0, %v1579_v60, 0.0  ;;  %v5392_v43 = vld [vmem:[%s7358_s12 + $0x58] sm:$0xff]   ;;  %v5394_v60 = vld [vmem:[%s7358_s12 + $0x60] sm:$0xff]  }
 0x87a   :  { %1588 = vadd.xlane.f32.xlu0 %v1587_v31  ;;  %v5396_v31 = vld [vmem:[%s7358_s12 + $0x68] sm:$0xff]  }
 0x87b   :  { %v1580_v61 = vmul.f32 %v1576_v55, %v1576_v55 }
 0x87d   :  { %v1590_v2 = vsel %vm129_vm0, %v1580_v61, 0.0  ;;  %v5397_v61 = vld [vmem:[%s7358_s12 + $0x28] sm:$0xff]  }
 0x87e   :  { %1591 = vadd.xlane.f32.xlu1 %v1590_v2  ;;  %v5398_v2 = vld [vmem:[%s7358_s12 + $0x70] sm:$0xff]  }
 0x903   :  { %v1583_v1 = vpop.xlane.xlu0 %1582 }
 0x904   :  { %v1593_v4 = vmul.f32 0.015625, %v1583_v1 }
 0x905   :  { %v1586_v42 = vpop.xlane.xlu1 %1585 }
 0x906   :  { %v1597_v63 = vadd.f32 1e-05, %v1593_v4  ;;  %v1594_v6 = vmul.f32 0.015625, %v1586_v42 }
 0x907   :  { %v1589_v14 = vpop.xlane.xlu0 %1588 }
 0x908   :  { %5554 = vrsqrt.f32 %v1597_v63  ;;  %v1598_v9 = vadd.f32 1e-05, %v1594_v6  ;;  %v1595_v10 = vmul.f32 0.015625, %v1589_v14 }
 0x90a   :  { %5556 = vrsqrt.f32 %v1598_v9  ;;  %v1599_v13 = vadd.f32 1e-05, %v1595_v10 }
 0x90b   :  { %v1592_v22 = vpop.xlane.xlu1 %1591 }
 0x90c   :  { %5558 = vrsqrt.f32 %v1599_v13  ;;  %v1596_v27 = vmul.f32 0.015625, %v1592_v22 }
 0x90e   :  { %v1600_v28 = vadd.f32 1e-05, %v1596_v27 }
 0x910   :  { %5560 = vrsqrt.f32 %v1600_v28 }
 0x912   :  { %v5555_v15 = vpop.eup %5554 }
 0x913   :  { %v1605_v16 = vmul.f32 %v5555_v15, %v1573_v29 }
 0x914   :  { %v5557_v52 = vpop.eup %5556 }
 0x915   :  { %v1615_v37 = vmul.f32 %v4551_v56, %v1605_v16  ;;  %v1606_v20 = vmul.f32 %v5557_v52, %v1574_v34 }
 0x916   :  { %v5559_v23 = vpop.eup %5558 }
 0x917   :  { %v1616_v36 = vmul.f32 %v4551_v56, %v1606_v20  ;;  %v1607_v24 = vmul.f32 %v5559_v23, %v1575_v51  ;;  %v1625_v7 = vadd.f32 %v4552_v48, %v1615_v37  ;;  %v5388_v51 = vld [vmem:[%s7358_s12 + $0x48] sm:$0xff]  }
 0x918   :  { %4788 = vmatprep.subr.bf16.mxu1 %v5388_v51 }
 0x919   :  { %v1626_v25 = vadd.f32 %v4552_v48, %v1616_v36  ;;  %v1617_v45 = vmul.f32 %v4551_v56, %v1607_v24  ;;  %4789 = vmatpush3.bf16.msra.mxu1 %v5389_v54 }
 0x91a   :  { %v5561_v8 = vpop.eup %5560  ;;  %4790 = vmatprep.subr.bf16.mxu1 %v5390_v26 }
 0x91b   :  { %v1608_v12 = vmul.f32 %v5561_v8, %v1576_v55  ;;  %v1637_v32 = vpack.c.bf16 %v1626_v25, %v1625_v7  ;;  %v1627_v58 = vadd.f32 %v4552_v48, %v1617_v45  ;;  %v5395_v55 = vld [vmem:[%s7358_s12 + $0x20] sm:$0xff]  }
 0x91d   :  { %4561 = vmatmul.mubr.msk.bf16.vlgmr.msra.gmra.mrb[40].mxu0 %vm129_vm0, %v1637_v32  ;;  %v1618_v47 = vmul.f32 %v4551_v56, %v1608_v12  ;;  %4791 = vmatpush3.bf16.msra.mxu1 %v5391_v33 }
 0x91e   :  { %1739 = vmatprep.mubr.bf16.mxu0 %v5781_v41  ;;  %4792 = vmatprep.subr.bf16.mxu1 %v5392_v43 }
 0x91f   :  { %v1628_v29 = vadd.f32 %v4552_v48, %v1618_v47 }
 0x921   :  { %v1638_v34 = vpack.c.bf16 %v1628_v29, %v1627_v58  ;;  %4793 = vmatpush3.bf16.msra.mxu1 %v5393_v46 }
 0x922   :  { %4794 = vmatprep.subr.bf16.mxu1 %v5394_v60 }
 0x925   :  { %4562 = vmatmul.mubr.msk.bf16.gmra.mrb[44].mxu0 %vm129_vm0, %v1638_v34  ;;  %4795 = vmatpush3.bf16.msra.mxu1 %v5395_v55 }
 0x926   :  { %2196 = vmatprep.mubr.bf16.mxu0 %v5781_v41  ;;  %4796 = vmatprep.subr.bf16.mxu1 %v5396_v31 }
 0x929   :  { %4797 = vmatpush3.bf16.msra.mxu1 %v5397_v61 }
 0x92a   :  { %4798 = vmatprep.subr.bf16.mxu1 %v5398_v2 }
 0x92d   :  { %4799 = vmatpush3.bf16.msra.mxu1 %v5399_v50 }
 0x92e   :  { %4800 = vmatprep.subr.bf16.mxu1 %v5400_v53 }
 0x931   :  { %4801 = vmatpush3.bf16.msra.mxu1 %v5401_v59 }
 0x932   :  { %5040 = vmatprep.subr.bf16.mxu1 %v5782_v30 }
 0x9f0   :  { %v1731_v0 = vpop.f32.mrb[40].mxu0 }
 0x9f1   :  { %v6526_v17 = vadd.f32 %v1731_v0, %v1644_v62  ;;  %v1733_v1 = vpop.f32.mrb[41].mxu0 }
 0x9f2   :  { %v6528_v4 = vadd.f32 %v1733_v1, %v1648_v5  ;;  %v1735_v42 = vpop.f32.mrb[42].mxu0 }
 0x9f3   :  { %v1750_v63 = vmul.f32 %v6526_v17, %v6526_v17  ;;  %v6532_v6 = vadd.f32 %v1735_v42, %v1644_v62  ;;  %v1737_v14 = vpop.f32.mrb[43].mxu0 }
 0x9f4   :  { %v1751_v9 = vmul.f32 %v6528_v4, %v6528_v4  ;;  %v6536_v10 = vadd.f32 %v1737_v14, %v1648_v5 }
 0x9f5   :  { %v1758_v13 = vmul.f32 %v1750_v63, %v6526_v17  ;;  %v1752_v22 = vmul.f32 %v6532_v6, %v6532_v6 }
 0x9f6   :  { %v1759_v27 = vmul.f32 %v1751_v9, %v6528_v4  ;;  %v1753_v28 = vmul.f32 %v6536_v10, %v6536_v10 }
 0x9f7   :  { %v1766_v15 = vmul.f32 0.044715, %v1758_v13  ;;  %v1760_v56 = vmul.f32 %v1752_v22, %v6532_v6 }
 0x9f8   :  { %v1767_v16 = vmul.f32 0.044715, %v1759_v27  ;;  %v1761_v52 = vmul.f32 %v1753_v28, %v6536_v10  ;;  %v1741_v37 = vpop.f32.mrb[44].mxu0 }
 0x9f9   :  { %v1774_v20 = vadd.f32 %v1766_v15, %v6526_v17  ;;  %v1768_v23 = vmul.f32 0.044715, %v1760_v56  ;;  %v6547_v48 = vadd.f32 %v1741_v37, %v1644_v62  ;;  %v1743_v36 = vpop.f32.mrb[45].mxu0 }
 0x9fa   :  { %v1775_v24 = vadd.f32 %v1767_v16, %v6528_v4  ;;  %v1769_v7 = vmul.f32 0.044715, %v1761_v52  ;;  %v6550_v25 = vadd.f32 %v1743_v36, %v1648_v5  ;;  %v1745_v8 = vpop.f32.mrb[46].mxu0 }
 0x9fb   :  { %v1782_v12 = vmul.f32 0.7978846, %v1774_v20  ;;  %v1776_v32 = vadd.f32 %v1768_v23, %v6532_v6  ;;  %v1754_v45 = vmul.f32 %v6547_v48, %v6547_v48  ;;  %v6555_v47 = vadd.f32 %v1745_v8, %v1644_v62  ;;  %v1747_v29 = vpop.f32.mrb[47].mxu0 }
 0x9fc   :  { %v1783_v58 = vmul.f32 0.7978846, %v1775_v24  ;;  %v1777_v34 = vadd.f32 %v1769_v7, %v6536_v10  ;;  %v1755_v38 = vmul.f32 %v6550_v25, %v6550_v25  ;;  %v6560_v11 = vadd.f32 %v1747_v29, %v1648_v5 }
 0x9fd   :  { %5562 = vtanh.f32 %v1782_v12  ;;  %v1784_v51 = vmul.f32 0.7978846, %v1776_v32  ;;  %v1762_v54 = vmul.f32 %v1754_v45, %v6547_v48  ;;  %v1756_v26 = vmul.f32 %v6555_v47, %v6555_v47 }
 0x9fe   :  { %5564 = vtanh.f32 %v1783_v58  ;;  %v1785_v33 = vmul.f32 0.7978846, %v1777_v34  ;;  %v1763_v43 = vmul.f32 %v1755_v38, %v6550_v25  ;;  %v1757_v46 = vmul.f32 %v6560_v11, %v6560_v11 }
 0x9ff   :  { %5566 = vtanh.f32 %v1784_v51  ;;  %v1770_v60 = vmul.f32 0.044715, %v1762_v54  ;;  %v1764_v55 = vmul.f32 %v1756_v26, %v6555_v47 }
 0xa00   :  { %5568 = vtanh.f32 %v1785_v33  ;;  %v1771_v31 = vmul.f32 0.044715, %v1763_v43  ;;  %v1765_v61 = vmul.f32 %v1757_v46, %v6560_v11 }
 0xa01   :  { %v1778_v2 = vadd.f32 %v1770_v60, %v6547_v48  ;;  %v1772_v50 = vmul.f32 0.044715, %v1764_v55 }
 0xa02   :  { %v1779_v53 = vadd.f32 %v1771_v31, %v6550_v25  ;;  %v1773_v59 = vmul.f32 0.044715, %v1765_v61 }
 0xa03   :  { %v1786_v57 = vmul.f32 0.7978846, %v1778_v2  ;;  %v1780_v62 = vadd.f32 %v1772_v50, %v6555_v47 }
 0xa04   :  { %v1787_v5 = vmul.f32 0.7978846, %v1779_v53  ;;  %v1781_v0 = vadd.f32 %v1773_v59, %v6560_v11 }
 0xa05   :  { %5570 = vtanh.f32 %v1786_v57  ;;  %v1788_v1 = vmul.f32 0.7978846, %v1780_v62 }
 0xa06   :  { %5572 = vtanh.f32 %v1787_v5  ;;  %v1789_v42 = vmul.f32 0.7978846, %v1781_v0 }
 0xa07   :  { %v5563_v63 = vpop.eup %5562  ;;  %5574 = vtanh.f32 %v1788_v1 }
 0xa08   :  { %v5565_v14 = vpop.eup %5564  ;;  %v1798_v9 = vadd.f32 1.0, %v5563_v63  ;;  %5576 = vtanh.f32 %v1789_v42 }
 0xa09   :  { %v5567_v13 = vpop.eup %5566  ;;  %v1799_v22 = vadd.f32 1.0, %v5565_v14 }
 0xa0a   :  { %v5569_v27 = vpop.eup %5568  ;;  %v1806_v28 = vmul.f32 0.5, %v1798_v9  ;;  %v1800_v15 = vadd.f32 1.0, %v5567_v13 }
 0xa0b   :  { %v1801_v56 = vadd.f32 1.0, %v5569_v27  ;;  %v1807_v16 = vmul.f32 0.5, %v1799_v22 }
 0xa0c   :  { %v1808_v52 = vmul.f32 0.5, %v1800_v15  ;;  %v1814_v20 = vmul.f32 %v1806_v28, %v6526_v17 }
 0xa0d   :  { %v1809_v37 = vmul.f32 0.5, %v1801_v56  ;;  %v1815_v24 = vmul.f32 %v1807_v16, %v6528_v4 }
 0xa0e   :  { %v1816_v23 = vmul.f32 %v1808_v52, %v6532_v6 }
 0xa0f   :  { %v5571_v36 = vpop.eup %5570  ;;  %v1817_v7 = vmul.f32 %v1809_v37, %v6536_v10 }
 0xa10   :  { %v5573_v8 = vpop.eup %5572  ;;  %v1854_v12 = vpack.c.bf16 %v1816_v23, %v1814_v20  ;;  %v1802_v32 = vadd.f32 1.0, %v5571_v36 }
 0xa11   :  { %v5575_v45 = vpop.eup %5574  ;;  %v1855_v29 = vpack.c.bf16 %v1817_v7, %v1815_v24  ;;  %v1803_v58 = vadd.f32 1.0, %v5573_v8 }
 0xa12   :  { %v5577_v34 = vpop.eup %5576  ;;  %v1804_v38 = vadd.f32 1.0, %v5575_v45  ;;  %v1810_v51 = vmul.f32 0.5, %v1802_v32 }
 0xa13   :  { %1986 = vmatprep.mubr.bf16.mxu1 %v1855_v29  ;;  %v1805_v54 = vadd.f32 1.0, %v5577_v34  ;;  %v1811_v26 = vmul.f32 0.5, %v1803_v58 }
 0xa14   :  { %1987 = vmatmul.mubr.bf16.vlgmr.msra.gmra.mrb[36].mxu1 %v1854_v12  ;;  %v1812_v17 = vmul.f32 0.5, %v1804_v38  ;;  %v1818_v33 = vmul.f32 %v1810_v51, %v6547_v48  ;;  %v4579_v48 = vld [vmem:[%s7359_s13] ss:$0 sm:$0xff]  ;;  %v5404_v38 = vld [vmem:[%s7388_s23 + $0x44] ss:$8 sps:$4 sm:$0xff]  }
 0xa15   :  { %v1813_v6 = vmul.f32 0.5, %v1805_v54  ;;  %v1819_v10 = vmul.f32 %v1811_v26, %v6550_v25  ;;  %v5402_v51 = vld [vmem:[%s7388_s23 + $0x40] ss:$8 sps:$4 sm:$0xff]   ;;  %2164 = vmatprep.subr.bf16.mxu0 %v5404_v38  ;;  %v5407_v54 = vld [vmem:[%s7388_s23 + $0x54] ss:$8 sps:$4 sm:$0xff]  }
 0xa16   :  { %v1820_v4 = vmul.f32 %v1812_v17, %v6555_v47  ;;  %2165 = vmatpush1.bf16.msra.mxu0 %v5402_v51  ;;  %v5405_v26 = vld [vmem:[%s7388_s23 + $0x50] ss:$8 sps:$4 sm:$0xff]   ;;  %v5410_v17 = vld [vmem:[%s7388_s23 + $0x64] ss:$8 sps:$4 sm:$0xff]  }
 0xa17   :  { %v1821_v43 = vmul.f32 %v1813_v6, %v6560_v11  ;;  %2166 = vmatprep.subr.bf16.mxu0 %v5407_v54  ;;  %v5408_v6 = vld [vmem:[%s7388_s23 + $0x60] ss:$8 sps:$4 sm:$0xff]  }
 0xa18   :  { %v1856_v46 = vpack.c.bf16 %v1820_v4, %v1818_v33  ;;  %v5413_v33 = vld [vmem:[%s7388_s23 + $0x74] ss:$8 sps:$4 sm:$0xff]   ;;  %v5411_v4 = vld [vmem:[%s7388_s23 + $0x70] ss:$8 sps:$4 sm:$0xff]  }
 0xa19   :  { %v1857_v60 = vpack.c.bf16 %v1821_v43, %v1819_v10 }
 0xa1a   :  { %2167 = vmatpush1.bf16.msra.mxu0 %v5405_v26 }
 0xa1b   :  { %1994 = vmatprep.mubr.bf16.mxu1 %v1857_v60  ;;  %2168 = vmatprep.subr.bf16.mxu0 %v5410_v17 }
 0xa1c   :  { %1995 = vmatmul.mubr.bf16.gmra.mrb[40].mxu1 %v1856_v46 }
 0xa1d   :  { %5042 = vmatprep.mubr.msk.bf16.mxu1 %vm5784_vm1, %v5782_v30 }
 0xa1e   :  { %2169 = vmatpush1.bf16.msra.mxu0 %v5408_v6 }
 0xa1f   :  { %2170 = vmatprep.subr.bf16.mxu0 %v5413_v33 }
 0xa22   :  { %2171 = vmatpush1.bf16.msra.mxu0 %v5411_v4 }
 0xa23   :  { %5028 = vmatprep.subr.bf16.mxu0 %v5782_v30 }
 0xae7   :  { %v4802_v55 = vpop.f32.mrb[36].mxu1 }
 0xae8   :  { %v4803_v31 = vpop.f32.mrb[37].mxu1 }
 0xae9   :  { %v4804_v61 = vadd.f32 %v4803_v31, %v4802_v55  ;;  %v4805_v2 = vpop.f32.mrb[38].mxu1 }
 0xaea   :  { %v4806_v47 = vpop.f32.mrb[39].mxu1 }
 0xaeb   :  { %v2003_v25 = vadd.f32 %v4804_v61, %v6415_v40  ;;  %v4807_v50 = vadd.f32 %v4806_v47, %v4805_v2 }
 0xaed   :  { %v6588_v11 = vadd.f32 %v4579_v48, %v2003_v25  ;;  %v2004_v53 = vadd.f32 %v4807_v50, %v6421_v49 }
 0xaef   :  { %v6591_v59 = vadd.f32 %v4579_v48, %v2004_v53  ;;  %v4808_v57 = vpop.f32.mrb[40].mxu1  ;;  %v2022_v62 = vsel %vm129_vm0, %v6588_v11, 0.0 }
 0xaf0   :  { %2023 = vadd.xlane.f32.xlu0 %v2022_v62  ;;  %v4809_v5 = vpop.f32.mrb[41].mxu1 }
 0xaf1   :  { %v4810_v0 = vadd.f32 %v4809_v5, %v4808_v57  ;;  %v4811_v1 = vpop.f32.mrb[42].mxu1  ;;  %v2025_v42 = vsel %vm129_vm0, %v6591_v59, 0.0  ;;  %v4582_v57 = vld [vmem:[%s7389_s24 + $0x1] ss:$0 sm:$0xff] }
 0xaf2   :  { %2026 = vadd.xlane.f32.xlu1 %v2025_v42  ;;  %v4812_v40 = vpop.f32.mrb[43].mxu1  ;;  %v4583_v42 = vld [vmem:[%s7390_s3 + $0x1] ss:$0 sm:$0xff] }
 0xaf3   :  { %v2005_v63 = vadd.f32 %v4810_v0, %v6418_v39  ;;  %v4813_v14 = vadd.f32 %v4812_v40, %v4811_v1 }
 0xaf5   :  { %v6598_v9 = vadd.f32 %v4579_v48, %v2005_v63  ;;  %v2006_v49 = vadd.f32 %v4813_v14, %v6427_v3 }
 0xaf7   :  { %v6601_v13 = vadd.f32 %v4579_v48, %v2006_v49  ;;  %v2028_v22 = vsel %vm129_vm0, %v6598_v9, 0.0 }
 0xaf8   :  { %2029 = vadd.xlane.f32.xlu0 %v2028_v22 }
 0xaf9   :  { %v2031_v27 = vsel %vm129_vm0, %v6601_v13, 0.0 }
 0xafa   :  { %2032 = vadd.xlane.f32.xlu1 %v2031_v27 }
 0xb7d   :  { %v2024_v28 = vpop.xlane.xlu0 %2023 }
 0xb7e   :  { %v2034_v15 = vmul.f32 0.015625, %v2024_v28 }
 0xb7f   :  { %v2027_v56 = vpop.xlane.xlu1 %2026 }
 0xb80   :  { %v2038_v39 = vsub.f32 %v6588_v11, %v2034_v15  ;;  %v2035_v16 = vmul.f32 0.015625, %v2027_v56 }
 0xb82   :  { %v2039_v52 = vsub.f32 %v6591_v59, %v2035_v16  ;;  %v2042_v37 = vmul.f32 %v2038_v39, %v2038_v39 }
 0xb84   :  { %v2046_v3 = vsel %vm129_vm0, %v2042_v37, 0.0  ;;  %v2043_v20 = vmul.f32 %v2039_v52, %v2039_v52 }
 0xb85   :  { %2047 = vadd.xlane.f32.xlu0 %v2046_v3  ;;  %v2030_v23 = vpop.xlane.xlu0 %2029  ;;  %v4592_v3 = vld [vmem:[%s7391_s28 + $0x2] sm:$0x3]  ;;  %s7392_s28 = smov 16  }
 0xb86   :  { %v2036_v36 = vmul.f32 0.015625, %v2030_v23  ;;  %v2049_v24 = vsel %vm129_vm0, %v2043_v20, 0.0  ;;  %v2111_v20 = vrot.slane %v4592_v3, %v6040_v19 }
 0xb87   :  { %2050 = vadd.xlane.f32.xlu1 %v2049_v24  ;;  %v2033_v7 = vpop.xlane.xlu1 %2032 }
 0xb88   :  { %v2040_v8 = vsub.f32 %v6598_v9, %v2036_v36  ;;  %v2037_v12 = vmul.f32 0.015625, %v2033_v7  ;;  %v2115_v36 = vrot.slane %v4592_v3, %v6046_v21 }
 0xb8a   :  { %v2041_v32 = vsub.f32 %v6601_v13, %v2037_v12  ;;  %v2044_v45 = vmul.f32 %v2040_v8, %v2040_v8 }
 0xb8c   :  { %v2052_v29 = vsel %vm129_vm0, %v2044_v45, 0.0  ;;  %v2045_v58 = vmul.f32 %v2041_v32, %v2041_v32 }
 0xb8d   :  { %2053 = vadd.xlane.f32.xlu0 %v2052_v29 }
 0xb8e   :  { %v2055_v34 = vsel %vm129_vm0, %v2045_v58, 0.0 }
 0xb8f   :  { %2056 = vadd.xlane.f32.xlu1 %v2055_v34 }
 0xc12   :  { %v2048_v10 = vpop.xlane.xlu0 %2047 }
 0xc13   :  { %v2058_v43 = vmul.f32 0.015625, %v2048_v10 }
 0xc14   :  { %v2051_v46 = vpop.xlane.xlu1 %2050 }
 0xc15   :  { %v2062_v60 = vadd.f32 1e-05, %v2058_v43  ;;  %v2059_v55 = vmul.f32 0.015625, %v2051_v46 }
 0xc17   :  { %5578 = vrsqrt.f32 %v2062_v60  ;;  %v2063_v31 = vadd.f32 1e-05, %v2059_v55 }
 0xc19   :  { %5580 = vrsqrt.f32 %v2063_v31 }
 0xc1a   :  { %v2054_v61 = vpop.xlane.xlu0 %2053 }
 0xc1b   :  { %v2060_v2 = vmul.f32 0.015625, %v2054_v61 }
 0xc1c   :  { %v2057_v48 = vpop.xlane.xlu1 %2056 }
 0xc1d   :  { %v2064_v47 = vadd.f32 1e-05, %v2060_v2  ;;  %v2061_v25 = vmul.f32 0.015625, %v2057_v48 }
 0xc1f   :  { %5582 = vrsqrt.f32 %v2064_v47  ;;  %v2065_v50 = vadd.f32 1e-05, %v2061_v25 }
 0xc21   :  { %v5579_v53 = vpop.eup %5578  ;;  %5584 = vrsqrt.f32 %v2065_v50 }
 0xc22   :  { %v2070_v62 = vmul.f32 %v5579_v53, %v2038_v39 }
 0xc23   :  { %v5581_v5 = vpop.eup %5580 }
 0xc24   :  { %v2080_v0 = vmul.f32 %v4582_v57, %v2070_v62  ;;  %v2071_v1 = vmul.f32 %v5581_v5, %v2039_v52 }
 0xc26   :  { %v2081_v40 = vmul.f32 %v4582_v57, %v2071_v1  ;;  %v2090_v63 = vadd.f32 %v4583_v42, %v2080_v0 }
 0xc28   :  { %v2091_v14 = vadd.f32 %v4583_v42, %v2081_v40 }
 0xc29   :  { %v5583_v49 = vpop.eup %5582 }
 0xc2a   :  { %v2072_v22 = vmul.f32 %v5583_v49, %v2040_v8  ;;  %v2103_v27 = vpack.c.bf16 %v2091_v14, %v2090_v63 }
 0xc2b   :  { %v5585_v28 = vpop.eup %5584 }
 0xc2c   :  { %v2073_v15 = vmul.f32 %v5585_v28, %v2041_v32  ;;  %4601 = vmatmul.mubr.msk.bf16.vlgmr.msra.gmra.mrb[48].mxu0 %vm129_vm0, %v2103_v27  ;;  %v2082_v56 = vmul.f32 %v4582_v57, %v2072_v22 }
 0xc2d   :  { %2206 = vmatprep.mubr.bf16.mxu0 %v5781_v41 }
 0xc2e   :  { %v2083_v39 = vmul.f32 %v4582_v57, %v2073_v15  ;;  %v2092_v16 = vadd.f32 %v4583_v42, %v2082_v56 }
 0xc30   :  { %v2093_v52 = vadd.f32 %v4583_v42, %v2083_v39 }
 0xc32   :  { %v2104_v37 = vpack.c.bf16 %v2093_v52, %v2092_v16 }
 0xc34   :  { %4602 = vmatmul.mubr.msk.bf16.gmra.mrb[52].mxu0 %vm129_vm0, %v2104_v37 }
 0xc35   :  { %5030 = vmatprep.mubr.msk.bf16.mxu0 %vm5784_vm1, %v5782_v30 }
 0xcff   :  { %v2198_v23 = vpop.f32.mrb[48].mxu0 }
 0xd00   :  { %v2200_v24 = vpop.f32.mrb[49].mxu0  ;;  %v2199_v8 = vadd.f32 %v2198_v23, %v2111_v20 }
 0xd01   :  { %v2202_v7 = vpop.f32.mrb[50].mxu0  ;;  %v6656_v45 = vadd.f32 %v2200_v24, %v2115_v36 }
 0xd02   :  { %v2203_v12 = vadd.f32 %v2202_v7, %v2111_v20  ;;  %v2204_v32 = vpop.f32.mrb[51].mxu0 }
 0xd03   :  { %v6658_v29 = vadd.f32 %v2204_v32, %v2115_v36 }
 0xd04   :  { %v5268_v58 = vpack.i.bf16 %v2203_v12, %v2199_v8  ;;  %v2257_v34 = vpack.c.bf16 %v2203_v12, %v2199_v8 }
 0xd05   :  { %v2305_v38 = vpack.c.bf16 %v6658_v29, %v6656_v45  ;;  %v6664_v51 = vpack.i.bf16 %v6658_v29, %v6656_v45 }
 0xd06   :  { %5269 = vrot.lane.b32.xlu0 %v5268_v58, %s5783_s29 }
 0xd07   :  { %v2208_v54 = vpop.f32.mrb[52].mxu0 }
 0xd08   :  { %v2210_v26 = vpop.f32.mrb[53].mxu0  ;;  %v2209_v6 = vadd.f32 %v2208_v54, %v2111_v20 }
 0xd09   :  { %v2212_v17 = vpop.f32.mrb[54].mxu0  ;;  %v6668_v10 = vadd.f32 %v2210_v26, %v2115_v36 }
 0xd0a   :  { %v2213_v33 = vadd.f32 %v2212_v17, %v2111_v20  ;;  %5289 = vrot.lane.b32.xlu0 %v5268_v58, %s5785_s0  ;;  %v2214_v4 = vpop.f32.mrb[55].mxu0 }
 0xd0b   :  { %v6670_v43 = vadd.f32 %v2214_v4, %v2115_v36 }
 0xd0c   :  { %v5273_v46 = vpack.i.bf16 %v2213_v33, %v2209_v6  ;;  %v2258_v60 = vpack.c.bf16 %v2213_v33, %v2209_v6 }
 0xd0d   :  { %v2306_v55 = vpack.c.bf16 %v6670_v43, %v6668_v10  ;;  %v6676_v31 = vpack.i.bf16 %v6670_v43, %v6668_v10 }
 0xd0e   :  { %2314 = vrot.lane.b32.xlu0 %v2257_v34, %s5786_s4  ;;  %5274 = vrot.lane.b32.xlu1 %v5273_v46, %s5783_s29 }
 0xd12   :  { %5279 = vrot.lane.b32.xlu1 %v5268_v58, %s5787_s8 }
 0xd16   :  { %5284 = vrot.lane.b32.xlu1 %v5273_v46, %s5787_s8 }
 0xd1a   :  { %5294 = vrot.lane.b32.xlu1 %v5273_v46, %s5785_s0 }
 0xd1e   :  { %2364 = vrot.lane.b32.xlu1 %v2258_v60, %s5786_s4 }
 0xd78   :  { %v5270_v61 = vpop.permute.xlu0 %5269 }
 0xd79   :  { %v5272_v2 = vunpack.i.h.bf16 %v5270_v61  ;;  %v5271_v48 = vunpack.i.l.bf16 %v5270_v61 }
 0xd7b   :  { %v2259_v47 = vpack.c.bf16 %v5272_v2, %v5271_v48 }
 0xd7c   :  { %v5290_v25 = vpop.permute.xlu0 %5289 }
 0xd7d   :  { %2414 = vrot.lane.b32.xlu0 %v2259_v47, %s5786_s4  ;;  %v5292_v63 = vunpack.i.h.bf16 %v5290_v25  ;;  %v5291_v14 = vunpack.i.l.bf16 %v5290_v25 }
 0xd7f   :  { %v2263_v15 = vpack.c.bf16 %v5292_v63, %v5291_v14 }
 0xd80   :  { %v2315_v50 = vpop.permute.xlu0 %2314  ;;  %v5275_v53 = vpop.permute.xlu1 %5274 }
 0xd81   :  { %v2320_v57 = vsel %vm423_vm2, %v2315_v50, 0  ;;  %v5277_v62 = vunpack.i.h.bf16 %v5275_v53  ;;  %v5276_v5 = vunpack.i.l.bf16 %v5275_v53 }
 0xd82   :  { %5029 = vmatpush3.bf16.xpose.msra.mxu0 %v2320_v57 }
 0xd83   :  { %v2260_v0 = vpack.c.bf16 %v5277_v62, %v5276_v5  ;;  %5034 = vmatprep.subr.bf16.mxu0 %v5782_v30 }
 0xd84   :  { %v5280_v1 = vpop.permute.xlu1 %5279 }
 0xd85   :  { %v5282_v42 = vunpack.i.h.bf16 %v5280_v1  ;;  %v5281_v40 = vunpack.i.l.bf16 %v5280_v1  ;;  %2464 = vrot.lane.b32.xlu1 %v2260_v0, %s5786_s4 }
 0xd87   :  { %v2261_v49 = vpack.c.bf16 %v5282_v42, %v5281_v40 }
 0xd88   :  { %v5285_v22 = vpop.permute.xlu1 %5284 }
 0xd89   :  { %v5287_v27 = vunpack.i.h.bf16 %v5285_v22  ;;  %v5286_v28 = vunpack.i.l.bf16 %v5285_v22  ;;  %5031 = vmatmul.mubr.msk.bf16.vlgmr.msra.gmra.mrb[56].mxu0 %vm423_vm2, %v2257_v34  ;;  %2514 = vrot.lane.b32.xlu0 %v2261_v49, %s5786_s4 }
 0xd8a   :  { %5036 = vmatprep.mubr.msk.bf16.mxu0 %vm5784_vm1, %v5782_v30 }
 0xd8b   :  { %v2262_v56 = vpack.c.bf16 %v5287_v27, %v5286_v28 }
 0xd8c   :  { %v5295_v39 = vpop.permute.xlu1 %5294 }
 0xd8d   :  { %v5297_v16 = vunpack.i.h.bf16 %v5295_v39  ;;  %v5296_v52 = vunpack.i.l.bf16 %v5295_v39  ;;  %2614 = vrot.lane.b32.xlu0 %v2263_v15, %s5786_s4  ;;  %2564 = vrot.lane.b32.xlu1 %v2262_v56, %s5786_s4 }
 0xd8f   :  { %v2264_v37 = vpack.c.bf16 %v5297_v16, %v5296_v52 }
 0xd90   :  { %v2365_v3 = vpop.permute.xlu1 %2364 }
 0xd91   :  { %v2370_v20 = vsel %vm423_vm2, %v2365_v3, 0  ;;  %2664 = vrot.lane.b32.xlu1 %v2264_v37, %s5786_s4 }
 0xd92   :  { %5035 = vmatpush3.bf16.xpose.msra.mxu0 %v2370_v20 }
 0xd93   :  { %5046 = vmatprep.subr.bf16.mxu0 %v5782_v30 }
 0xd99   :  { %5037 = vmatmul.mubr.msk.bf16.vlgmr.msra.gmra.mrb[60].mxu0 %vm423_vm2, %v2258_v60 }
 0xd9a   :  { %5048 = vmatprep.mubr.msk.bf16.mxu0 %vm5784_vm1, %v5782_v30 }
 0xdef   :  { %v2415_v23 = vpop.permute.xlu0 %2414 }
 0xdf0   :  { %v2420_v36 = vsel %vm423_vm2, %v2415_v23, 0 }
 0xdf1   :  { %5041 = vmatpush3.bf16.xpose.msra.mxu1 %v2420_v36 }
 0xdf2   :  { %5052 = vmatprep.subr.bf16.mxu1 %v5782_v30 }
 0xdf7   :  { %v2465_v24 = vpop.permute.xlu1 %2464 }
 0xdf8   :  { %v2470_v7 = vsel %vm423_vm2, %v2465_v24, 0  ;;  %5043 = vmatmul.mubr.msk.bf16.vlgmr.msra.gmra.mrb[44].mxu1 %vm423_vm2, %v2259_v47 }
 0xdf9   :  { %5047 = vmatpush3.bf16.xpose.msra.mxu0 %v2470_v7  ;;  %5054 = vmatprep.mubr.msk.bf16.mxu1 %vm5784_vm1, %v5782_v30 }
 0xdfa   :  { %5058 = vmatprep.subr.bf16.mxu0 %v5782_v30 }
 0xdfb   :  { %v2515_v8 = vpop.permute.xlu0 %2514 }
 0xdfc   :  { %v2520_v12 = vsel %vm423_vm2, %v2515_v8, 0 }
 0xdfd   :  { %5053 = vmatpush3.bf16.xpose.msra.mxu1 %v2520_v12 }
 0xdfe   :  { %5064 = vmatprep.subr.bf16.mxu1 %v5782_v30 }
 0xdff   :  { %v2565_v32 = vpop.permute.xlu1 %2564  ;;  %v2615_v34 = vpop.permute.xlu0 %2614 }
 0xe00   :  { %v2570_v58 = vsel %vm423_vm2, %v2565_v32, 0  ;;  %5049 = vmatmul.mubr.msk.bf16.vlgmr.msra.gmra.mrb[64].mxu0 %vm423_vm2, %v2260_v0  ;;  %v2620_v54 = vsel %vm423_vm2, %v2615_v34, 0 }
 0xe01   :  { %5059 = vmatpush3.bf16.xpose.msra.mxu0 %v2570_v58  ;;  %5060 = vmatprep.mubr.msk.bf16.mxu0 %vm5784_vm1, %v5782_v30 }
 0xe02   :  { %5070 = vmatprep.subr.bf16.mxu0 %v5782_v30 }
 0xe03   :  { %v2665_v26 = vpop.permute.xlu1 %2664 }
 0xe04   :  { %5055 = vmatmul.mubr.msk.bf16.vlgmr.msra.gmra.mrb[48].mxu1 %vm423_vm2, %v2261_v49  ;;  %v2670_v17 = vsel %vm423_vm2, %v2665_v26, 0 }
 0xe05   :  { %5065 = vmatpush3.bf16.xpose.msra.mxu1 %v2620_v54  ;;  %5066 = vmatprep.mubr.msk.bf16.mxu1 %vm5784_vm1, %v5782_v30 }
 0xe06   :  { %5076 = vmatprep.subr.bf16.mxu1 %v5782_v30 }
 0xe08   :  { %5061 = vmatmul.mubr.msk.bf16.vlgmr.msra.gmra.mrb[68].mxu0 %vm423_vm2, %v2262_v56 }
 0xe09   :  { %5071 = vmatpush3.bf16.xpose.msra.mxu0 %v2670_v17  ;;  %5072 = vmatprep.mubr.msk.bf16.mxu0 %vm5784_vm1, %v5782_v30 }
 0xe0a   :  { %5082 = vmatprep.subr.bf16.mxu0 %v5782_v30 }
 0xe0c   :  { %5067 = vmatmul.mubr.msk.bf16.vlgmr.msra.gmra.mrb[52].mxu1 %vm423_vm2, %v2263_v15 }
 0xe0d   :  { %5077 = vmatpush3.bf16.msra.mxu1 %v2305_v38  ;;  %5078 = vmatprep.mubr.msk.bf16.mxu1 %vm5784_vm1, %v5782_v30 }
 0xe0e   :  { %5088 = vmatprep.subr.bf16.mxu1 %v5782_v30 }
 0xe10   :  { %5073 = vmatmul.mubr.msk.bf16.vlgmr.msra.gmra.mrb[72].mxu0 %vm423_vm2, %v2264_v37 }
 0xe11   :  { %5083 = vmatpush3.bf16.msra.mxu0 %v2306_v55  ;;  %5084 = vmatprep.mubr.msk.bf16.mxu0 %vm5784_vm1, %v5782_v30 }
 0xe12   :  { %5094 = vmatprep.subr.bf16.mxu0 %v5782_v30 }
 0xe5c   :  { %v2356_v6 = vpop.f32.mrb[56].mxu0 }
 0xe5d   :  { %v2713_v33 = vmul.f32 0.25, %v2356_v6  ;;  %v5032_v45 = vpop.f32.mrb[57].mxu0 }
 0xe5e   :  { %v2359_v29 = vpop.f32.mrb[58].mxu0 }
 0xe5f   :  { %v2714_v38 = vmul.f32 0.25, %v2359_v29  ;;  %v5033_v4 = vpop.f32.mrb[59].mxu0  ;;  %v6739_v46 = vadd.f32 %v2713_v33, %v6141_v35 }
 0xe61   :  { %v6742_v60 = vadd.f32 %v2714_v38, %v6143_v44  ;;  %v2745_v10 = vsel %vm423_vm2, %v6739_v46, -inf }
 0xe62   :  { %2746 = vmax.xlane.f32.xlu0 %v2745_v10 }
 0xe63   :  { %v2748_v43 = vsel %vm423_vm2, %v6742_v60, -inf }
 0xe64   :  { %2749 = vmax.xlane.f32.xlu1 %v2748_v43 }
 0xe6c   :  { %v2406_v55 = vpop.f32.mrb[60].mxu0 }
 0xe6d   :  { %v2715_v61 = vmul.f32 0.25, %v2406_v55  ;;  %v5038_v2 = vpop.f32.mrb[61].mxu0 }
 0xe6e   :  { %v2409_v48 = vpop.f32.mrb[62].mxu0 }
 0xe6f   :  { %v2716_v47 = vmul.f32 0.25, %v2409_v48  ;;  %v5039_v25 = vpop.f32.mrb[63].mxu0  ;;  %v6749_v50 = vadd.f32 %v2715_v61, %v6141_v35 }
 0xe71   :  { %v6752_v53 = vadd.f32 %v2716_v47, %v6143_v44  ;;  %v2751_v57 = vsel %vm423_vm2, %v6749_v50, -inf }
 0xe72   :  { %2752 = vmax.xlane.f32.xlu0 %v2751_v57 }
 0xe73   :  { %v2754_v62 = vsel %vm423_vm2, %v6752_v53, -inf }
 0xe76   :  { %2755 = vmax.xlane.f32.xlu0 %v2754_v62 }
 0xecb   :  { %v2456_v5 = vpop.f32.mrb[44].mxu1 }
 0xecc   :  { %v2717_v0 = vmul.f32 0.25, %v2456_v5  ;;  %v5044_v1 = vpop.f32.mrb[45].mxu1 }
 0xecd   :  { %v2459_v42 = vpop.f32.mrb[46].mxu1 }
 0xece   :  { %v6759_v40 = vadd.f32 %v2717_v0, %v6141_v35  ;;  %v2718_v63 = vmul.f32 0.25, %v2459_v42  ;;  %v5045_v14 = vpop.f32.mrb[47].mxu1 }
 0xed0   :  { %v6762_v49 = vadd.f32 %v2718_v63, %v6143_v44  ;;  %v2757_v22 = vsel %vm423_vm2, %v6759_v40, -inf }
 0xed1   :  { %2758 = vmax.xlane.f32.xlu0 %v2757_v22 }
 0xed2   :  { %v2760_v27 = vsel %vm423_vm2, %v6762_v49, -inf }
 0xed3   :  { %2761 = vmax.xlane.f32.xlu1 %v2760_v27  ;;  %v2506_v28 = vpop.f32.mrb[64].mxu0 }
 0xed4   :  { %v2719_v15 = vmul.f32 0.25, %v2506_v28  ;;  %v5050_v56 = vpop.f32.mrb[65].mxu0 }
 0xed5   :  { %v2509_v39 = vpop.f32.mrb[66].mxu0 }
 0xed6   :  { %v6769_v16 = vadd.f32 %v2719_v15, %v6141_v35  ;;  %v2720_v52 = vmul.f32 0.25, %v2509_v39  ;;  %v5051_v37 = vpop.f32.mrb[67].mxu0 }
 0xed7   :  { %v2556_v3 = vpop.f32.mrb[48].mxu1 }
 0xed8   :  { %v6772_v20 = vadd.f32 %v2720_v52, %v6143_v44  ;;  %v2721_v23 = vmul.f32 0.25, %v2556_v3  ;;  %v5056_v36 = vpop.f32.mrb[49].mxu1  ;;  %v2763_v24 = vsel %vm423_vm2, %v6769_v16, -inf }
 0xed9   :  { %v2559_v7 = vpop.f32.mrb[50].mxu1  ;;  %2764 = vmax.xlane.f32.xlu0 %v2763_v24 }
 0xeda   :  { %v6777_v8 = vadd.f32 %v2721_v23, %v6141_v35  ;;  %v2722_v12 = vmul.f32 0.25, %v2559_v7  ;;  %v5057_v32 = vpop.f32.mrb[51].mxu1  ;;  %v2766_v58 = vsel %vm423_vm2, %v6772_v20, -inf }
 0xedb   :  { %2767 = vmax.xlane.f32.xlu1 %v2766_v58  ;;  %v2606_v34 = vpop.f32.mrb[68].mxu0 }
 0xedc   :  { %v6782_v54 = vadd.f32 %v2722_v12, %v6143_v44  ;;  %v2723_v26 = vmul.f32 0.25, %v2606_v34  ;;  %v5062_v17 = vpop.f32.mrb[69].mxu0  ;;  %v2769_v6 = vsel %vm423_vm2, %v6777_v8, -inf }
 0xedd   :  { %2770 = vmax.xlane.f32.xlu0 %v2769_v6  ;;  %v2609_v33 = vpop.f32.mrb[70].mxu0 }
 0xede   :  { %v6787_v45 = vadd.f32 %v2723_v26, %v6141_v35  ;;  %v2724_v29 = vmul.f32 0.25, %v2609_v33  ;;  %v5063_v38 = vpop.f32.mrb[71].mxu0  ;;  %v2772_v4 = vsel %vm423_vm2, %v6782_v54, -inf }
 0xedf   :  { %v2656_v10 = vpop.f32.mrb[52].mxu1  ;;  %2773 = vmax.xlane.f32.xlu1 %v2772_v4 }
 0xee0   :  { %v6792_v43 = vadd.f32 %v2724_v29, %v6143_v44  ;;  %v2725_v55 = vmul.f32 0.25, %v2656_v10  ;;  %v5068_v61 = vpop.f32.mrb[53].mxu1  ;;  %v2775_v2 = vsel %vm423_vm2, %v6787_v45, -inf }
 0xee1   :  { %v2659_v48 = vpop.f32.mrb[54].mxu1  ;;  %2776 = vmax.xlane.f32.xlu0 %v2775_v2 }
 0xee2   :  { %v6797_v47 = vadd.f32 %v2725_v55, %v6141_v35  ;;  %v2726_v25 = vmul.f32 0.25, %v2659_v48  ;;  %v5069_v57 = vpop.f32.mrb[55].mxu1  ;;  %v2778_v62 = vsel %vm423_vm2, %v6792_v43, -inf }
 0xee3   :  { %2779 = vmax.xlane.f32.xlu1 %v2778_v62  ;;  %v2706_v5 = vpop.f32.mrb[72].mxu0 }
 0xee4   :  { %v6802_v0 = vadd.f32 %v2726_v25, %v6143_v44  ;;  %v2727_v1 = vmul.f32 0.25, %v2706_v5  ;;  %v5074_v42 = vpop.f32.mrb[73].mxu0  ;;  %v2781_v63 = vsel %vm423_vm2, %v6797_v47, -inf }
 0xee5   :  { %2782 = vmax.xlane.f32.xlu0 %v2781_v63  ;;  %v2709_v14 = vpop.f32.mrb[74].mxu0 }
 0xee6   :  { %v6807_v22 = vadd.f32 %v2727_v1, %v6141_v35  ;;  %v5075_v27 = vpop.f32.mrb[75].mxu0  ;;  %v2784_v28 = vsel %vm423_vm2, %v6802_v0, -inf  ;;  %v2728_v23 = vmul.f32 0.25, %v2709_v14 }
 0xee7   :  { %2785 = vmax.xlane.f32.xlu1 %v2784_v28 }
 0xee8   :  { %v2787_v15 = vsel %vm423_vm2, %v6807_v22, -inf  ;;  %v6824_v24 = vadd.f32 %v2728_v23, %v6143_v44 }
 0xee9   :  { %2788 = vmax.xlane.f32.xlu0 %v2787_v15 }
 0xeef   :  { %v2747_v35 = vpop.xlane.xlu0 %2746 }
 0xef0   :  { %v2793_v56 = vsub.f32 %v6739_v46, %v2747_v35  ;;  %v2790_v46 = vsel %vm423_vm2, %v6824_v24, -inf }
 0xef1   :  { %v2750_v32 = vpop.xlane.xlu1 %2749 }
 0xef2   :  { %v2809_v52 = vmul.f32 1.442695, %v2793_v56  ;;  %v2794_v44 = vsub.f32 %v6742_v60, %v2750_v32 }
 0xef4   :  { %5586 = vpow2.f32 %v2809_v52  ;;  %v2811_v34 = vmul.f32 1.442695, %v2794_v44 }
 0xef8   :  { %5304 = vrot.lane.b32.xlu1 %v6676_v31, %s5783_s29 }
 0xefc   :  { %5309 = vrot.lane.b32.xlu1 %v6664_v51, %s5787_s8 }
 0xefe   :  { %v6821_v36 = vpop.eup %5586 }
 0xeff   :  { %5299 = vrot.lane.b32.xlu0 %v6664_v51, %s5783_s29  ;;  %v2753_v39 = vpop.xlane.xlu0 %2752  ;;  %v2841_v7 = vsel %vm423_vm2, %v6821_v36, 0.0  ;;  %s7393_s29 = smov 32  }
 0xf00   :  { %v2795_v37 = vsub.f32 %v6749_v50, %v2753_v39 }
 0xf02   :  { %v2813_v3 = vmul.f32 1.442695, %v2795_v37 }
 0xf03   :  { %v2756_v58 = vpop.xlane.xlu0 %2755 }
 0xf04   :  { %5588 = vpow2.f32 %v2813_v3  ;;  %v2796_v26 = vsub.f32 %v6752_v53, %v2756_v58 }
 0xf05   :  { %5590 = vpow2.f32 %v2811_v34 }
 0xf06   :  { %v2815_v17 = vmul.f32 1.442695, %v2796_v26 }
 0xf08   :  { %5592 = vpow2.f32 %v2815_v17 }
 0xf0e   :  { %v6828_v12 = vpop.eup %5588 }
 0xf0f   :  { %v2847_v50 = vsel %vm423_vm2, %v6828_v12, 0.0  ;;  %v6838_v6 = vpop.eup %5590 }
 0xf10   :  { %v2844_v33 = vsel %vm423_vm2, %v6838_v6, 0.0 }
 0xf12   :  { %v6842_v29 = vpop.eup %5592 }
 0xf13   :  { %v2850_v38 = vsel %vm423_vm2, %v6842_v29, 0.0 }
 0xf1e   :  { %2842 = vadd.xlane.f32.xlu0 %v2841_v7 }
 0xf20   :  { %2791 = vmax.xlane.f32.xlu1 %v2790_v46 }
 0xf22   :  { %2848 = vadd.xlane.f32.xlu0 %v2847_v50 }
 0xf31   :  { %5314 = vrot.lane.b32.xlu1 %v6676_v31, %s5787_s8 }
 0xf55   :  { %2845 = vadd.xlane.f32.xlu1 %v2844_v33 }
 0xf59   :  { %2851 = vadd.xlane.f32.xlu1 %v2850_v38 }
 0xf5e   :  { %v2759_v60 = vpop.xlane.xlu0 %2758 }
 0xf5f   :  { %v2797_v4 = vsub.f32 %v6759_v40, %v2759_v60 }
 0xf60   :  { %v2762_v10 = vpop.xlane.xlu1 %2761 }
 0xf61   :  { %v2817_v53 = vmul.f32 1.442695, %v2797_v4  ;;  %v2798_v55 = vsub.f32 %v6762_v49, %v2762_v10 }
 0xf63   :  { %5594 = vpow2.f32 %v2817_v53  ;;  %v2819_v61 = vmul.f32 1.442695, %v2798_v55 }
 0xf65   :  { %5596 = vpow2.f32 %v2819_v61 }
 0xf66   :  { %v2765_v2 = vpop.xlane.xlu0 %2764 }
 0xf67   :  { %v2799_v48 = vsub.f32 %v6769_v16, %v2765_v2 }
 0xf68   :  { %v2768_v25 = vpop.xlane.xlu1 %2767 }
 0xf69   :  { %v2821_v57 = vmul.f32 1.442695, %v2799_v48  ;;  %v2800_v62 = vsub.f32 %v6772_v20, %v2768_v25 }
 0xf6a   :  { %v2771_v5 = vpop.xlane.xlu0 %2770 }
 0xf6b   :  { %5598 = vpow2.f32 %v2821_v57  ;;  %v2823_v1 = vmul.f32 1.442695, %v2800_v62  ;;  %v2801_v42 = vsub.f32 %v6777_v8, %v2771_v5 }
 0xf6c   :  { %v2774_v40 = vpop.xlane.xlu1 %2773 }
 0xf6d   :  { %v6851_v63 = vpop.eup %5594  ;;  %5600 = vpow2.f32 %v2823_v1  ;;  %v2825_v49 = vmul.f32 1.442695, %v2801_v42  ;;  %v2802_v14 = vsub.f32 %v6782_v54, %v2774_v40 }
 0xf6e   :  { %v2777_v27 = vpop.xlane.xlu0 %2776  ;;  %v2853_v16 = vsel %vm423_vm2, %v6851_v63, 0.0 }
 0xf6f   :  { %v6856_v28 = vpop.eup %5596  ;;  %5602 = vpow2.f32 %v2825_v49  ;;  %v2827_v20 = vmul.f32 1.442695, %v2802_v14  ;;  %v2803_v15 = vsub.f32 %v6787_v45, %v2777_v27  ;;  %2854 = vadd.xlane.f32.xlu0 %v2853_v16 }
 0xf70   :  { %v2780_v35 = vpop.xlane.xlu1 %2779  ;;  %v2856_v8 = vsel %vm423_vm2, %v6856_v28, 0.0 }
 0xf71   :  { %5604 = vpow2.f32 %v2827_v20  ;;  %v2829_v56 = vmul.f32 1.442695, %v2803_v15  ;;  %v2804_v39 = vsub.f32 %v6792_v43, %v2780_v35  ;;  %2857 = vadd.xlane.f32.xlu1 %v2856_v8 }
 0xf72   :  { %v2783_v54 = vpop.xlane.xlu0 %2782 }
 0xf73   :  { %5606 = vpow2.f32 %v2829_v56  ;;  %v2831_v52 = vmul.f32 1.442695, %v2804_v39  ;;  %v2805_v37 = vsub.f32 %v6797_v47, %v2783_v54 }
 0xf74   :  { %v2786_v3 = vpop.xlane.xlu1 %2785 }
 0xf75   :  { %v6863_v23 = vpop.eup %5598  ;;  %5608 = vpow2.f32 %v2831_v52  ;;  %v2833_v45 = vmul.f32 1.442695, %v2805_v37  ;;  %v2806_v7 = vsub.f32 %v6802_v0, %v2786_v3 }
 0xf76   :  { %v2789_v46 = vpop.xlane.xlu0 %2788  ;;  %v2859_v50 = vsel %vm423_vm2, %v6863_v23, 0.0 }
 0xf77   :  { %v6868_v32 = vpop.eup %5600  ;;  %5610 = vpow2.f32 %v2833_v45  ;;  %v2835_v43 = vmul.f32 1.442695, %v2806_v7  ;;  %v2807_v44 = vsub.f32 %v6807_v22, %v2789_v46  ;;  %2860 = vadd.xlane.f32.xlu0 %v2859_v50 }
 0xf78   :  { %v2862_v47 = vsel %vm423_vm2, %v6868_v32, 0.0  ;;  %v5305_v48 = vpop.permute.xlu1 %5304 }
 0xf79   :  { %v6873_v58 = vpop.eup %5602  ;;  %5612 = vpow2.f32 %v2835_v43  ;;  %v2837_v34 = vmul.f32 1.442695, %v2807_v44  ;;  %2863 = vadd.xlane.f32.xlu1 %v2862_v47  ;;  %v5307_v52 = vunpack.i.h.bf16 %v5305_v48  ;;  %v5306_v37 = vunpack.i.l.bf16 %v5305_v48 }
 0xf7a   :  { %v2865_v0 = vsel %vm423_vm2, %v6873_v58, 0.0  ;;  %v5300_v40 = vpop.permute.xlu0 %5299 }
 0xf7b   :  { %v6877_v26 = vpop.eup %5604  ;;  %5614 = vpow2.f32 %v2837_v34  ;;  %2866 = vadd.xlane.f32.xlu0 %v2865_v0  ;;  %v5302_v15 = vunpack.i.h.bf16 %v5300_v40  ;;  %v5301_v35 = vunpack.i.l.bf16 %v5300_v40 }
 0xf7c   :  { %v2868_v17 = vsel %vm423_vm2, %v6877_v26, 0.0  ;;  %v6903_v25 = vpop.permute.xlu1 %5309 }
 0xf7d   :  { %v6881_v22 = vpop.eup %5606  ;;  %2869 = vadd.xlane.f32.xlu1 %v2868_v17  ;;  %v2307_v3 = vpack.c.bf16 %v5302_v15, %v5301_v35  ;;  %v5312_v34 = vunpack.i.h.bf16 %v6903_v25  ;;  %v5311_v0 = vunpack.i.l.bf16 %v6903_v25 }
 0xf7e   :  { %v2871_v33 = vsel %vm423_vm2, %v6881_v22, 0.0 }
 0xf7f   :  { %v6885_v38 = vpop.eup %5608  ;;  %2872 = vadd.xlane.f32.xlu0 %v2871_v33 }
 0xf80   :  { %v2874_v60 = vsel %vm423_vm2, %v6885_v38, 0.0 }
 0xf81   :  { %v6889_v4 = vpop.eup %5610  ;;  %2875 = vadd.xlane.f32.xlu1 %v2874_v60 }
 0xf82   :  { %v2877_v10 = vsel %vm423_vm2, %v6889_v4, 0.0 }
 0xf83   :  { %v6893_v53 = vpop.eup %5612  ;;  %2878 = vadd.xlane.f32.xlu0 %v2877_v10 }
 0xf84   :  { %v2880_v55 = vsel %vm423_vm2, %v6893_v53, 0.0 }
 0xf85   :  { %v6897_v61 = vpop.eup %5614  ;;  %2881 = vadd.xlane.f32.xlu1 %v2880_v55 }
 0xf86   :  { %v2883_v2 = vsel %vm423_vm2, %v6897_v61, 0.0 }
 0xf87   :  { %2884 = vadd.xlane.f32.xlu0 %v2883_v2  ;;  %v2309_v2 = vpack.c.bf16 %v5312_v34, %v5311_v0 }
 0xf9d   :  { %5319 = vrot.lane.b32.xlu0 %v6664_v51, %s5785_s0 }
 0xfab   :  { %v2843_v49 = vpop.xlane.xlu0 %2842 }
 0xfad   :  { %v2792_v57 = vpop.xlane.xlu1 %2791 }
 0xfae   :  { %v2808_v62 = vsub.f32 %v6824_v24, %v2792_v57 }
 0xfaf   :  { %v2849_v14 = vpop.xlane.xlu0 %2848 }
 0xfb0   :  { %v2839_v5 = vmul.f32 1.442695, %v2808_v62 }
 0xfb1   :  { %v6912_v51 = vpop.permute.xlu1 %5314 }
 0xfb2   :  { %5616 = vpow2.f32 %v2839_v5  ;;  %v5316_v62 = vunpack.i.l.bf16 %v6912_v51 }
 0xfb3   :  { %5618 = vrcp.f32 %v2843_v49 }
 0xfbc   :  { %v6906_v1 = vpop.eup %5616 }
 0xfbd   :  { %v2886_v42 = vsel %vm423_vm2, %v6906_v1, 0.0  ;;  %v5619_v16 = vpop.eup %5618 }
 0xfbe   :  { %2887 = vadd.xlane.f32.xlu1 %v2886_v42  ;;  %v2905_v8 = vmul.f32 %v5619_v16, %v6821_v36  ;;  %v2308_v36 = vpack.c.bf16 %v5307_v52, %v5306_v37 }
 0xfcf   :  { %5324 = vrot.lane.b32.xlu1 %v6676_v31, %s5785_s0 }
 0xfe2   :  { %v2846_v27 = vpop.xlane.xlu1 %2845 }
 0xfe3   :  { %5620 = vrcp.f32 %v2846_v27 }
 0xfe4   :  { %5622 = vrcp.f32 %v2849_v14 }
 0xfe6   :  { %v2852_v24 = vpop.xlane.xlu1 %2851 }
 0xfe7   :  { %5624 = vrcp.f32 %v2852_v24 }
 0xfed   :  { %v5621_v20 = vpop.eup %5620 }
 0xfee   :  { %v2906_v56 = vmul.f32 %v5621_v20, %v6838_v6  ;;  %v5623_v31 = vpop.eup %5622 }
 0xfef   :  { %v2907_v45 = vmul.f32 %v5623_v31, %v6828_v12 }
 0xff0   :  { %v2921_v39 = vpack.c.bf16 %v2906_v56, %v2905_v8 }
 0xff1   :  { %v5625_v54 = vpop.eup %5624 }
 0xff2   :  { %v2908_v7 = vmul.f32 %v5625_v54, %v6842_v29  ;;  %5079 = vmatmul.mubr.msk.bf16.vlgmr.msra.gmra.mrb[56].mxu1 %vm423_vm2, %v2921_v39 }
 0xff3   :  { %5089 = vmatpush3.bf16.msra.mxu1 %v2307_v3  ;;  %5090 = vmatprep.mubr.msk.bf16.mxu1 %vm5784_vm1, %v5782_v30 }
 0xff4   :  { %v2922_v46 = vpack.c.bf16 %v2908_v7, %v2907_v45  ;;  %5100 = vmatprep.subr.bf16.mxu1 %v5782_v30 }
 0xff6   :  { %5085 = vmatmul.mubr.msk.bf16.vlgmr.msra.gmra.mrb[76].mxu0 %vm423_vm2, %v2922_v46 }
 0xff7   :  { %5095 = vmatpush3.bf16.msra.mxu0 %v2308_v36  ;;  %5096 = vmatprep.mubr.msk.bf16.mxu0 %vm5784_vm1, %v5782_v30 }
 0xff8   :  { %5106 = vmatprep.subr.bf16.mxu0 %v5782_v30 }
 0xffc   :  { %v2855_v12 = vpop.xlane.xlu0 %2854 }
 0xffd   :  { %5626 = vrcp.f32 %v2855_v12 }
 0xffe   :  { %v2858_v6 = vpop.xlane.xlu1 %2857 }
 0xfff   :  { %5628 = vrcp.f32 %v2858_v6 }
0x1004   :  { %v2861_v29 = vpop.xlane.xlu0 %2860 }
0x1005   :  { %5630 = vrcp.f32 %v2861_v29 }
0x1006   :  { %v2864_v50 = vpop.xlane.xlu1 %2863 }
0x1007   :  { %v5627_v43 = vpop.eup %5626  ;;  %5632 = vrcp.f32 %v2864_v50 }
0x1008   :  { %v2867_v44 = vpop.xlane.xlu0 %2866  ;;  %v2909_v17 = vmul.f32 %v5627_v43, %v6851_v63 }
0x1009   :  { %v5629_v47 = vpop.eup %5628  ;;  %5634 = vrcp.f32 %v2867_v44 }
0x100a   :  { %v2910_v33 = vmul.f32 %v5629_v47, %v6856_v28  ;;  %v2870_v60 = vpop.xlane.xlu1 %2869  ;;  %v5317_v28 = vunpack.i.h.bf16 %v6912_v51 }
0x100b   :  { %5636 = vrcp.f32 %v2870_v60 }
0x100c   :  { %v2873_v10 = vpop.xlane.xlu0 %2872  ;;  %v2923_v55 = vpack.c.bf16 %v2910_v33, %v2909_v17  ;;  %v2310_v16 = vpack.c.bf16 %v5317_v28, %v5316_v62 }
0x100d   :  { %5638 = vrcp.f32 %v2873_v10 }
0x100e   :  { %5091 = vmatmul.mubr.msk.bf16.vlgmr.msra.gmra.mrb[60].mxu1 %vm423_vm2, %v2923_v55  ;;  %v2876_v48 = vpop.xlane.xlu1 %2875 }
0x100f   :  { %v5631_v57 = vpop.eup %5630  ;;  %5640 = vrcp.f32 %v2876_v48  ;;  %5101 = vmatpush3.bf16.msra.mxu1 %v2309_v2  ;;  %5102 = vmatprep.mubr.msk.bf16.mxu1 %vm5784_vm1, %v5782_v30 }
0x1010   :  { %v2879_v25 = vpop.xlane.xlu0 %2878  ;;  %5112 = vmatprep.subr.bf16.mxu1 %v5782_v30  ;;  %v2911_v5 = vmul.f32 %v5631_v57, %v6863_v23 }
0x1011   :  { %v5633_v63 = vpop.eup %5632  ;;  %5642 = vrcp.f32 %v2879_v25 }
0x1012   :  { %v2912_v42 = vmul.f32 %v5633_v63, %v6868_v32  ;;  %v2882_v40 = vpop.xlane.xlu1 %2881 }
0x1013   :  { %v5635_v49 = vpop.eup %5634  ;;  %5644 = vrcp.f32 %v2882_v40 }
0x1014   :  { %v2885_v14 = vpop.xlane.xlu0 %2884  ;;  %v2924_v27 = vpack.c.bf16 %v2912_v42, %v2911_v5  ;;  %v2913_v20 = vmul.f32 %v5635_v49, %v6873_v58 }
0x1015   :  { %v5637_v24 = vpop.eup %5636  ;;  %5646 = vrcp.f32 %v2885_v14  ;;  %v5414_v14 = vld [vmem:[%s7352_s6 + $0x20] sm:$0xff]  }
0x1016   :  { %v2914_v15 = vmul.f32 %v5637_v24, %v6877_v26  ;;  %5097 = vmatmul.mubr.msk.bf16.vlgmr.msra.gmra.mrb[80].mxu0 %vm423_vm2, %v2924_v27  ;;  %v5415_v27 = vld [vmem:[%s7352_s6 + $0x28] sm:$0xff]  }
0x1017   :  { %v5639_v35 = vpop.eup %5638  ;;  %5107 = vmatpush3.bf16.msra.mxu0 %v2310_v16  ;;  %5108 = vmatprep.mubr.msk.bf16.mxu0 %vm5784_vm1, %v5782_v30 }
0x1018   :  { %v5320_v23 = vpop.permute.xlu0 %5319  ;;  %v2925_v32 = vpack.c.bf16 %v2914_v15, %v2913_v20  ;;  %5118 = vmatprep.subr.bf16.mxu0 %v5782_v30  ;;  %v2915_v31 = vmul.f32 %v5639_v35, %v6881_v22 }
0x1019   :  { %v5641_v51 = vpop.eup %5640  ;;  %v5322_v8 = vunpack.i.h.bf16 %v5320_v23  ;;  %v5321_v56 = vunpack.i.l.bf16 %v5320_v23  ;;  %v5416_v23 = vld [vmem:[%s7352_s6 + $0x30] sm:$0xff]  }
0x101a   :  { %v2916_v58 = vmul.f32 %v5641_v51, %v6885_v38  ;;  %5103 = vmatmul.mubr.msk.bf16.vlgmr.msra.gmra.mrb[64].mxu1 %vm423_vm2, %v2925_v32 }
0x101b   :  { %v5643_v26 = vpop.eup %5642  ;;  %v2311_v39 = vpack.c.bf16 %v5322_v8, %v5321_v56  ;;  %5114 = vmatprep.mubr.msk.bf16.mxu1 %vm5784_vm1, %v5782_v30  ;;  %v5417_v56 = vld [vmem:[%s7352_s6 + $0x38] sm:$0xff]  }
0x101c   :  { %v2926_v54 = vpack.c.bf16 %v2916_v58, %v2915_v31  ;;  %v2917_v37 = vmul.f32 %v5643_v26, %v6889_v4 }
0x101d   :  { %v5645_v52 = vpop.eup %5644  ;;  %5113 = vmatpush3.bf16.msra.mxu1 %v2311_v39 }
0x101e   :  { %v2918_v3 = vmul.f32 %v5645_v52, %v6893_v53  ;;  %5109 = vmatmul.mubr.msk.bf16.vlgmr.msra.gmra.mrb[84].mxu0 %vm423_vm2, %v2926_v54  ;;  %5124 = vmatprep.subr.bf16.mxu1 %v5414_v14 }
0x101f   :  { %5120 = vmatprep.mubr.msk.bf16.mxu0 %vm5784_vm1, %v5782_v30  ;;  %v5647_v12 = vpop.eup %5646 }
0x1020   :  { %v2927_v22 = vpack.c.bf16 %v2918_v3, %v2917_v37  ;;  %v2919_v53 = vmul.f32 %v5647_v12, %v6897_v61 }
0x1022   :  { %5115 = vmatmul.mubr.msk.bf16.vlgmr.msra.gmra.mrb[68].mxu1 %vm423_vm2, %v2927_v22 }
0x1023   :  { %5125 = vmatpush3.bf16.msra.mxu1 %v5414_v14 }
0x1024   :  { %5126 = vmatprep.subr.bf16.mxu1 %v5415_v27 }
0x1027   :  { %5127 = vmatpush3.bf16.msra.mxu1 %v5415_v27 }
0x1028   :  { %5128 = vmatprep.subr.bf16.mxu1 %v5416_v23 }
0x102b   :  { %5129 = vmatpush3.bf16.msra.mxu1 %v5416_v23 }
0x102c   :  { %5130 = vmatprep.subr.bf16.mxu1 %v5417_v56 }
0x102f   :  { %5131 = vmatpush3.bf16.msra.mxu1 %v5417_v56 }
0x104b   :  { %v2888_v38 = vpop.xlane.xlu1 %2887 }
0x104c   :  { %5648 = vrcp.f32 %v2888_v38 }
0x104f   :  { %v5325_v45 = vpop.permute.xlu1 %5324 }
0x1050   :  { %v5327_v7 = vunpack.i.h.bf16 %v5325_v45  ;;  %v5326_v46 = vunpack.i.l.bf16 %v5325_v45 }
0x1052   :  { %v2312_v36 = vpack.c.bf16 %v5327_v7, %v5326_v46 }
0x1054   :  { %5119 = vmatpush3.bf16.msra.mxu0 %v2312_v36 }
0x1056   :  { %v5649_v4 = vpop.eup %5648 }
0x1057   :  { %v2920_v6 = vmul.f32 %v5649_v4, %v6906_v1 }
0x1059   :  { %v2928_v29 = vpack.c.bf16 %v2920_v6, %v2919_v53 }
0x105b   :  { %5121 = vmatmul.mubr.msk.bf16.vlgmr.msra.gmra.mrb[88].mxu0 %vm423_vm2, %v2928_v29 }
0x105c   :  { %3625 = vmatprep.mubr.bf16.mxu0 %v5781_v41 }
0x10c5   :  { %v6959_v30 = vpop.f32.mrb[56].mxu1 }
0x10c6   :  { %v5080_v50 = vpop.f32.mrb[57].mxu1 }
0x10c7   :  { %v2969_v43 = vpop.f32.mrb[58].mxu1 }
0x10c8   :  { %v5081_v44 = vpop.f32.mrb[59].mxu1 }
0x10c9   :  { %v6961_v47 = vpop.f32.mrb[76].mxu0 }
0x10ca   :  { %v5086_v34 = vpop.f32.mrb[77].mxu0 }
0x10cb   :  { %v6963_v0 = vpop.f32.mrb[78].mxu0 }
0x10cc   :  { %v5087_v17 = vpop.f32.mrb[79].mxu0 }
0x10e1   :  { %v3054_v33 = vpop.f32.mrb[60].mxu1 }
0x10e2   :  { %v5092_v61 = vpop.f32.mrb[61].mxu1 }
0x10e3   :  { %v3057_v60 = vpop.f32.mrb[62].mxu1 }
0x10e4   :  { %v5328_v1 = vpack.i.bf16 %v3057_v60, %v3054_v33  ;;  %v5093_v10 = vpop.f32.mrb[63].mxu1 }
0x10e6   :  { %5329 = vrot.lane.b32.xlu0 %v5328_v1, %s7392_s28 }
0x10e9   :  { %v3098_v55 = vpop.f32.mrb[80].mxu0 }
0x10ea   :  { %v5098_v2 = vpop.f32.mrb[81].mxu0 }
0x10eb   :  { %v3101_v48 = vpop.f32.mrb[82].mxu0 }
0x10ec   :  { %v5333_v57 = vpack.i.bf16 %v3101_v48, %v3098_v55  ;;  %v5099_v25 = vpop.f32.mrb[83].mxu0 }
0x10ed   :  { %v3142_v63 = vpop.f32.mrb[64].mxu1 }
0x10ee   :  { %v5104_v28 = vpop.f32.mrb[65].mxu1  ;;  %5334 = vrot.lane.b32.xlu1 %v5333_v57, %s7392_s28 }
0x10ef   :  { %v3145_v62 = vpop.f32.mrb[66].mxu1 }
0x10f0   :  { %v5338_v5 = vpack.i.bf16 %v3145_v62, %v3142_v63  ;;  %v5105_v42 = vpop.f32.mrb[67].mxu1 }
0x10f1   :  { %v3186_v40 = vpop.f32.mrb[84].mxu0 }
0x10f2   :  { %5339 = vrot.lane.b32.xlu0 %v5338_v5, %s7393_s29  ;;  %v5110_v49 = vpop.f32.mrb[85].mxu0 }
0x10f3   :  { %v3189_v24 = vpop.f32.mrb[86].mxu0 }
0x10f4   :  { %v5343_v16 = vpack.i.bf16 %v3189_v24, %v3186_v40  ;;  %v5111_v20 = vpop.f32.mrb[87].mxu0 }
0x10f5   :  { %v3230_v15 = vpop.f32.mrb[68].mxu1 }
0x10f6   :  { %v5116_v35 = vpop.f32.mrb[69].mxu1  ;;  %5344 = vrot.lane.b32.xlu1 %v5343_v16, %s7393_s29 }
0x10f7   :  { %v3233_v32 = vpop.f32.mrb[70].mxu1 }
0x10f8   :  { %v5348_v51 = vpack.i.bf16 %v3233_v32, %v3230_v15  ;;  %v5117_v8 = vpop.f32.mrb[71].mxu1 }
0x10fa   :  { %5349 = vrot.lane.b32.xlu0 %v5348_v51, %s7394_s14 }
0x112e   :  { %v3274_v31 = vpop.f32.mrb[88].mxu0 }
0x112f   :  { %v5122_v58 = vpop.f32.mrb[89].mxu0 }
0x1130   :  { %v3277_v26 = vpop.f32.mrb[90].mxu0 }
0x1131   :  { %v5353_v39 = vpack.i.bf16 %v3277_v26, %v3274_v31  ;;  %v5123_v54 = vpop.f32.mrb[91].mxu0 }
0x1133   :  { %5354 = vrot.lane.b32.xlu1 %v5353_v39, %s7394_s14 }
0x1158   :  { %v5330_v52 = vpop.permute.xlu0 %5329 }
0x1159   :  { %v5332_v3 = vunpack.i.h.bf16 %v5330_v52  ;;  %v5331_v22 = vunpack.i.l.bf16 %v5330_v52 }
0x115b   :  { %v3330_v46 = vsel %vm423_vm2, %v2969_v43, %v5332_v3  ;;  %v3329_v36 = vsel %vm423_vm2, %v6959_v30, %v5331_v22 }
0x1160   :  { %v5335_v34 = vpop.permute.xlu1 %5334 }
0x1161   :  { %v5337_v33 = vunpack.i.h.bf16 %v5335_v34  ;;  %v5336_v43 = vunpack.i.l.bf16 %v5335_v34  ;;  %v5427_v34 = vld [vmem:[%s7356_s10 + $0x70] ss:$8 sps:$4 sm:$0xff]  }
0x1163   :  { %v3332_v1 = vsel %vm423_vm2, %v6963_v0, %v5337_v33  ;;  %v3331_v10 = vsel %vm423_vm2, %v6961_v47, %v5336_v43  ;;  %v4634_v0 = vld [vmem:[%s7353_s7 + $0x1] ss:$0 sm:$0xff] }
0x1164   :  { %v5340_v37 = vpop.permute.xlu0 %5339 }
0x1165   :  { %v5342_v38 = vunpack.i.h.bf16 %v5340_v37  ;;  %v5341_v45 = vunpack.i.l.bf16 %v5340_v37 }
0x1167   :  { %v3334_v53 = vsel %vm1441_vm5, %v3330_v46, %v5342_v38  ;;  %v3333_v6 = vsel %vm1441_vm5, %v3329_v36, %v5341_v45 }
0x1168   :  { %v5345_v17 = vpop.permute.xlu1 %5344 }
0x1169   :  { %v5347_v61 = vunpack.i.h.bf16 %v5345_v17  ;;  %v5346_v60 = vunpack.i.l.bf16 %v5345_v17 }
0x116b   :  { %v3336_v48 = vsel %vm1441_vm5, %v3332_v1, %v5347_v61  ;;  %v3335_v57 = vsel %vm1441_vm5, %v3331_v10, %v5346_v60 }
0x116c   :  { %v5350_v7 = vpop.permute.xlu0 %5349 }
0x116d   :  { %v5352_v12 = vunpack.i.h.bf16 %v5350_v7  ;;  %v5351_v4 = vunpack.i.l.bf16 %v5350_v7 }
0x116f   :  { %v3338_v29 = vsel %vm1446_vm6, %v3334_v53, %v5352_v12  ;;  %v3337_v50 = vsel %vm1446_vm6, %v3333_v6, %v5351_v4  ;;  %v5420_v12 = vld [vmem:[%s7356_s10 + $0x44] ss:$8 sps:$4 sm:$0xff]   ;;  %v5418_v4 = vld [vmem:[%s7356_s10 + $0x40] ss:$8 sps:$4 sm:$0xff]   ;;  %v5423_v53 = vld [vmem:[%s7356_s10 + $0x54] ss:$8 sps:$4 sm:$0xff]  }
0x1170   :  { %v3350_v44 = vpack.c.bf16 %v3338_v29, %v3337_v50  ;;  %3593 = vmatprep.subr.bf16.mxu0 %v5420_v12  ;;  %v5421_v6 = vld [vmem:[%s7356_s10 + $0x50] ss:$8 sps:$4 sm:$0xff]   ;;  %v5426_v29 = vld [vmem:[%s7356_s10 + $0x64] ss:$8 sps:$4 sm:$0xff]   ;;  %v5424_v50 = vld [vmem:[%s7356_s10 + $0x60] ss:$8 sps:$4 sm:$0xff]  }
0x1171   :  { %3594 = vmatpush1.bf16.msra.mxu0 %v5418_v4  ;;  %v4646_v12 = vld [vmem:[%s7357_s11 + $0x2] sm:$0x3] }
0x1172   :  { %5132 = vmatprep.mubr.msk.bf16.mxu1 %vm129_vm0, %v3350_v44  ;;  %3595 = vmatprep.subr.bf16.mxu0 %v5423_v53  ;;  %v5429_v44 = vld [vmem:[%s7356_s10 + $0x74] ss:$8 sps:$4 sm:$0xff]   ;;  %v3540_v4 = vrot.slane %v4646_v12, %v6040_v19  ;;  %v3544_v53 = vrot.slane %v4646_v12, %v6046_v21 }
0x1175   :  { %3596 = vmatpush1.bf16.msra.mxu0 %v5421_v6 }
0x1176   :  { %3597 = vmatprep.subr.bf16.mxu0 %v5426_v29 }
0x1179   :  { %3598 = vmatpush1.bf16.msra.mxu0 %v5424_v50 }
0x117a   :  { %3599 = vmatprep.subr.bf16.mxu0 %v5429_v44 }
0x117d   :  { %3600 = vmatpush1.bf16.msra.mxu0 %v5427_v34 }
0x11a5   :  { %v5355_v30 = vpop.permute.xlu1 %5354 }
0x11a6   :  { %v5357_v55 = vunpack.i.h.bf16 %v5355_v30  ;;  %v5356_v2 = vunpack.i.l.bf16 %v5355_v30 }
0x11a8   :  { %v3340_v25 = vsel %vm1446_vm6, %v3336_v48, %v5357_v55  ;;  %v3339_v63 = vsel %vm1446_vm6, %v3335_v57, %v5356_v2 }
0x11a9   :  { %v3351_v28 = vpack.c.bf16 %v3340_v25, %v3339_v63  ;;  %v4636_v63 = vld [vmem:[#allocation2 + $0x1] ss:$0 sm:$0xff] }
0x11ab   :  { %5133 = vmatmul.mubr.msk.bf16.vlgmr.msra.gmra.mrb[72].mxu1 %vm129_vm0, %v3351_v28 }
0x127e   :  { %v5134_v62 = vpop.f32.mrb[72].mxu1 }
0x127f   :  { %v3416_v5 = vpop.f32.mrb[73].mxu1  ;;  %v3433_v47 = vadd.f32 %v5134_v62, %v6598_v9 }
0x1280   :  { %v3431_v42 = vadd.f32 %v3416_v5, %v6588_v11  ;;  %v5135_v40 = vpop.f32.mrb[74].mxu1 }
0x1281   :  { %v3419_v49 = vpop.f32.mrb[75].mxu1  ;;  %v7008_v24 = vadd.f32 %v4634_v0, %v3433_v47  ;;  %v3434_v16 = vadd.f32 %v5135_v40, %v6601_v13 }
0x1282   :  { %v7005_v14 = vadd.f32 %v4634_v0, %v3431_v42  ;;  %v3432_v27 = vadd.f32 %v3419_v49, %v6591_v59  ;;  %v4637_v42 = vld [vmem:[%s7355_s9 + $0x1] ss:$0 sm:$0xff] }
0x1283   :  { %v7017_v11 = vadd.f32 %v4634_v0, %v3434_v16  ;;  %v3457_v35 = vsel %vm129_vm0, %v7008_v24, 0.0 }
0x1284   :  { %v7011_v20 = vadd.f32 %v4634_v0, %v3432_v27  ;;  %v3451_v15 = vsel %vm129_vm0, %v7005_v14, 0.0 }
0x1285   :  { %3452 = vadd.xlane.f32.xlu0 %v3451_v15  ;;  %v3460_v59 = vsel %vm129_vm0, %v7017_v11, 0.0 }
0x1286   :  { %v3454_v9 = vsel %vm129_vm0, %v7011_v20, 0.0 }
0x1287   :  { %3455 = vadd.xlane.f32.xlu1 %v3454_v9 }
0x1289   :  { %3458 = vadd.xlane.f32.xlu0 %v3457_v35 }
0x128d   :  { %3461 = vadd.xlane.f32.xlu0 %v3460_v59 }
0x1312   :  { %v3453_v13 = vpop.xlane.xlu0 %3452 }
0x1313   :  { %v3463_v23 = vmul.f32 0.015625, %v3453_v13 }
0x1314   :  { %v3456_v32 = vpop.xlane.xlu1 %3455 }
0x1315   :  { %v3467_v51 = vsub.f32 %v7005_v14, %v3463_v23  ;;  %v3464_v8 = vmul.f32 0.015625, %v3456_v32 }
0x1316   :  { %v3459_v56 = vpop.xlane.xlu0 %3458 }
0x1317   :  { %v3468_v31 = vsub.f32 %v7011_v20, %v3464_v8  ;;  %v3465_v58 = vmul.f32 0.015625, %v3459_v56  ;;  %v3471_v26 = vmul.f32 %v3467_v51, %v3467_v51  ;;  %v5430_v8 = vld [vmem:[%s7358_s12 + $0xc0] sm:$0xff]  }
0x1318   :  { %v5431_v56 = vld [vmem:[%s7358_s12 + $0x80] sm:$0xff]   ;;  %4852 = vmatprep.subr.bf16.mxu1 %v5430_v8 }
0x1319   :  { %v3469_v39 = vsub.f32 %v7008_v24, %v3465_v58  ;;  %v3475_v54 = vsel %vm129_vm0, %v3471_v26, 0.0  ;;  %v3472_v52 = vmul.f32 %v3468_v31, %v3468_v31  ;;  %4853 = vmatpush3.bf16.msra.mxu1 %v5431_v56  ;;  %v5433_v58 = vld [vmem:[%s7358_s12 + $0x88] sm:$0xff]   ;;  %v5434_v26 = vld [vmem:[%s7358_s12 + $0xd0] sm:$0xff]  }
0x131a   :  { %3476 = vadd.xlane.f32.xlu0 %v3475_v54  ;;  %v3462_v37 = vpop.xlane.xlu0 %3461  ;;  %v5436_v54 = vld [vmem:[%s7358_s12 + $0xd8] sm:$0xff]  }
0x131b   :  { %v3466_v3 = vmul.f32 0.015625, %v3462_v37  ;;  %v3478_v22 = vsel %vm129_vm0, %v3472_v52, 0.0  ;;  %v3473_v38 = vmul.f32 %v3469_v39, %v3469_v39  ;;  %v5437_v52 = vld [vmem:[%s7358_s12 + $0x98] sm:$0xff]   ;;  %v5438_v37 = vld [vmem:[%s7358_s12 + $0xe0] sm:$0xff]  }
0x131c   :  { %3479 = vadd.xlane.f32.xlu1 %v3478_v22  ;;  %v5440_v22 = vld [vmem:[%s7358_s12 + $0xe8] sm:$0xff]  }
0x131d   :  { %v3470_v45 = vsub.f32 %v7017_v11, %v3466_v3  ;;  %v3481_v7 = vsel %vm129_vm0, %v3473_v38, 0.0  ;;  %v5439_v3 = vld [vmem:[%s7358_s12 + $0xa0] sm:$0xff]   ;;  %v5441_v38 = vld [vmem:[%s7358_s12 + $0xa8] sm:$0xff]  }
0x131e   :  { %3482 = vadd.xlane.f32.xlu0 %v3481_v7  ;;  %v5443_v7 = vld [vmem:[%s7358_s12 + $0xb0] sm:$0xff]  }
0x131f   :  { %v3474_v46 = vmul.f32 %v3470_v45, %v3470_v45 }
0x1321   :  { %v3484_v36 = vsel %vm129_vm0, %v3474_v46, 0.0  ;;  %v5444_v46 = vld [vmem:[%s7358_s12 + $0xf8] sm:$0xff]  }
0x1322   :  { %3485 = vadd.xlane.f32.xlu1 %v3484_v36  ;;  %v5445_v36 = vld [vmem:[%s7358_s12 + $0xb8] sm:$0xff]  }
0x13a7   :  { %v3477_v17 = vpop.xlane.xlu0 %3476 }
0x13a8   :  { %v3487_v33 = vmul.f32 0.015625, %v3477_v17 }
0x13a9   :  { %v3480_v43 = vpop.xlane.xlu1 %3479 }
0x13aa   :  { %v3491_v61 = vadd.f32 1e-05, %v3487_v33  ;;  %v3488_v60 = vmul.f32 0.015625, %v3480_v43 }
0x13ab   :  { %v3483_v30 = vpop.xlane.xlu0 %3482 }
0x13ac   :  { %5650 = vrsqrt.f32 %v3491_v61  ;;  %v3492_v1 = vadd.f32 1e-05, %v3488_v60  ;;  %v3489_v10 = vmul.f32 0.015625, %v3483_v30 }
0x13ae   :  { %5652 = vrsqrt.f32 %v3492_v1  ;;  %v3493_v55 = vadd.f32 1e-05, %v3489_v10 }
0x13af   :  { %v3486_v2 = vpop.xlane.xlu1 %3485 }
0x13b0   :  { %5654 = vrsqrt.f32 %v3493_v55  ;;  %v3490_v48 = vmul.f32 0.015625, %v3486_v2 }
0x13b2   :  { %v3494_v57 = vadd.f32 1e-05, %v3490_v48 }
0x13b4   :  { %5656 = vrsqrt.f32 %v3494_v57 }
0x13b6   :  { %v5651_v25 = vpop.eup %5650 }
0x13b7   :  { %v3499_v28 = vmul.f32 %v5651_v25, %v3467_v51 }
0x13b8   :  { %v5653_v62 = vpop.eup %5652 }
0x13b9   :  { %v3509_v0 = vmul.f32 %v4636_v63, %v3499_v28  ;;  %v3500_v5 = vmul.f32 %v5653_v62, %v3468_v31  ;;  %v5432_v31 = vld [vmem:[%s7358_s12 + $0xc8] sm:$0xff]  }
0x13ba   :  { %v5655_v47 = vpop.eup %5654  ;;  %4854 = vmatprep.subr.bf16.mxu1 %v5432_v31 }
0x13bb   :  { %v3510_v40 = vmul.f32 %v4636_v63, %v3500_v5  ;;  %v3501_v49 = vmul.f32 %v5655_v47, %v3469_v39  ;;  %v3519_v27 = vadd.f32 %v4637_v42, %v3509_v0  ;;  %4855 = vmatpush3.bf16.msra.mxu1 %v5433_v58  ;;  %v5435_v39 = vld [vmem:[%s7358_s12 + $0x90] sm:$0xff]  }
0x13bc   :  { %4856 = vmatprep.subr.bf16.mxu1 %v5434_v26 }
0x13bd   :  { %v3520_v16 = vadd.f32 %v4637_v42, %v3510_v40  ;;  %v3511_v59 = vmul.f32 %v4636_v63, %v3501_v49 }
0x13be   :  { %v5657_v15 = vpop.eup %5656 }
0x13bf   :  { %v3502_v9 = vmul.f32 %v5657_v15, %v3470_v45  ;;  %v3532_v35 = vpack.c.bf16 %v3520_v16, %v3519_v27  ;;  %v3521_v32 = vadd.f32 %v4637_v42, %v3511_v59  ;;  %4857 = vmatpush3.bf16.msra.mxu1 %v5435_v39  ;;  %v5442_v45 = vld [vmem:[%s7358_s12 + $0xf0] sm:$0xff]  }
0x13c0   :  { %4858 = vmatprep.subr.bf16.mxu1 %v5436_v54 }
0x13c1   :  { %4655 = vmatmul.mubr.msk.bf16.vlgmr.msra.gmra.mrb[92].mxu0 %vm129_vm0, %v3532_v35  ;;  %v3512_v13 = vmul.f32 %v4636_v63, %v3502_v9 }
0x13c2   :  { %3635 = vmatprep.mubr.bf16.mxu0 %v5781_v41 }
0x13c3   :  { %v3522_v23 = vadd.f32 %v4637_v42, %v3512_v13  ;;  %4859 = vmatpush3.bf16.msra.mxu1 %v5437_v52 }
0x13c4   :  { %4860 = vmatprep.subr.bf16.mxu1 %v5438_v37 }
0x13c5   :  { %v3533_v51 = vpack.c.bf16 %v3522_v23, %v3521_v32 }
0x13c7   :  { %4861 = vmatpush3.bf16.msra.mxu1 %v5439_v3 }
0x13c8   :  { %4862 = vmatprep.subr.bf16.mxu1 %v5440_v22 }
0x13c9   :  { %4656 = vmatmul.mubr.msk.bf16.gmra.mrb[96].mxu0 %vm129_vm0, %v3533_v51 }
0x13ca   :  { %4131 = vmatprep.mubr.bf16.mxu0 %v5781_v41 }
0x13cb   :  { %4863 = vmatpush3.bf16.msra.mxu1 %v5441_v38 }
0x13cc   :  { %4864 = vmatprep.subr.bf16.mxu1 %v5442_v45 }
0x13cf   :  { %4865 = vmatpush3.bf16.msra.mxu1 %v5443_v7 }
0x13d0   :  { %4866 = vmatprep.subr.bf16.mxu1 %v5444_v46 }
0x13d3   :  { %4867 = vmatpush3.bf16.msra.mxu1 %v5445_v36 }
0x1494   :  { %v3627_v6 = vpop.f32.mrb[92].mxu0 }
0x1495   :  { %v7115_v29 = vadd.f32 %v3627_v6, %v3540_v4  ;;  %v3629_v50 = vpop.f32.mrb[93].mxu0 }
0x1496   :  { %v7117_v44 = vadd.f32 %v3629_v50, %v3544_v53  ;;  %v3631_v34 = vpop.f32.mrb[94].mxu0 }
0x1497   :  { %v3646_v17 = vmul.f32 %v7115_v29, %v7115_v29  ;;  %v7121_v33 = vadd.f32 %v3631_v34, %v3540_v4  ;;  %v3633_v43 = vpop.f32.mrb[95].mxu0 }
0x1498   :  { %v3647_v61 = vmul.f32 %v7117_v44, %v7117_v44  ;;  %v7125_v60 = vadd.f32 %v3633_v43, %v3544_v53 }
0x1499   :  { %v3654_v30 = vmul.f32 %v3646_v17, %v7115_v29  ;;  %v3648_v1 = vmul.f32 %v7121_v33, %v7121_v33 }
0x149a   :  { %v3655_v10 = vmul.f32 %v3647_v61, %v7117_v44  ;;  %v3649_v55 = vmul.f32 %v7125_v60, %v7125_v60 }
0x149b   :  { %v3662_v2 = vmul.f32 0.044715, %v3654_v30  ;;  %v3656_v48 = vmul.f32 %v3648_v1, %v7121_v33 }
0x149c   :  { %v3663_v57 = vmul.f32 0.044715, %v3655_v10  ;;  %v3657_v25 = vmul.f32 %v3649_v55, %v7125_v60  ;;  %v3637_v63 = vpop.f32.mrb[96].mxu0 }
0x149d   :  { %v3670_v28 = vadd.f32 %v3662_v2, %v7115_v29  ;;  %v3664_v62 = vmul.f32 0.044715, %v3656_v48  ;;  %v7136_v0 = vadd.f32 %v3637_v63, %v3540_v4  ;;  %v3639_v5 = vpop.f32.mrb[97].mxu0 }
0x149e   :  { %v3671_v47 = vadd.f32 %v3663_v57, %v7117_v44  ;;  %v3665_v42 = vmul.f32 0.044715, %v3657_v25  ;;  %v7139_v40 = vadd.f32 %v3639_v5, %v3544_v53  ;;  %v3641_v49 = vpop.f32.mrb[98].mxu0 }
0x149f   :  { %v3678_v27 = vmul.f32 0.7978846, %v3670_v28  ;;  %v3672_v16 = vadd.f32 %v3664_v62, %v7121_v33  ;;  %v3650_v15 = vmul.f32 %v7136_v0, %v7136_v0  ;;  %v7144_v9 = vadd.f32 %v3641_v49, %v3540_v4  ;;  %v3643_v35 = vpop.f32.mrb[99].mxu0 }
0x14a0   :  { %v3679_v59 = vmul.f32 0.7978846, %v3671_v47  ;;  %v3673_v13 = vadd.f32 %v3665_v42, %v7125_v60  ;;  %v3651_v23 = vmul.f32 %v7139_v40, %v7139_v40  ;;  %v7149_v32 = vadd.f32 %v3643_v35, %v3544_v53 }
0x14a1   :  { %5658 = vtanh.f32 %v3678_v27  ;;  %v3680_v51 = vmul.f32 0.7978846, %v3672_v16  ;;  %v3658_v8 = vmul.f32 %v3650_v15, %v7136_v0  ;;  %v3652_v56 = vmul.f32 %v7144_v9, %v7144_v9 }
0x14a2   :  { %5660 = vtanh.f32 %v3679_v59  ;;  %v3681_v31 = vmul.f32 0.7978846, %v3673_v13  ;;  %v3659_v58 = vmul.f32 %v3651_v23, %v7139_v40  ;;  %v3653_v26 = vmul.f32 %v7149_v32, %v7149_v32 }
0x14a3   :  { %5662 = vtanh.f32 %v3680_v51  ;;  %v3666_v39 = vmul.f32 0.044715, %v3658_v8  ;;  %v3660_v54 = vmul.f32 %v3652_v56, %v7144_v9 }
0x14a4   :  { %5664 = vtanh.f32 %v3681_v31  ;;  %v3667_v52 = vmul.f32 0.044715, %v3659_v58  ;;  %v3661_v37 = vmul.f32 %v3653_v26, %v7149_v32 }
0x14a5   :  { %v3674_v3 = vadd.f32 %v3666_v39, %v7136_v0  ;;  %v3668_v22 = vmul.f32 0.044715, %v3660_v54 }
0x14a6   :  { %v3675_v38 = vadd.f32 %v3667_v52, %v7139_v40  ;;  %v3669_v45 = vmul.f32 0.044715, %v3661_v37  ;;  %v4706_v37 = vld [vmem:[%s7359_s13 + $0x1] ss:$0 sm:$0xff] }
0x14a7   :  { %v3682_v7 = vmul.f32 0.7978846, %v3674_v3  ;;  %v3676_v46 = vadd.f32 %v3668_v22, %v7144_v9 }
0x14a8   :  { %v3683_v36 = vmul.f32 0.7978846, %v3675_v38  ;;  %v3677_v12 = vadd.f32 %v3669_v45, %v7149_v32 }
0x14a9   :  { %5666 = vtanh.f32 %v3682_v7  ;;  %v3684_v4 = vmul.f32 0.7978846, %v3676_v46 }
0x14aa   :  { %5668 = vtanh.f32 %v3683_v36  ;;  %v3685_v53 = vmul.f32 0.7978846, %v3677_v12 }
0x14ab   :  { %v5659_v6 = vpop.eup %5658  ;;  %5670 = vtanh.f32 %v3684_v4 }
0x14ac   :  { %v5661_v50 = vpop.eup %5660  ;;  %v3694_v34 = vadd.f32 1.0, %v5659_v6  ;;  %5672 = vtanh.f32 %v3685_v53 }
0x14ad   :  { %v5663_v17 = vpop.eup %5662  ;;  %v3695_v43 = vadd.f32 1.0, %v5661_v50 }
0x14ae   :  { %v5665_v61 = vpop.eup %5664  ;;  %v3702_v30 = vmul.f32 0.5, %v3694_v34  ;;  %v3696_v1 = vadd.f32 1.0, %v5663_v17 }
0x14af   :  { %v3697_v10 = vadd.f32 1.0, %v5665_v61  ;;  %v3703_v55 = vmul.f32 0.5, %v3695_v43 }
0x14b0   :  { %v3704_v2 = vmul.f32 0.5, %v3696_v1  ;;  %v3710_v57 = vmul.f32 %v3702_v30, %v7115_v29 }
0x14b1   :  { %v3705_v48 = vmul.f32 0.5, %v3697_v10  ;;  %v3711_v28 = vmul.f32 %v3703_v55, %v7117_v44 }
0x14b2   :  { %v3712_v25 = vmul.f32 %v3704_v2, %v7121_v33 }
0x14b3   :  { %v5667_v63 = vpop.eup %5666  ;;  %v3713_v62 = vmul.f32 %v3705_v48, %v7125_v60 }
0x14b4   :  { %v5669_v5 = vpop.eup %5668  ;;  %v3751_v47 = vpack.c.bf16 %v3712_v25, %v3710_v57  ;;  %v3698_v42 = vadd.f32 1.0, %v5667_v63 }
0x14b5   :  { %v5671_v49 = vpop.eup %5670  ;;  %v3752_v27 = vpack.c.bf16 %v3713_v62, %v3711_v28  ;;  %v3699_v16 = vadd.f32 1.0, %v5669_v5 }
0x14b6   :  { %v5673_v15 = vpop.eup %5672  ;;  %v3700_v35 = vadd.f32 1.0, %v5671_v49  ;;  %v3706_v59 = vmul.f32 0.5, %v3698_v42 }
0x14b7   :  { %3883 = vmatprep.mubr.bf16.mxu1 %v3752_v27  ;;  %v3701_v13 = vadd.f32 1.0, %v5673_v15  ;;  %v3707_v23 = vmul.f32 0.5, %v3699_v16  ;;  %v5448_v27 = vld [vmem:[%s7362_s16 + $0x4] ss:$12 sps:$4 sm:$0xff]   ;;  %v5446_v16 = vld [vmem:[%s7362_s16] ss:$12 sps:$4 sm:$0xff]  }
0x14b8   :  { %3884 = vmatmul.mubr.bf16.vlgmr.msra.gmra.mrb[76].mxu1 %v3751_v47  ;;  %v3708_v29 = vmul.f32 0.5, %v3700_v35  ;;  %v3714_v51 = vmul.f32 %v3706_v59, %v7136_v0  ;;  %4099 = vmatprep.subr.bf16.mxu0 %v5448_v27  ;;  %v5451_v15 = vld [vmem:[%s7362_s16 + $0x1c] ss:$12 sps:$4 sm:$0xff]   ;;  %v5449_v35 = vld [vmem:[%s7362_s16 + $0x18] ss:$12 sps:$4 sm:$0xff]  }
0x14b9   :  { %v3709_v33 = vmul.f32 0.5, %v3701_v13  ;;  %v3715_v60 = vmul.f32 %v3707_v23, %v7139_v40  ;;  %4100 = vmatpush1.bf16.msra.mxu0 %v5446_v16  ;;  %v5454_v59 = vld [vmem:[%s7362_s16 + $0x34] ss:$12 sps:$4 sm:$0xff]   ;;  %v5452_v13 = vld [vmem:[%s7362_s16 + $0x30] ss:$12 sps:$4 sm:$0xff]   ;;  %v5479_v27 = vld [vmem:[%s7364_s18 + $0x88] sm:$0xff]  }
0x14ba   :  { %v3716_v44 = vmul.f32 %v3708_v29, %v7144_v9  ;;  %4101 = vmatprep.subr.bf16.mxu0 %v5451_v15  ;;  %v5457_v23 = vld [vmem:[%s7362_s16 + $0x4c] ss:$12 sps:$4 sm:$0xff]   ;;  %v5455_v29 = vld [vmem:[%s7362_s16 + $0x48] ss:$12 sps:$4 sm:$0xff]  }
0x14bb   :  { %v3717_v8 = vmul.f32 %v3709_v33, %v7149_v32  ;;  %v5458_v33 = vld [vmem:[%s7362_s16 + $0x8] ss:$12 sps:$4 sm:$0xff]   ;;  %v5481_v15 = vld [vmem:[%s7364_s18 + $0x98] sm:$0xff]  }
0x14bc   :  { %v3753_v56 = vpack.c.bf16 %v3716_v44, %v3714_v51  ;;  %v5462_v51 = vld [vmem:[%s7364_s18 + $0x40] sm:$0xff]   ;;  %v5480_v16 = vld [vmem:[%s7364_s18 + $0x90] sm:$0xff]  }
0x14bd   :  { %v3754_v31 = vpack.c.bf16 %v3717_v8, %v3715_v60  ;;  %4102 = vmatpush1.bf16.msra.mxu0 %v5449_v35  ;;  %v5463_v44 = vld [vmem:[%s7364_s18] sm:$0xff]   ;;  %v5464_v60 = vld [vmem:[%s7364_s18 + $0x48] sm:$0xff]   ;;  %4886 = vmatprep.subr.bf16.mxu1 %v5462_v51 }
0x14be   :  { %4103 = vmatprep.subr.bf16.mxu0 %v5454_v59  ;;  %4887 = vmatpush3.bf16.msra.mxu1 %v5463_v44  ;;  %v5465_v8 = vld [vmem:[%s7364_s18 + $0x8] sm:$0xff]   ;;  %v4012_v35 = vld [vmem:[%s7363_s17] sm:$0x7]  ;;  %s5791_s17 = smov [#allocation8]  }
0x14bf   :  { %3891 = vmatprep.mubr.bf16.mxu1 %v3754_v31  ;;  %4888 = vmatprep.subr.bf16.mxu1 %v5464_v60  ;;  %v5467_v31 = vld [vmem:[%s7364_s18 + $0x10] sm:$0xff]   ;;  %v4017_v59 = vrot.slane %v4012_v35, %v6040_v19  ;;  %v4024_v19 = vsub.s32 2, %v6037_v18 }
0x14c0   :  { %3892 = vmatmul.mubr.bf16.gmra.mrb[80].mxu1 %v3753_v56  ;;  %v5466_v56 = vld [vmem:[%s7364_s18 + $0x50] sm:$0xff]  }
0x14c1   :  { %4104 = vmatpush1.bf16.msra.mxu0 %v5452_v13  ;;  %v4021_v13 = vrot.slane %v4012_v35, %v6046_v21 }
0x14c2   :  { %4105 = vmatprep.subr.bf16.mxu0 %v5457_v23  ;;  %4889 = vmatpush3.bf16.msra.mxu1 %v5465_v8 }
0x14c3   :  { %4890 = vmatprep.subr.bf16.mxu1 %v5466_v56 }
0x14c5   :  { %4106 = vmatpush1.bf16.msra.mxu0 %v5455_v29 }
0x14c6   :  { %5136 = vmatprep.subr.bf16.mxu0 %v5458_v33  ;;  %4891 = vmatpush3.bf16.msra.mxu1 %v5467_v31 }
0x158b   :  { %v4868_v58 = vpop.f32.mrb[76].mxu1 }
0x158c   :  { %v4869_v26 = vpop.f32.mrb[77].mxu1 }
0x158d   :  { %v4870_v39 = vadd.f32 %v4869_v26, %v4868_v58  ;;  %v4871_v54 = vpop.f32.mrb[78].mxu1  ;;  %v5468_v58 = vld [vmem:[%s7364_s18 + $0x58] sm:$0xff]  }
0x158e   :  { %v4872_v52 = vpop.f32.mrb[79].mxu1  ;;  %v5469_v26 = vld [vmem:[%s7364_s18 + $0x18] sm:$0xff]   ;;  %4892 = vmatprep.subr.bf16.mxu1 %v5468_v58 }
0x158f   :  { %v3900_v0 = vadd.f32 %v4870_v39, %v7005_v14  ;;  %v4873_v9 = vadd.f32 %v4872_v52, %v4871_v54  ;;  %v5470_v39 = vld [vmem:[%s7364_s18 + $0x60] sm:$0xff]   ;;  %4893 = vmatpush3.bf16.msra.mxu1 %v5469_v26  ;;  %v5472_v52 = vld [vmem:[%s7364_s18 + $0x68] sm:$0xff]  }
0x1590   :  { %v5471_v54 = vld [vmem:[%s7364_s18 + $0x20] sm:$0xff]   ;;  %4894 = vmatprep.subr.bf16.mxu1 %v5470_v39 }
0x1591   :  { %v3901_v40 = vadd.f32 %v4873_v9, %v7011_v20  ;;  %v3912_v3 = vadd.f32 %v4706_v37, %v3900_v0 }
0x1593   :  { %v4874_v32 = vpop.f32.mrb[80].mxu1  ;;  %v3918_v22 = vsel %vm129_vm0, %v3912_v3, 0.0  ;;  %v3913_v38 = vadd.f32 %v4706_v37, %v3901_v40  ;;  %4895 = vmatpush3.bf16.msra.mxu1 %v5471_v54 }
0x1594   :  { %v4875_v45 = vpop.f32.mrb[81].mxu1  ;;  %3919 = vadd.xlane.f32.xlu0 %v3918_v22  ;;  %4896 = vmatprep.subr.bf16.mxu1 %v5472_v52 }
0x1595   :  { %v4876_v7 = vadd.f32 %v4875_v45, %v4874_v32  ;;  %v4877_v46 = vpop.f32.mrb[82].mxu1  ;;  %v3921_v36 = vsel %vm129_vm0, %v3913_v38, 0.0 }
0x1596   :  { %v4878_v12 = vpop.f32.mrb[83].mxu1  ;;  %3922 = vadd.xlane.f32.xlu1 %v3921_v36 }
0x1597   :  { %v3902_v4 = vadd.f32 %v4876_v7, %v7008_v24  ;;  %v4879_v53 = vadd.f32 %v4878_v12, %v4877_v46 }
0x1599   :  { %v3903_v14 = vadd.f32 %v4879_v53, %v7017_v11  ;;  %v3914_v6 = vadd.f32 %v4706_v37, %v3902_v4  ;;  %v4707_v4 = vld [vmem:[#allocation5] ss:$0 sm:$0xff] }
0x159b   :  { %v3924_v20 = vsel %vm129_vm0, %v3914_v6, 0.0  ;;  %v3915_v50 = vadd.f32 %v4706_v37, %v3903_v14 }
0x159c   :  { %3925 = vadd.xlane.f32.xlu0 %v3924_v20 }
0x159d   :  { %v3927_v34 = vsel %vm129_vm0, %v3915_v50, 0.0 }
0x159e   :  { %3928 = vadd.xlane.f32.xlu1 %v3927_v34 }
0x1621   :  { %v3920_v17 = vpop.xlane.xlu0 %3919 }
0x1622   :  { %v3930_v43 = vmul.f32 0.015625, %v3920_v17 }
0x1623   :  { %v3923_v61 = vpop.xlane.xlu1 %3922 }
0x1624   :  { %v7182_v30 = vsub.f32 %v3912_v3, %v3930_v43  ;;  %v3931_v1 = vmul.f32 0.015625, %v3923_v61 }
0x1626   :  { %v7184_v10 = vsub.f32 %v3913_v38, %v3931_v1  ;;  %v3938_v24 = vmul.f32 %v7182_v30, %v7182_v30 }
0x1628   :  { %v3942_v11 = vsel %vm129_vm0, %v3938_v24, 0.0  ;;  %v3939_v55 = vmul.f32 %v7184_v10, %v7184_v10 }
0x1629   :  { %3943 = vadd.xlane.f32.xlu0 %v3942_v11  ;;  %v3926_v2 = vpop.xlane.xlu0 %3925 }
0x162a   :  { %v3932_v48 = vmul.f32 0.015625, %v3926_v2  ;;  %v3945_v57 = vsel %vm129_vm0, %v3939_v55, 0.0 }
0x162b   :  { %3946 = vadd.xlane.f32.xlu1 %v3945_v57  ;;  %v3929_v25 = vpop.xlane.xlu1 %3928  ;;  %v5460_v57 = vld [vmem:[%s7362_s16 + $0x38] ss:$12 sps:$4 sm:$0xff]  }
0x162c   :  { %v7192_v63 = vsub.f32 %v3914_v6, %v3932_v48  ;;  %v3933_v28 = vmul.f32 0.015625, %v3929_v25  ;;  %v4708_v6 = vld [vmem:[#allocation7] ss:$0 sm:$0xff] }
0x162e   :  { %v7194_v62 = vsub.f32 %v3915_v50, %v3933_v28  ;;  %v3940_v5 = vmul.f32 %v7192_v63, %v7192_v63  ;;  %v5461_v28 = vld [vmem:[%s7362_s16 + $0x50] ss:$12 sps:$4 sm:$0xff]  }
0x1630   :  { %v3948_v47 = vsel %vm129_vm0, %v3940_v5, 0.0  ;;  %v3941_v42 = vmul.f32 %v7194_v62, %v7194_v62  ;;  %v5475_v5 = vld [vmem:[%s7364_s18 + $0x30] sm:$0xff]  }
0x1631   :  { %3949 = vadd.xlane.f32.xlu0 %v3948_v47  ;;  %v5476_v47 = vld [vmem:[%s7364_s18 + $0x78] sm:$0xff]  }
0x1632   :  { %v3951_v49 = vsel %vm129_vm0, %v3941_v42, 0.0  ;;  %v5477_v42 = vld [vmem:[%s7364_s18 + $0x38] sm:$0xff]  }
0x1633   :  { %3952 = vadd.xlane.f32.xlu1 %v3951_v49  ;;  %v5478_v49 = vld [vmem:[%s7364_s18 + $0x80] sm:$0xff]  }
0x16b6   :  { %v3944_v37 = vpop.xlane.xlu0 %3943 }
0x16b7   :  { %v3954_v0 = vmul.f32 0.015625, %v3944_v37 }
0x16b8   :  { %v3947_v9 = vpop.xlane.xlu1 %3946 }
0x16b9   :  { %v3958_v40 = vadd.f32 1e-05, %v3954_v0  ;;  %v3955_v3 = vmul.f32 0.015625, %v3947_v9 }
0x16bb   :  { %5674 = vrsqrt.f32 %v3958_v40  ;;  %v3959_v32 = vadd.f32 1e-05, %v3955_v3 }
0x16bd   :  { %5676 = vrsqrt.f32 %v3959_v32 }
0x16be   :  { %v3950_v22 = vpop.xlane.xlu0 %3949 }
0x16bf   :  { %v3956_v38 = vmul.f32 0.015625, %v3950_v22 }
0x16c0   :  { %v3953_v45 = vpop.xlane.xlu1 %3952 }
0x16c1   :  { %v3960_v7 = vadd.f32 1e-05, %v3956_v38  ;;  %v3957_v46 = vmul.f32 0.015625, %v3953_v45 }
0x16c3   :  { %5678 = vrsqrt.f32 %v3960_v7  ;;  %v3961_v36 = vadd.f32 1e-05, %v3957_v46  ;;  %v4025_v7 = vrot.slane %v4012_v35, %v4024_v19 }
0x16c5   :  { %v5675_v12 = vpop.eup %5674  ;;  %5680 = vrsqrt.f32 %v3961_v36 }
0x16c6   :  { %v3966_v53 = vmul.f32 %v5675_v12, %v7182_v30  ;;  %v5459_v30 = vld [vmem:[%s7362_s16 + $0x20] ss:$12 sps:$4 sm:$0xff]  }
0x16c7   :  { %v5677_v14 = vpop.eup %5676 }
0x16c8   :  { %v3976_v20 = vmul.f32 %v4707_v4, %v3966_v53  ;;  %v3967_v50 = vmul.f32 %v5677_v14, %v7184_v10 }
0x16ca   :  { %v3986_v34 = vadd.f32 %v4708_v6, %v3976_v20  ;;  %v3977_v17 = vmul.f32 %v4707_v4, %v3967_v50 }
0x16cc   :  { %3990 = vst.msk [vmem:[#allocation8] sm:$0xff] %vm129_vm0, %v3986_v34  ;;  %v3987_v43 = vadd.f32 %v4708_v6, %v3977_v17 }
0x16cd   :  { %v5679_v61 = vpop.eup %5678 }
0x16ce   :  { %3991 = vst.msk [vmem:[#allocation8 + $0x8] sm:$0xff] %vm129_vm0, %v3987_v43  ;;  %v3968_v1 = vmul.f32 %v5679_v61, %v7192_v63  ;;  %v4010_v24 = vpack.c.bf16 %v3987_v43, %v3986_v34 }
0x16cf   :  { %v5681_v11 = vpop.eup %5680 }
0x16d0   :  { %v3969_v55 = vmul.f32 %v5681_v11, %v7194_v62  ;;  %4721 = vmatmul.mubr.msk.bf16.vlgmr.msra.gmra.mrb[100].mxu0 %vm129_vm0, %v4010_v24  ;;  %v3978_v10 = vmul.f32 %v4707_v4, %v3968_v1  ;;  %v5474_v62 = vld [vmem:[%s7364_s18 + $0x70] sm:$0xff]  }
0x16d1   :  { %5137 = vmatpush3.bf16.msra.mxu0 %v5458_v33  ;;  %4141 = vmatprep.mubr.bf16.mxu0 %v5781_v41  ;;  %v5473_v41 = vld [vmem:[%s7364_s18 + $0x28] sm:$0xff]   ;;  %s4499_s18 = sshll.u32 %s5791_s17, 4  ;;  %s4500_s18 = int_to_ptr.vmem [resolvable:$true] %s4499_s18 }
0x16d2   :  { %5138 = vmatprep.subr.bf16.mxu0 %v5459_v30  ;;  %v3979_v2 = vmul.f32 %v4707_v4, %v3969_v55  ;;  %v3988_v48 = vadd.f32 %v4708_v6, %v3978_v10  ;;  %4897 = vmatpush3.bf16.msra.mxu1 %v5473_v41  ;;  %s5748_s7 = scalar_lea.vmem %s4500_s18, 512  ;;  %p5753_p11 = scmp.lt.s32.totalorder %s4500_s18, %s4500_s18 }
0x16d3   :  { %4898 = vmatprep.subr.bf16.mxu1 %v5474_v62  ;;  %p5749_p10 = scmp.ne.s32.totalorder %s4500_s18, %s5748_s7  ;;  %p5754_p12 = scmp.lt.s32.totalorder %s5748_s7, %s5748_s7 }
0x16d4   :  { %v3989_v25 = vadd.f32 %v4708_v6, %v3979_v2  ;;  %3992 = vst.msk [vmem:[#allocation8 + $0x10] sm:$0xff] %vm129_vm0, %v3988_v48 }
0x16d5   :  { %5139 = vmatpush3.bf16.msra.mxu0 %v5459_v30  ;;  %p5755_p13 = por %p5754_p12, %p5753_p11 }
0x16d6   :  { %3993 = vst.msk [vmem:[#allocation8 + $0x18] sm:$0xff] %vm129_vm0, %v3989_v25  ;;  %v4011_v63 = vpack.c.bf16 %v3989_v25, %v3988_v48  ;;  %5140 = vmatprep.subr.bf16.mxu0 %v5460_v57  ;;  %4899 = vmatpush3.bf16.msra.mxu1 %v5475_v5 }
0x16d7   :  { %4900 = vmatprep.subr.bf16.mxu1 %v5476_v47  ;;  %p5756_p0 = pnand %p5755_p13, %p5749_p10 }
0x16d8   :  { %4722 = vmatmul.mubr.msk.bf16.gmra.mrb[104].mxu0 %vm129_vm0, %v4011_v63 }
0x16d9   :  { %5141 = vmatpush3.bf16.msra.mxu0 %v5460_v57  ;;  %5144 = vmatprep.mubr.msk.bf16.mxu0 %vm129_vm0, %v4010_v24 }
0x16da   :  { %5142 = vmatprep.subr.bf16.mxu0 %v5461_v28  ;;  %4901 = vmatpush3.bf16.msra.mxu1 %v5477_v42 }
0x16dd   :  { %5143 = vmatpush3.bf16.msra.mxu0 %v5461_v28 }
0x16de   :  { %5148 = vmatprep.subr.bf16.mxu0 %v5478_v49 }
0x16e0   :  { %5145 = vmatmul.mubr.msk.bf16.vlgmr.msra.gmra.mrb[108].mxu0 %vm129_vm0, %v4011_v63 }
0x16e1   :  { %5149 = vmatpush3.bf16.msra.mxu0 %v5478_v49 }
0x16e2   :  { %5150 = vmatprep.subr.bf16.mxu0 %v5479_v27 }
0x16e5   :  { %5151 = vmatpush3.bf16.msra.mxu0 %v5479_v27 }
0x16e6   :  { %5152 = vmatprep.subr.bf16.mxu0 %v5480_v16 }
0x16e9   :  { %5153 = vmatpush3.bf16.msra.mxu0 %v5480_v16 }
0x16ea   :  { %5154 = vmatprep.subr.bf16.mxu0 %v5481_v15 }
0x16ed   :  { %5155 = vmatpush3.bf16.msra.mxu0 %v5481_v15 }
0x17a3   :  { %v4133_v23 = vpop.f32.mrb[100].mxu0 }
0x17a4   :  { %v4134_v29 = vadd.f32 %v4133_v23, %v4017_v59  ;;  %v4135_v33 = vpop.f32.mrb[101].mxu0 }
0x17a5   :  { %v4136_v51 = vadd.f32 %v4135_v33, %v4021_v13  ;;  %v4137_v44 = vpop.f32.mrb[102].mxu0 }
0x17a6   :  { %v4138_v60 = vadd.f32 %v4137_v44, %v4017_v59  ;;  %v4139_v8 = vpop.f32.mrb[103].mxu0  ;;  %v4201_v31 = vmax.f32 %v4134_v29, 0.0 }
0x17a7   :  { %v4140_v56 = vadd.f32 %v4139_v8, %v4021_v13  ;;  %v4202_v26 = vmax.f32 %v4136_v51, 0.0 }
0x17a8   :  { %v4204_v58 = vmax.f32 %v4138_v60, 0.0 }
0x17a9   :  { %v4205_v39 = vmax.f32 %v4140_v56, 0.0 }
0x17aa   :  { %v4253_v54 = vpack.c.bf16 %v4204_v58, %v4201_v31 }
0x17ab   :  { %v4254_v52 = vpack.c.bf16 %v4205_v39, %v4202_v26  ;;  %v4143_v37 = vpop.f32.mrb[104].mxu0 }
0x17ac   :  { %v4144_v0 = vadd.f32 %v4143_v37, %v4017_v59  ;;  %v4145_v9 = vpop.f32.mrb[105].mxu0 }
0x17ad   :  { %v4146_v21 = vadd.f32 %v4145_v9, %v4021_v13  ;;  %v4147_v40 = vpop.f32.mrb[106].mxu0  ;;  %4424 = vmatprep.mubr.bf16.mxu1 %v4254_v52 }
0x17ae   :  { %v4148_v3 = vadd.f32 %v4147_v40, %v4017_v59  ;;  %v4149_v32 = vpop.f32.mrb[107].mxu0  ;;  %4425 = vmatmul.mubr.bf16.vlgmr.msra.gmra.mrb[84].mxu1 %v4253_v54  ;;  %v4207_v38 = vmax.f32 %v4144_v0, 0.0 }
0x17af   :  { %v4150_v22 = vadd.f32 %v4149_v32, %v4021_v13  ;;  %v4208_v46 = vmax.f32 %v4146_v21, 0.0 }
0x17b0   :  { %v4210_v45 = vmax.f32 %v4148_v3, 0.0 }
0x17b1   :  { %v4211_v36 = vmax.f32 %v4150_v22, 0.0 }
0x17b2   :  { %v4256_v12 = vpack.c.bf16 %v4210_v45, %v4207_v38 }
0x17b3   :  { %v4257_v4 = vpack.c.bf16 %v4211_v36, %v4208_v46  ;;  %v5146_v53 = vpop.f32.mrb[108].mxu0 }
0x17b4   :  { %v4195_v14 = vadd.f32 %v5146_v53, %v4025_v7  ;;  %v4186_v6 = vpop.f32.mrb[109].mxu0 }
0x17b5   :  { %v4187_v20 = vadd.f32 %v4186_v6, %v4025_v7  ;;  %v5147_v50 = vpop.f32.mrb[110].mxu0  ;;  %4432 = vmatprep.mubr.bf16.mxu1 %v4257_v4 }
0x17b6   :  { %v4198_v18 = vadd.f32 %v5147_v50, %v4025_v7  ;;  %v4189_v34 = vpop.f32.mrb[111].mxu0  ;;  %4433 = vmatmul.mubr.bf16.gmra.mrb[88].mxu1 %v4256_v12  ;;  %v4209_v43 = vmax.f32 %v4195_v14, 0.0 }
0x17b7   :  { %v4190_v17 = vadd.f32 %v4189_v34, %v4025_v7  ;;  %v4203_v1 = vmax.f32 %v4187_v20, 0.0 }
0x17b8   :  { %v4212_v61 = vmax.f32 %v4198_v18, 0.0 }
0x17b9   :  { %v4206_v24 = vmax.f32 %v4190_v17, 0.0 }
0x17ba   :  { %v4258_v30 = vpack.c.bf16 %v4212_v61, %v4209_v43 }
0x17bb   :  { %v4255_v11 = vpack.c.bf16 %v4206_v24, %v4203_v1 }
0x17bd   :  { %5156 = vmatprep.mubr.msk.bf16.mxu0 %vm129_vm0, %v4255_v11 }
0x17be   :  { %5157 = vmatmul.mubr.msk.bf16.vlgmr.msra.gmra.mrb[112].mxu0 %vm129_vm0, %v4258_v30 }
0x17bf   :  { %5759 = shalt.err (!%p5756_p0)
}
0x17c0   :  { %s5760_s2 = scalar_lea.hbm %s7366_s20, 512 }
0x17c1   :  { %p5761_p1 = scmp.ne.s32.totalorder %s7366_s20, %s5760_s2  ;;  %p5764_p2 = scmp.lt.u32.totalorder %s5760_s2, %s7366_s20 }
0x17c3   :  { %p5766_p3 = pnand %p5764_p2, %p5761_p1 }
0x17c5   :  { %5769 = shalt.err (!%p5766_p3)
}
0x17c6   :  { %s5792_s11 = smov 128   ;;  %s5793_s12 = smov 8   ;;  %v4725_v42 = vld [vmem:[%s7365_s19] ss:$0 sm:$0xff] }
0x17c7   :  { %4505 = dma.vmem_to_hbm [thread:$0]  %s4500_s18, 512, %s7366_s20, [#allocation4], %s5792_s11, %s5792_s11, %s5793_s12  }
0x1881   :  { %v4902_v55 = vpop.f32.mrb[84].mxu1 }
0x1882   :  { %v4903_v10 = vpop.f32.mrb[85].mxu1 }
0x1883   :  { %v4904_v2 = vadd.f32 %v4903_v10, %v4902_v55  ;;  %v4905_v48 = vpop.f32.mrb[86].mxu1 }
0x1884   :  { %v4906_v57 = vpop.f32.mrb[87].mxu1 }
0x1885   :  { %v4907_v25 = vadd.f32 %v4906_v57, %v4905_v48  ;;  %v4427_v16 = vadd.f32 %v4904_v2, %v4725_v42 }
0x1887   :  { %v4430_v29 = vadd.f32 %v4907_v25, %v4725_v42 }
0x1889   :  { %v4908_v63 = vpop.f32.mrb[88].mxu1 }
0x188a   :  { %v4909_v28 = vpop.f32.mrb[89].mxu1 }
0x188b   :  { %v4910_v41 = vadd.f32 %v4909_v28, %v4908_v63  ;;  %v4911_v62 = vpop.f32.mrb[90].mxu1 }
0x188c   :  { %v4912_v5 = vpop.f32.mrb[91].mxu1 }
0x188d   :  { %v4913_v47 = vadd.f32 %v4912_v5, %v4911_v62  ;;  %v4435_v49 = vadd.f32 %v4910_v41, %v4725_v42 }
0x188f   :  { %v4438_v59 = vadd.f32 %v4913_v47, %v4725_v42 }
0x1891   :  { %v5158_v27 = vpop.f32.mrb[112].mxu0 }
0x1892   :  { %v4484_v15 = vadd.f32 %v5158_v27, %v4435_v49  ;;  %v4475_v35 = vpop.f32.mrb[113].mxu0 }
0x1893   :  { %v4476_v13 = vadd.f32 %v4475_v35, %v4427_v16  ;;  %v5159_v23 = vpop.f32.mrb[114].mxu0 }
0x1894   :  { %4492 = vst [vmem:[%s7367_s21 + $0x10] sm:$0xff] %v4484_v15  ;;  %v4487_v33 = vadd.f32 %v5159_v23, %v4438_v59  ;;  %v4478_v51 = vpop.f32.mrb[115].mxu0 }
0x1895   :  { %4490 = vst [vmem:[%s7367_s21] sm:$0xff] %v4476_v13  ;;  %v4479_v44 = vadd.f32 %v4478_v51, %v4430_v29 }
0x1896   :  { %4493 = vst [vmem:[%s7367_s21 + $0x18] sm:$0xff] %v4487_v33 }
0x1897   :  { %4491 = vst [vmem:[%s7367_s21 + $0x8] sm:$0xff] %v4479_v44 }
0x1898   :  { %5774 = dma.done.wait [#allocation4], 512  }
0x1899   :  { %5775 = vsyncadd [#allocation4], 4294966784 }
0x189a   :  { %4513 = vsyncpa [#allocation3], 1 }
0x189b   :  { %4514 = vsyncpa [#allocation6], 1 }
0x189c   :  { %4515 = vsyncpa [#allocation4], 1 }

</bundles_post_ra>
